<compile_context>
chip_gen: v6e
topology: v6e:2x2x1
jax: 0.10.0
libtpu: 0.0.40
codegen_flags: <defaults>
</compile_context>

<pallas_src>
import jax
import jax.numpy as jnp
from jax.experimental import pallas as pl
from jax.experimental.pallas import tpu as pltpu


def _round_up(x: int, m: int) -> int:
    return ((x + m - 1) // m) * m


# ----------------------------- Pallas kernel ------------------------------ #
def _mlp_lm_head_kernel(x_ref, w1_ref, b1_ref, w2_ref, b2_ref, o_ref, h_ref):
    """Fused MLP LM head, grid = (row_tiles, vocab_tiles).

    x_ref : (TM, H)   bf16  VMEM   (same block for every vocab tile j)
    w1_ref: (H, F)    bf16  VMEM   (resident, constant index map)
    b1_ref: (1, F)    f32   VMEM
    w2_ref: (F, TV)   bf16  VMEM   (vocab-tiled)
    b2_ref: (1, TV)   f32   VMEM
    o_ref : (TM, TV)  bf16  VMEM
    h_ref : (TM, F)   bf16  VMEM scratch (carried across the vocab axis)
    """
    j = pl.program_id(1)

    # Compute the hidden activation once per row tile (first vocab step only).
    @pl.when(j == 0)
    def _():
        # bf16 x bf16 MXU matmul with f32 accumulation.
        h = jnp.dot(x_ref[...], w1_ref[...], preferred_element_type=jnp.float32)
        h = h + b1_ref[...]                      # (TM, F) + (1, F)
        # NOTE: tanh-approx GELU (PyTorch nn.GELU default is exact erf; erf has
        # no guaranteed Mosaic lowering, and the wrapped model here is synthetic).
        h = jax.nn.gelu(h, approximate=True)
        h_ref[...] = h.astype(h_ref.dtype)

    # Second matmul on the current vocab tile.
    logits = jnp.dot(h_ref[...], w2_ref[...], preferred_element_type=jnp.float32)
    o_ref[...] = (logits + b2_ref[...]).astype(o_ref.dtype)


def mlp_lm_head(x, w1, b1, w2, b2, *, tm=256, tv=512, out_dtype=jnp.bfloat16):
    """x: [B, S, H] -> logits [B, S, V] (out_dtype, default bf16)."""
    B, S, H = x.shape
    F = w1.shape[1]
    V = w2.shape[1]
    M = B * S

    # bf16 MXU operands (cast once here), f32 biases for accurate add.
    x2d = x.reshape(M, H).astype(jnp.bfloat16)
    w1 = w1.astype(jnp.bfloat16)
    w2 = w2.astype(jnp.bfloat16)
    b1_2d = b1.reshape(1, F).astype(jnp.float32)
    b2_2d = b2.reshape(1, V).astype(jnp.float32)

    # Tile sizes respecting the (8, 128) layout constraint; pad instead of assert.
    tm_eff = min(tm, _round_up(M, 8))
    tv_eff = min(tv, _round_up(V, 128))
    M_pad = _round_up(M, tm_eff)
    V_pad = _round_up(V, tv_eff)

    if M_pad != M:
        x2d = jnp.pad(x2d, ((0, M_pad - M), (0, 0)))
    if V_pad != V:
        w2 = jnp.pad(w2, ((0, 0), (0, V_pad - V)))
        b2_2d = jnp.pad(b2_2d, ((0, 0), (0, V_pad - V)))

    grid = (M_pad // tm_eff, V_pad // tv_eff)

    flops = 2 * M * (H * F + F * V)
    bytes_accessed = (
        M_pad * H * 2 + H * F * 2 + F * 4 + F * V_pad * 2 + V_pad * 4
        + M_pad * V_pad * jnp.dtype(out_dtype).itemsize)

    out2d = pl.pallas_call(
        _mlp_lm_head_kernel,
        out_shape=jax.ShapeDtypeStruct((M_pad, V_pad), out_dtype),
        grid_spec=pltpu.PrefetchScalarGridSpec(
            num_scalar_prefetch=0,
            grid=grid,
            in_specs=[
                pl.BlockSpec((tm_eff, H), lambda i, j: (i, 0)),   # x row tile
                pl.BlockSpec((H, F), lambda i, j: (0, 0)),        # W1 (resident)
                pl.BlockSpec((1, F), lambda i, j: (0, 0)),        # b1
                pl.BlockSpec((F, tv_eff), lambda i, j: (0, j)),   # W2 vocab tile
                pl.BlockSpec((1, tv_eff), lambda i, j: (0, j)),   # b2 vocab tile
            ],
            out_specs=pl.BlockSpec((tm_eff, tv_eff), lambda i, j: (i, j)),
            scratch_shapes=[pltpu.VMEM((tm_eff, F), jnp.bfloat16)],
        ),
        compiler_params=pltpu.CompilerParams(
            dimension_semantics=("parallel", "arbitrary"),
            vmem_limit_bytes=48 * 1024 * 1024,
        ),
        cost_estimate=pl.CostEstimate(
            flops=flops, transcendentals=M * F, bytes_accessed=bytes_accessed),
    )(x2d, w1, b1_2d, w2, b2_2d)

    return out2d[:M, :V].reshape(B, S, V)


# --------------------------- ModelWrapper port ----------------------------- #
class SyntheticPolicyModel:
    """The wrapped `_model`: a tiny MLP LM head whose forward runs in Pallas."""

    def __init__(self, key, hidden=128, ffn=512, vocab=1024):
        k1, k2, k3, k4 = jax.random.split(key, 4)
        # Weights stored in bf16 (MXU-native on v6e/v7x), biases in f32.
        self.w1 = (jax.random.normal(k1, (hidden, ffn), jnp.float32) * 0.02
                   ).astype(jnp.bfloat16)
        self.b1 = jax.random.normal(k2, (ffn,), jnp.float32) * 0.02
        self.w2 = (jax.random.normal(k3, (ffn, vocab), jnp.float32) * 0.02
                   ).astype(jnp.bfloat16)
        self.b2 = jax.random.normal(k4, (vocab,), jnp.float32) * 0.02

    def __call__(self, x):
        return mlp_lm_head(x, self.w1, self.b1, self.w2, self.b2)

    def parameters(self):
        return [self.w1, self.b1, self.w2, self.b2]

    def state_dict(self):
        return {"w1": self.w1, "b1": self.b1, "w2": self.w2, "b2": self.b2}

    def load_state_dict(self, sd):
        self.w1, self.b1 = sd["w1"], sd["b1"]
        self.w2, self.b2 = sd["w2"], sd["b2"]


class ModelWrapper:
    """JAX port of swift's ModelWrapper: forward delegates to `_model`."""

    def __init__(self, model, ref_model):
        self._model = model
        self._ref_model = ref_model  # held, never used in forward

    def __call__(self, *args, **kwargs):
        return self._model(*args, **kwargs)

    # Attribute / state delegation, mirroring the PyTorch class.
    def __getattr__(self, key):
        return getattr(object.__getattribute__(self, "_model"), key)

    def parameters(self, *args, **kwargs):
        return self._model.parameters(*args, **kwargs)

    def state_dict(self, *args, **kwargs):
        return self._model.state_dict(*args, **kwargs)

    def load_state_dict(self, *args, **kwargs):
        return self._model.load_state_dict(*args, **kwargs)

    # TODO(synk): _save_load_context is DeepSpeed trainer/engine state-swapping
    # plumbing with no Pallas/JAX equivalent; omitted.


# ---------------------------------- main ----------------------------------- #
if __name__ == "__main__":
    key = jax.random.PRNGKey(0)
    k_model, k_ref, k_x = jax.random.split(key, 3)

    # Small-but-tileable shapes: M = B*S = 512 -> 2 row tiles of 256 (two v7x
    # TensorCores get work), V = 1024 -> 2 vocab tiles of 512.
    B, S, H, F, V = 4, 128, 128, 512, 1024
    model = SyntheticPolicyModel(k_model, hidden=H, ffn=F, vocab=V)
    ref_model = SyntheticPolicyModel(k_ref, hidden=H, ffn=F, vocab=V)
    wrapper = ModelWrapper(model, ref_model)

    x = jax.random.normal(k_x, (B, S, H), jnp.float32)

    logits = wrapper(x)                 # ModelWrapper.forward -> _model(x)
    jax.block_until_ready(logits)

    # Plain-JAX reference mimicking the kernel's precision path
    # (bf16 operands, f32 accumulation, bf16 hidden + bf16 output).
    x_bf = x.reshape(B * S, H).astype(jnp.bfloat16).astype(jnp.float32)
    h_ref = jax.nn.gelu(
        x_bf @ model.w1.astype(jnp.float32) + model.b1, approximate=True)
    h_ref = h_ref.astype(jnp.bfloat16).astype(jnp.float32)
    ref = h_ref @ model.w2.astype(jnp.float32) + model.b2
    ref = ref.astype(jnp.bfloat16).reshape(B, S, V)

    assert logits.shape == (B, S, V)
    assert logits.dtype == jnp.bfloat16
    assert jnp.allclose(logits.astype(jnp.float32), ref.astype(jnp.float32),
                        atol=2e-2, rtol=2e-2)

    print("KERNEL_OK")
</pallas_src>

<mosaic_0001>
module attributes {stable_mosaic.version = 11 : i64} {
  func.func @_mlp_lm_head_kernel(%arg0: i32, %arg1: i32, %arg2: memref<256x128xbf16, #tpu.memory_space<vmem>>, %arg3: memref<128x512xbf16, #tpu.memory_space<vmem>>, %arg4: memref<1x512xf32, #tpu.memory_space<vmem>>, %arg5: memref<512x512xbf16, #tpu.memory_space<vmem>>, %arg6: memref<1x512xf32, #tpu.memory_space<vmem>>, %arg7: memref<256x512xbf16, #tpu.memory_space<vmem>>, %arg8: memref<256x512xbf16, #tpu.memory_space<vmem>>) attributes {dimension_semantics = [#tpu.dimension_semantics<parallel>, #tpu.dimension_semantics<arbitrary>], iteration_bounds = array<i64: 2, 2>, scalar_prefetch = 0 : i64, scratch_operands = 1 : i64, tpu.core_type = #tpu.core_type<tc>, window_params = [{transform_indices = @transform_0, window_bounds = array<i64: 256, 128>}, {pipeline_mode = #tpu.pipeline_mode<synchronous>, transform_indices = @transform_1, window_bounds = array<i64: 128, 512>}, {pipeline_mode = #tpu.pipeline_mode<synchronous>, transform_indices = @transform_2, window_bounds = array<i64: 1, 512>}, {transform_indices = @transform_3, window_bounds = array<i64: 512, 512>}, {transform_indices = @transform_4, window_bounds = array<i64: 1, 512>}, {transform_indices = @transform_5, window_bounds = array<i64: 256, 512>}]} {
    %c0_i32 = arith.constant 0 : i32
    %0 = arith.cmpi eq, %arg1, %c0_i32 : i32
    %1 = arith.extui %0 : i1 to i32
    %c0_i32_0 = arith.constant 0 : i32
    %2 = arith.cmpi ne, %1, %c0_i32_0 : i32
    scf.if %2 {
      %c0_8 = arith.constant 0 : index
      %c0_9 = arith.constant 0 : index
      %11 = vector.load %arg2[%c0_8, %c0_9] : memref<256x128xbf16, #tpu.memory_space<vmem>>, vector<256x128xbf16>
      %c0_10 = arith.constant 0 : index
      %c0_11 = arith.constant 0 : index
      %12 = vector.load %arg3[%c0_10, %c0_11] : memref<128x512xbf16, #tpu.memory_space<vmem>>, vector<128x512xbf16>
      %cst_12 = arith.constant dense<0.000000e+00> : vector<256x512xf32>
      %13 = tpu.matmul %11, %12, %cst_12 {dimension_numbers = #tpu.dot_dimension_numbers<[1], [0], [0], [1], [0, 0, 1, 1], [], []>} : vector<256x128xbf16>, vector<128x512xbf16>, vector<256x512xf32> -> vector<256x512xf32>
      %c0_13 = arith.constant 0 : index
      %c0_14 = arith.constant 0 : index
      %14 = vector.load %arg4[%c0_13, %c0_14] : memref<1x512xf32, #tpu.memory_space<vmem>>, vector<1x512xf32>
      %15 = vector.broadcast %14 : vector<1x512xf32> to vector<256x512xf32>
      %16 = arith.addf %13, %15 : vector<256x512xf32>
      %17 = arith.mulf %16, %16 : vector<256x512xf32>
      %18 = arith.mulf %16, %17 : vector<256x512xf32>
      %cst_15 = arith.constant 4.471500e-02 : f32
      %19 = vector.broadcast %cst_15 : f32 to vector<256x512xf32>
      %20 = arith.mulf %19, %18 : vector<256x512xf32>
      %21 = arith.addf %16, %20 : vector<256x512xf32>
      %cst_16 = arith.constant 0.797884583 : f32
      %22 = vector.broadcast %cst_16 : f32 to vector<256x512xf32>
      %23 = arith.mulf %22, %21 : vector<256x512xf32>
      %24 = math.tanh %23 : vector<256x512xf32>
      %cst_17 = arith.constant 1.000000e+00 : f32
      %25 = vector.broadcast %cst_17 : f32 to vector<256x512xf32>
      %26 = arith.addf %25, %24 : vector<256x512xf32>
      %cst_18 = arith.constant 5.000000e-01 : f32
      %27 = vector.broadcast %cst_18 : f32 to vector<256x512xf32>
      %28 = arith.mulf %27, %26 : vector<256x512xf32>
      %29 = arith.mulf %16, %28 : vector<256x512xf32>
      %30 = arith.truncf %29 : vector<256x512xf32> to vector<256x512xbf16>
      %c0_19 = arith.constant 0 : index
      %c0_20 = arith.constant 0 : index
      %31 = vector.load %arg8[%c0_19, %c0_20] : memref<256x512xbf16, #tpu.memory_space<vmem>>, vector<256x512xbf16>
      tpu.vector_store %arg8[%c0_19, %c0_20], %30 {strides = array<i32>} : memref<256x512xbf16, #tpu.memory_space<vmem>>, vector<256x512xbf16>,
    } else {
    }
    %c0 = arith.constant 0 : index
    %c0_1 = arith.constant 0 : index
    %3 = vector.load %arg8[%c0, %c0_1] : memref<256x512xbf16, #tpu.memory_space<vmem>>, vector<256x512xbf16>
    %c0_2 = arith.constant 0 : index
    %c0_3 = arith.constant 0 : index
    %4 = vector.load %arg5[%c0_2, %c0_3] : memref<512x512xbf16, #tpu.memory_space<vmem>>, vector<512x512xbf16>
    %cst = arith.constant dense<0.000000e+00> : vector<256x512xf32>
    %5 = tpu.matmul %3, %4, %cst {dimension_numbers = #tpu.dot_dimension_numbers<[1], [0], [0], [1], [0, 0, 1, 1], [], []>} : vector<256x512xbf16>, vector<512x512xbf16>, vector<256x512xf32> -> vector<256x512xf32>
    %c0_4 = arith.constant 0 : index
    %c0_5 = arith.constant 0 : index
    %6 = vector.load %arg6[%c0_4, %c0_5] : memref<1x512xf32, #tpu.memory_space<vmem>>, vector<1x512xf32>
    %7 = vector.broadcast %6 : vector<1x512xf32> to vector<256x512xf32>
    %8 = arith.addf %5, %7 : vector<256x512xf32>
    %9 = arith.truncf %8 : vector<256x512xf32> to vector<256x512xbf16>
    %c0_6 = arith.constant 0 : index
    %c0_7 = arith.constant 0 : index
    %10 = vector.load %arg7[%c0_6, %c0_7] : memref<256x512xbf16, #tpu.memory_space<vmem>>, vector<256x512xbf16>
    tpu.vector_store %arg7[%c0_6, %c0_7], %9 {strides = array<i32>} : memref<256x512xbf16, #tpu.memory_space<vmem>>, vector<256x512xbf16>,
    return
  }
  func.func @transform_0(%arg0: i32, %arg1: i32) -> (i32, i32) {
    %c0_i32 = arith.constant 0 : i32
    %c0_i32_0 = arith.constant 0 : i32
    return %arg0, %c0_i32 : i32, i32
  }
  func.func @transform_1(%arg0: i32, %arg1: i32) -> (i32, i32) {
    %c0_i32 = arith.constant 0 : i32
    %c0_i32_0 = arith.constant 0 : i32
    %c0_i32_1 = arith.constant 0 : i32
    return %c0_i32, %c0_i32_0 : i32, i32
  }
  func.func @transform_2(%arg0: i32, %arg1: i32) -> (i32, i32) {
    %c0_i32 = arith.constant 0 : i32
    %c0_i32_0 = arith.constant 0 : i32
    %c0_i32_1 = arith.constant 0 : i32
    return %c0_i32, %c0_i32_0 : i32, i32
  }
  func.func @transform_3(%arg0: i32, %arg1: i32) -> (i32, i32) {
    %c0_i32 = arith.constant 0 : i32
    %c0_i32_0 = arith.constant 0 : i32
    return %c0_i32, %arg1 : i32, i32
  }
  func.func @transform_4(%arg0: i32, %arg1: i32) -> (i32, i32) {
    %c0_i32 = arith.constant 0 : i32
    %c0_i32_0 = arith.constant 0 : i32
    return %c0_i32, %arg1 : i32, i32
  }
  func.func @transform_5(%arg0: i32, %arg1: i32) -> (i32, i32) {
    %c0_i32 = arith.constant 0 : i32
    return %arg0, %arg1 : i32, i32
  }
}

</mosaic_0001>

<bundles_post_ra>
// kernel: tpu_custom_call.1
= control target key start
LH: loop header
LB: loop body
LE: loop exit
PB: predicated region body
PF: predicated region fallthrough
CT: control target
= control target key end

     0   :  { %s8918_s0 = inlined_call_operand.hbm [shape: bf16[512,128], index: 0, kind: input, shape index: {}]   ;;  %s8919_s1 = inlined_call_operand.hbm [shape: bf16[128,512], index: 1, kind: input, shape index: {}]   ;;  %s8920_s2 = inlined_call_operand.hbm [shape: f32[1,512], index: 2, kind: input, shape index: {}]   ;;  %s8921_s3 = inlined_call_operand.hbm [shape: bf16[512,1024], index: 3, kind: input, shape index: {}]   ;;  %s8922_s4 = inlined_call_operand.hbm [shape: f32[1,1024], index: 4, kind: input, shape index: {}]   ;;  %s8923_s5 = inlined_call_operand.hbm [shape: bf16[512,1024], index: 5, kind: output, shape index: {}]  }
   0x1   :  { %8953 = sst [smem:[#allocation31_spill]] %s8918_s0 }
   0x2   :  { %8954 = sst [smem:[#allocation32_spill]] %s8919_s1 }
   0x3   :  { %8955 = sst [smem:[#allocation33_spill]] %s8920_s2 }
   0x4   :  { %8956 = sst [smem:[#allocation34_spill]] %s8921_s3 }
   0x5   :  { %8957 = sst [smem:[#allocation35_spill]] %s8923_s5 }
   0x6   :  { %10 = vsyncpa [#allocation4], 0 }
   0x7   :  { %12 = vsyncpa [#allocation4 + $0x1], 0 }
   0x8   :  { %13 = vsyncpa [#allocation7], 0 }
   0x9   :  { %14 = vsyncpa [#allocation10], 0 }
   0xa   :  { %16 = vsyncpa [#allocation10 + $0x1], 0 }
   0xb   :  { %17 = vsyncpa [#allocation5], 0 }
   0xc   :  { %19 = vsyncpa [#allocation5 + $0x1], 0  ;;  %s6875_s18 = smov 0   ;;  %s6877_s19 = smov 0  }
   0xd   :  { %s6879_s20 = smov 0   ;;  %s6881_s21 = smov 0  }
   0xe   :  { %s6883_s22 = smov 0   ;;  %s6885_s23 = smov 0  }
   0xf   :  { %s6887_s24 = smov 0   ;;  %s6889_s25 = smov 0  }
  0x10   :  { %s6891_s26 = smov 0   ;;  %s6893_s27 = smov 0  }
  0x11   :  { %s6895_s28 = smov 0   ;;  %s6897_s29 = smov 0  }
  0x12   :  { %s6899_s30 = smov 0   ;;  %s6901_s6 = smov 0  }
  0x13 LB: > { %8958 = sst [smem:[#allocation17_spill]] %s6776_s18  ;;  %s6942_s7 = sadd.s32 4294967295, %s6828_s6   ;;  %s6828_s6 = sphi %s6901_s6, %s25_s6   ;;  %s6824_s30 = sphi %s6899_s30, %s9032_s30   ;;  %s6820_s29 = sphi %s6897_s29, %s9031_s29   ;;  %s6816_s28 = sphi %s6895_s28, %s9030_s28   ;;  %s6812_s27 = sphi %s6893_s27, %s9029_s27   ;;  %s6808_s26 = sphi %s6891_s26, %s9028_s26   ;;  %s6804_s25 = sphi %s6889_s25, %s9027_s25   ;;  %s6800_s24 = sphi %s6887_s24, %s9026_s24   ;;  %s6796_s23 = sphi %s6885_s23, %s9025_s23   ;;  %s6792_s22 = sphi %s6883_s22, %s9024_s22   ;;  %s6788_s21 = sphi %s6881_s21, %s9018_s21   ;;  %s6784_s20 = sphi %s6879_s20, %s9023_s20   ;;  %s6780_s19 = sphi %s6877_s19, %s9022_s19   ;;  %s6776_s18 = sphi %s6875_s18, %s9017_s18  }
  0x14   : > { %8959 = sst [smem:[#allocation18_spill]] %s6780_s19  ;;  %s5258_s8 = sadd.s32 4294967294, %s6828_s6  }
  0x15   : > { %8960 = sst [smem:[#allocation19_spill]] %s6792_s22  ;;  %p57_p0 = scmp.ne.s32.totalorder %s6804_s25, %s6800_s24 }
  0x16   : > { %8961 = sst [smem:[#allocation20_spill]] %s6812_s27  ;;  %p8934_p1 = scmp.eq.s32.totalorder %s6942_s7, 0 }
  0x17   : > { %8962 = sst [smem:[#allocation21_spill]] %s6816_s28  ;;  %p125_p2 = scmp.ne.s32.totalorder %s6792_s22, %s6788_s21 }
  0x18   : > { %8963 = sst [smem:[#allocation22_spill]] %s6942_s7  ;;  %p176_p3 = scmp.ne.s32.totalorder %s6784_s20, %s6780_s19 }
  0x19   : > { %p6952_p4 = por %p8934_p1, %p57_p0  ;;  %p177_p5 = scmp.eq.s32.totalorder %s6942_s7, 3 }
  0x1a   : > { %p6959_p6 = por %p125_p2, %p8934_p1  ;;  %p182_p7 = scmp.ne.s32.totalorder %s6780_s19, %s6776_s18 }
  0x1b   : > { %s8964_s9 = scalar_select %p6952_p4, 1, 0 }
  0x1c   : > { %s8966_s10 = scalar_select %p6959_p6, 1, 0 }
  0x1d   : > { %8965 = sst [smem:[#allocation23_spill]] %s8964_s9  ;;  %p6965_p8 = por %p177_p5, %p176_p3 }
  0x1e   : > { %8967 = sst [smem:[#allocation24_spill]] %s8966_s10  ;;  %p183_p9 = scmp.eq.s32.totalorder %s5258_s8, 3 }
  0x1f   : > { %s8968_s11 = scalar_select %p6965_p8, 1, 0 }
  0x20   : > { %p5259_p10 = scmp.ge.s32.totalorder %s6828_s6, 1  ;;  %p190_p11 = scmp.lt.s32.totalorder %s6828_s6, 5 }
  0x21   : > { %8969 = sst [smem:[#allocation25_spill]] %s8968_s11  ;;  %p6971_p12 = por %p183_p9, %p182_p7 }
  0x22   : > { %p6975_p13 = pnand %p5259_p10, %p190_p11  ;;  %s6830_s14 = smov [#allocation6]  }
  0x23   : > { %s8970_s12 = scalar_select %p6971_p12, 1, 0 }
  0x24   : > { %s202_s15 = sshll.u32 %s6830_s14, 4  ;;  %p5803_p0 = pneg %p6975_p13  ;;  %s203_s15 = int_to_ptr.vmem [resolvable:$true] %s202_s15 }
  0x25   : > { %8971 = sst [smem:[#allocation26_spill]] %s8970_s12  ;;  %s6551_s17 = scalar_lea.vmem %s203_s15, 4096 }
  0x26   : > { %p6983_p2 = pnand %p5803_p0, %p8934_p1  ;;  %p6552_p5 = scmp.ne.s32.totalorder %s203_s15, %s6551_s17 }
  0x27   : > { %p6559_p10 = scmp.lt.s32.totalorder %s203_s15, %s203_s15  ;;  %p6560_p11 = scmp.lt.s32.totalorder %s6551_s17, %s6551_s17 }
  0x28   : > { %p8937_p3 = pneg %p6983_p2 }
  0x29   : > { %p6561_p12 = por %p6560_p11, %p6559_p10 }
  0x2a   : > { %p6554_p7 = pnand %p6552_p5, %p8937_p3 }
  0x2c   : > { %p6555_p9 = pneg %p6554_p7 }
  0x2e   : > { %p6562_p8 = pnand %p6561_p12, %p6555_p9 }
  0x30   : > { %6565 = shalt.err (!%p6562_p8)
}
  0x31   : > { %s8930_s21 = smov 256   ;;  %s8931_s24 = smov 16  }
  0x32   : > { %s8974_s1 = sld [smem:[#allocation32_spill]]  ;;  %s8932_s17 = sadd.s32 1, %s6820_s29 }
  0x33   : > { %p8936_p8 = scmp.eq.s32.totalorder %s6828_s6, 0  ;;  %p7004_p12 = scmp.ge.s32.totalorder %s8932_s17, 2 }
  0x34   : > { %p119_p0 = scmp.ne.s32.totalorder %s6796_s23, %s6792_s22  ;;  %p8935_p5 = scmp.lt.s32.totalorder %s6828_s6, 4 }
  0x35   : > { %s248_s5 = sand.u32 1, %s6828_s6   ;;  %s8933_s11 = sand.u32 1, %s6796_s23  }
  0x36   : > { %p121_p7 = por %p119_p0, %p8936_p8  ;;  %s5266_s28 = sshll.u32 %s8933_s11, 10 }
  0x37   : > { %s5656_s27 = sshll.u32 %s6820_s29, 8  ;;  %s8976_s3 = sld [smem:[#allocation34_spill]] }
  0x38   : > { %5806 = dma.hbm_to_vmem [thread:$0]  (!%p6983_p2), %s8974_s1, 4096, %s203_s15, [#allocation7], %s8930_s21, %s8930_s21, %s8931_s24  }
  0x39   : > { %s252_s21 = scalar_lea.vmem [#allocation9], %s5266_s28  ;;  %p7024_p9 = pnand %p8935_p5, %p121_p7 }
  0x3a   : > { %s259_s24 = sshll.u32 %s252_s21, 4  ;;  %s7028_s18 = scalar_lea.sflag [#allocation10], %s248_s5  ;;  %s260_s24 = int_to_ptr.vmem [resolvable:$true] %s259_s24 }
  0x3b   : > { %p8940_p10 = pneg %p7024_p9  ;;  %s6579_s11 = scalar_lea.vmem %s260_s24, 16384 }
  0x3c   : > { %p6580_p11 = scmp.ne.s32.totalorder %s260_s24, %s6579_s11 }
  0x3d   : > { %s258_s15 = scalar_lea.hbm %s8976_s3, %s5656_s27  ;;  %s6833_s27 = smov [#allocation9]  }
  0x3e   : > { %p6582_p0 = pnand %p6580_p11, %p8940_p10  ;;  %s6584_s28 = sshll.u32 %s6833_s27, 4  ;;  %s6585_s28 = int_to_ptr.vmem [resolvable:$false] %s6584_s28 }
  0x3f   : > { %s6586_s21 = scalar_lea.vmem %s6585_s28, 32768  ;;  %p6587_p7 = scmp.lt.s32.totalorder %s260_s24, %s6585_s28 }
  0x40   : > { %p6583_p1 = pneg %p6582_p0  ;;  %p6588_p5 = scmp.lt.s32.totalorder %s6586_s21, %s6579_s11 }
  0x42   : > { %p6589_p8 = por %p6588_p5, %p6587_p7 }
  0x44   : > { %p6590_p3 = pnand %p6589_p8, %p6583_p1 }
  0x46   : > { %6593 = shalt.err (!%p6590_p3)
}
  0x47   : > { %s6834_s8 = smov 512   ;;  %s8978_s5 = smov 16  }
  0x48   : > { %s8979_s14 = smov 256   ;;  %s6835_s1 = smov [#allocation8]  }
  0x49   : > { %5816 = dma.hbm_to_vmem [thread:$0]  (!%p7024_p9), %s258_s15, 16384, %s260_s24, %s7028_s18, %s6834_s8, %s8979_s14, %s8978_s5  }
  0x4a   : > { %s216_s3 = sshll.u32 %s6835_s1, 4  ;;  %p8980_p0 = pneg %p6983_p2  ;;  %s217_s3 = int_to_ptr.vmem [resolvable:$true] %s216_s3 }
  0x4b   : > { %s6605_s19 = scalar_lea.vmem %s217_s3, 64  ;;  %p6613_p5 = scmp.lt.s32.totalorder %s217_s3, %s217_s3 }
  0x4c   : > { %p6606_p11 = scmp.ne.s32.totalorder %s217_s3, %s6605_s19  ;;  %p6614_p1 = scmp.lt.s32.totalorder %s6605_s19, %s6605_s19 }
  0x4e   : > { %p6608_p10 = pnand %p6606_p11, %p8980_p0  ;;  %p6615_p3 = por %p6614_p1, %p6613_p5 }
  0x50   : > { %p6609_p6 = pneg %p6608_p10 }
  0x52   : > { %p6616_p8 = pnand %p6615_p3, %p6609_p6 }
  0x54   : > { %6619 = shalt.err (!%p6616_p8)
}
  0x55   : > { %s8981_s2 = sld [smem:[#allocation33_spill]]  ;;  %s8982_s1 = sadd.s32 1, %s6820_s29 }
  0x56   : > { %s9034_s1 = smov (%p7004_p12, %s8982_s1), 0  ;;  %s37_s19 = sadd.s32 1, %s6824_s30 }
  0x57   : > { %8983 = sst [smem:[#allocation27_spill]] %s9034_s1  ;;  %s44_s16 = sadd.s32 1, %s6808_s26 }
  0x58   : > { %s9036_s19 = smov (!%p7004_p12, %s37_s19), %s6824_s30  ;;  %p51_p6 = scmp.ne.s32.totalorder %s6808_s26, %s6804_s25 }
  0x59   : > { %s109_s24 = ssub.s32 %s6820_s29, %s9034_s1  ;;  %p39_p10 = scmp.ge.s32.totalorder %s9036_s19, 2 }
  0x5a   : > { %p110_p7 = scmp.eq.s32.totalorder %s109_s24, 0  ;;  %p8984_p11 = scmp.eq.s32.totalorder %s6828_s6, 0 }
  0x5b   : > { %5809 = dma.hbm_to_vmem [thread:$0]  (!%p6983_p2), %s8981_s2, 64, %s217_s3, [#allocation7]  }
  0x5c   : > { %p7065_p0 = por %p8984_p11, %p51_p6  ;;  %s166_s3 = sadd.s32 1, %s6784_s20 }
  0x5d   : > { %s9038_s19 = smov (%p39_p10, %s9036_s19), 0  ;;  %s8987_s28 = sadd.s32 1, %s6796_s23 }
  0x5e   : > { %8986 = sst [smem:[#allocation28_spill]] %s9038_s19  ;;  %s41_s21 = ssub.s32 %s6824_s30, %s9038_s19 }
  0x5f   : > { %s7075_s12 = scalar_select %p110_p7, %s6796_s23, %s8987_s28  }
  0x60   : > { %s227_s8 = sand.u32 1, %s6808_s26   ;;  %p42_p2 = scmp.eq.s32.totalorder %s41_s21, 0 }
  0x61   : > { %s163_s5 = sor.u32 %s109_s24, %s41_s21  ;;  %s5263_s27 = sshll.u32 %s227_s8, 7 }
  0x62   : > { %p164_p12 = scmp.eq.s32.totalorder %s163_s5, 0  ;;  %s5655_s2 = sshll.u32 %s6824_s30, 11 }
  0x63   : > { %s7081_s14 = scalar_select %p42_p2, %s6808_s26, %s44_s16  }
  0x64   : > { %s7084_s11 = scalar_select %p164_p12, %s6784_s20, %s166_s3  }
  0x65   : > { %s8988_s0 = sld [smem:[#allocation31_spill]]  ;;  %s231_s7 = scalar_lea.vmem [#allocation3], %s5263_s27 }
  0x66   : > { %s238_s9 = sshll.u32 %s231_s7, 4  ;;  %p8989_p5 = scmp.lt.s32.totalorder %s6828_s6, 4  ;;  %s239_s9 = int_to_ptr.vmem [resolvable:$true] %s238_s9 }
  0x67   : > { %s228_s16 = scalar_lea.sflag [#allocation4], %s227_s8  ;;  %s6633_s24 = scalar_lea.vmem %s239_s9, 2048 }
  0x68   : > { %p7094_p1 = pnand %p8989_p5, %p7065_p0  ;;  %p6634_p8 = scmp.ne.s32.totalorder %s239_s9, %s6633_s24 }
  0x69   : > { %s6836_s3 = smov [#allocation3]  }
  0x6a   : > { %p6622_p3 = pneg %p7094_p1  ;;  %s6638_s10 = sshll.u32 %s6836_s3, 4  ;;  %s6639_s10 = int_to_ptr.vmem [resolvable:$false] %s6638_s10 }
  0x6b   : > { %s237_s22 = scalar_lea.hbm %s8988_s0, %s5655_s2  ;;  %s6640_s2 = scalar_lea.vmem %s6639_s10, 4096 }
  0x6c   : > { %p6636_p6 = pnand %p6634_p8, %p6622_p3  ;;  %p6641_p7 = scmp.lt.s32.totalorder %s239_s9, %s6639_s10 }
  0x6d   : > { %p6642_p11 = scmp.lt.s32.totalorder %s6640_s2, %s6633_s24 }
  0x6e   : > { %p6637_p10 = pneg %p6636_p6 }
  0x6f   : > { %p6643_p2 = por %p6642_p11, %p6641_p7 }
  0x71   : > { %p6644_p0 = pnand %p6643_p2, %p6637_p10 }
  0x73   : > { %6647 = shalt.err (!%p6644_p0)
}
  0x74   : > { %s6837_s7 = smov 64   ;;  %s6838_s1 = smov 4  }
  0x75   : > { %5813 = dma.hbm_to_vmem [thread:$0]  (!%p7094_p1), %s237_s22, 2048, %s239_s9, %s228_s16, %s6837_s7, %s6837_s7, %s6838_s1  }
  0x76   : > { %s8991_s15 = sand.u32 1, %s6796_s23   ;;  %s5657_s8 = sshll.u32 %s6820_s29, 6 }
  0x77   : > { %s5269_s21 = sshll.u32 %s8991_s15, 2  ;;  %s279_s3 = scalar_lea.hbm %s8922_s4, %s5657_s8 }
  0x78   : > { %s273_s10 = scalar_lea.vmem [#allocation11], %s5269_s21  ;;  %p8992_p5 = pneg %p7024_p9 }
  0x79   : > { %s281_s24 = sshll.u32 %s273_s10, 4  ;;  %s6839_s0 = smov [#allocation11]   ;;  %s282_s24 = int_to_ptr.vmem [resolvable:$true] %s281_s24 }
  0x7a   : > { %s6661_s2 = scalar_lea.vmem %s282_s24, 64  ;;  %s6666_s19 = sshll.u32 %s6839_s0, 4  ;;  %s6667_s19 = int_to_ptr.vmem [resolvable:$false] %s6666_s19 }
  0x7b   : > { %p6662_p12 = scmp.ne.s32.totalorder %s282_s24, %s6661_s2  ;;  %s6668_s22 = scalar_lea.vmem %s6667_s19, 128 }
  0x7c   : > { %p6669_p1 = scmp.lt.s32.totalorder %s282_s24, %s6667_s19  ;;  %p6670_p6 = scmp.lt.s32.totalorder %s6668_s22, %s6661_s2 }
  0x7d   : > { %p6664_p3 = pnand %p6662_p12, %p8992_p5 }
  0x7e   : > { %p6671_p10 = por %p6670_p6, %p6669_p1 }
  0x7f   : > { %p6665_p8 = pneg %p6664_p3 }
  0x81   : > { %p6672_p7 = pnand %p6671_p10, %p6665_p8 }
  0x83   : > { %6675 = shalt.err (!%p6672_p7)
}
  0x84   : > { %5819 = dma.hbm_to_vmem [thread:$0]  (!%p7024_p9), %s279_s3, 64, %s282_s24, %s7028_s18  }
  0x85   : > { %290 = sbr.rel (%p6975_p13) target bundleno = 1292 (0x50c), region = 40 }
  0x8a   : > { %s292_s28 = sand.u32 1, %s6804_s25  }
  0x8b   : > { %s5273_s16 = sshll.u32 %s292_s28, 7  ;;  %s293_s7 = scalar_lea.sflag [#allocation4], %s292_s28 }
  0x8c   : > { %s7117_s0 = scalar_lea.vmem [#allocation3], %s5273_s16 }
  0x8d   : > { %6759 = dma.done.wait (%p6952_p4), %s293_s7, 2048  }
  0x8e   : > { %6761 = vsyncadd (%p6952_p4), %s293_s7, 4294965248  ;;  %s8994_s19 = sld [smem:[#allocation22_spill]] }
  0x94   : > { %p8995_p11 = scmp.eq.s32.totalorder %s8994_s19, 0 }
  0x96   : > { %6763 = dma.done.wait (%p8995_p11), [#allocation7], 4160   ;;  %p8996_p9 = pmov %p8995_p11 }
  0x97   : > { %s8997_s18 = sld [smem:[#allocation19_spill]]  ;;  %s309_s17 = sand.u32 1, %s8994_s19  }
  0x98   : > { %6765 = vsyncadd (%p8996_p9), [#allocation7], 4294963136  ;;  %s8998_s13 = sld [smem:[#allocation24_spill]]  ;;  %s310_s21 = scalar_lea.sflag [#allocation10], %s309_s17 }
  0x9d   : > { %s311_s1 = sand.u32 1, %s8997_s18  }
  0x9e   : > { %s5276_s15 = sshll.u32 %s311_s1, 10  ;;  %p8999_p13 = scmp.ne.s32.totalorder %s8998_s13, 0 }
  0x9f   : > { %s7129_s8 = scalar_lea.vmem [#allocation9], %s5276_s15 }
  0xa0   : > { %6767 = dma.done.wait (%p8999_p13), %s310_s21, 16448  }
  0xa1   : > { %6769 = vsyncadd (%p8999_p13), %s310_s21, 4294950848  ;;  %s9000_s5 = sld [smem:[#allocation18_spill]]  ;;  %s7135_s27 = sshll.u32 %s311_s1, 2 }
  0xa2   : > { %s322_s24 = scalar_lea.vmem [#allocation11], %s7135_s27  ;;  %s9001_s22 = sld [smem:[#allocation20_spill]] }
  0xa7   : > { %s356_s3 = sand.u32 1, %s9000_s5  }
  0xa8   : > { %s5278_s10 = sshll.u32 %s356_s3, 9  ;;  %p5279_p4 = scmp.ne.s32.totalorder %s9001_s22, 0 }
  0xa9   : > { %s7141_s2 = scalar_lea.vmem [#allocation12], %s5278_s10 }
  0xaa   : > { %368 = sbr.rel (%p5279_p4) target bundleno = 759 (0x2f7), region = 64 }
  0xaf   : > { %v5953_v0 = vld [vmem:[#allocation6 + $0xe4] ss:$16 sps:$4 sm:$0xff]   ;;  %v5955_v1 = vld [vmem:[#allocation6 + $0xec] ss:$16 sps:$4 sm:$0xff]   ;;  %v6840_v2 = vmov 0   ;;  %v435_v49 = vlaneseq }
  0xb0   : > { %743 = vmatprep.mubr.bf16.mxu0 %v6840_v2  ;;  %936 = vmatprep.mubr.bf16.mxu1 %v6840_v2  ;;  %v5957_v3 = vld [vmem:[#allocation6 + $0xe0] ss:$16 sps:$4 sm:$0xff]   ;;  %v5958_v4 = vld [vmem:[#allocation6 + $0xe8] ss:$16 sps:$4 sm:$0xff]   ;;  %v5959_v5 = vld [vmem:[#allocation6 + $0xc4] ss:$16 sps:$4 sm:$0xff]  }
  0xb1   : > { %711 = vmatprep.subr.bf16.mxu0 %v5953_v0  ;;  %904 = vmatprep.subr.bf16.mxu1 %v5955_v1  ;;  %v5961_v6 = vld [vmem:[#allocation6 + $0xcc] ss:$16 sps:$4 sm:$0xff]   ;;  %v5963_v7 = vld [vmem:[#allocation6 + $0xc0] ss:$16 sps:$4 sm:$0xff]   ;;  %v5964_v8 = vld [vmem:[#allocation6 + $0xc8] ss:$16 sps:$4 sm:$0xff]  }
  0xb2   : > { %712 = vmatpush1.bf16.msra.mxu0 %v5957_v3  ;;  %905 = vmatpush1.bf16.msra.mxu1 %v5958_v4  ;;  %v5965_v9 = vld [vmem:[#allocation6 + $0xa4] ss:$16 sps:$4 sm:$0xff]   ;;  %v5967_v10 = vld [vmem:[#allocation6 + $0xac] ss:$16 sps:$4 sm:$0xff]   ;;  %v5969_v11 = vld [vmem:[#allocation6 + $0xa0] ss:$16 sps:$4 sm:$0xff]  }
  0xb3   : > { %713 = vmatprep.subr.bf16.mxu0 %v5959_v5  ;;  %906 = vmatprep.subr.bf16.mxu1 %v5961_v6  ;;  %v5970_v12 = vld [vmem:[#allocation6 + $0xa8] ss:$16 sps:$4 sm:$0xff]   ;;  %v5971_v13 = vld [vmem:[#allocation6 + $0x84] ss:$16 sps:$4 sm:$0xff]   ;;  %v5973_v14 = vld [vmem:[#allocation6 + $0x8c] ss:$16 sps:$4 sm:$0xff]  }
  0xb4   : > { %v5975_v15 = vld [vmem:[#allocation6 + $0x80] ss:$16 sps:$4 sm:$0xff]   ;;  %v5976_v16 = vld [vmem:[#allocation6 + $0x88] ss:$16 sps:$4 sm:$0xff]   ;;  %v5977_v17 = vld [vmem:[#allocation6 + $0x64] ss:$16 sps:$4 sm:$0xff]  }
  0xb5   : > { %v5979_v18 = vld [vmem:[#allocation6 + $0x6c] ss:$16 sps:$4 sm:$0xff]   ;;  %v5981_v19 = vld [vmem:[#allocation6 + $0x60] ss:$16 sps:$4 sm:$0xff]   ;;  %v5982_v20 = vld [vmem:[#allocation6 + $0x68] ss:$16 sps:$4 sm:$0xff]  }
  0xb6   : > { %714 = vmatpush1.bf16.msra.mxu0 %v5963_v7  ;;  %907 = vmatpush1.bf16.msra.mxu1 %v5964_v8  ;;  %v5983_v21 = vld [vmem:[#allocation6 + $0x44] ss:$16 sps:$4 sm:$0xff]   ;;  %v5985_v22 = vld [vmem:[#allocation6 + $0x4c] ss:$16 sps:$4 sm:$0xff]   ;;  %v5987_v23 = vld [vmem:[#allocation6 + $0x40] ss:$16 sps:$4 sm:$0xff]  }
  0xb7   : > { %715 = vmatprep.subr.bf16.mxu0 %v5965_v9  ;;  %908 = vmatprep.subr.bf16.mxu1 %v5967_v10  ;;  %v5988_v24 = vld [vmem:[#allocation6 + $0x48] ss:$16 sps:$4 sm:$0xff]   ;;  %v5989_v25 = vld [vmem:[#allocation6 + $0x24] ss:$16 sps:$4 sm:$0xff]   ;;  %v5991_v26 = vld [vmem:[#allocation6 + $0x2c] ss:$16 sps:$4 sm:$0xff]  }
  0xb8   : > { %v5993_v27 = vld [vmem:[#allocation6 + $0x20] ss:$16 sps:$4 sm:$0xff]   ;;  %v5994_v28 = vld [vmem:[#allocation6 + $0x28] ss:$16 sps:$4 sm:$0xff]   ;;  %v5995_v29 = vld [vmem:[#allocation6 + $0x4] ss:$16 sps:$4 sm:$0xff]  }
  0xb9   : > { %v5997_v30 = vld [vmem:[#allocation6 + $0xc] ss:$16 sps:$4 sm:$0xff]   ;;  %v5999_v31 = vld [vmem:[#allocation6] ss:$16 sps:$4 sm:$0xff]   ;;  %v6000_v32 = vld [vmem:[#allocation6 + $0x8] ss:$16 sps:$4 sm:$0xff]  }
  0xba   : > { %716 = vmatpush1.bf16.msra.mxu0 %v5969_v11  ;;  %909 = vmatpush1.bf16.msra.mxu1 %v5970_v12  ;;  %v6001_v33 = vld [vmem:[%s7117_s0] sm:$0xff]   ;;  %v6002_v34 = vld [vmem:[%s7117_s0 + $0x8] sm:$0xff]   ;;  %v6003_v35 = vld [vmem:[%s7117_s0 + $0x10] sm:$0xff]   ;;  %v436_v50 = vshrl.u32 %v435_v49, 7 }
  0xbb   : > { %717 = vmatprep.subr.bf16.mxu0 %v5971_v13  ;;  %910 = vmatprep.subr.bf16.mxu1 %v5973_v14  ;;  %v6004_v36 = vld [vmem:[%s7117_s0 + $0x18] sm:$0xff]   ;;  %v6005_v37 = vld [vmem:[%s7117_s0 + $0x20] sm:$0xff]   ;;  %v6006_v38 = vld [vmem:[%s7117_s0 + $0x28] sm:$0xff]  }
  0xbc   : > { %v6007_v39 = vld [vmem:[%s7117_s0 + $0x30] sm:$0xff]   ;;  %v6008_v40 = vld [vmem:[%s7117_s0 + $0x38] sm:$0xff]   ;;  %v6009_v41 = vld [vmem:[%s7117_s0 + $0x40] sm:$0xff]   ;;  %v437_v51 = vsub.s32 0, %v436_v50  ;;  %v445_v52 = vsub.s32 2, %v436_v50  ;;  %v441_v54 = vsub.s32 1, %v436_v50 }
  0xbd   : > { %v6010_v42 = vld [vmem:[%s7117_s0 + $0x48] sm:$0xff]   ;;  %v6011_v43 = vld [vmem:[%s7117_s0 + $0x50] sm:$0xff]   ;;  %v6012_v44 = vld [vmem:[%s7117_s0 + $0x58] sm:$0xff]   ;;  %v449_v55 = vsub.s32 3, %v436_v50 }
  0xbe   : > { %718 = vmatpush1.bf16.msra.mxu0 %v5975_v15  ;;  %911 = vmatpush1.bf16.msra.mxu1 %v5976_v16  ;;  %v6013_v45 = vld [vmem:[%s7117_s0 + $0x60] sm:$0xff]   ;;  %v6014_v46 = vld [vmem:[%s7117_s0 + $0x68] sm:$0xff]   ;;  %v6015_v47 = vld [vmem:[%s7117_s0 + $0x70] sm:$0xff]  }
  0xbf   : > { %719 = vmatprep.subr.bf16.mxu0 %v5977_v17  ;;  %912 = vmatprep.subr.bf16.mxu1 %v5979_v18  ;;  %v6016_v48 = vld [vmem:[%s7117_s0 + $0x78] sm:$0xff]   ;;  %v433_v53 = vld [vmem:[#allocation8] sm:$0xf] }
  0xc0   : > { %v7192_v56 = vrot.slane %v433_v53, %v437_v51  ;;  %v7194_v57 = vrot.slane %v433_v53, %v445_v52  ;;  %v7196_v58 = vrot.slane %v433_v53, %v441_v54  ;;  %v7198_v59 = vrot.slane %v433_v53, %v449_v55 }
  0xc2   : > { %720 = vmatpush1.bf16.msra.mxu0 %v5981_v19  ;;  %913 = vmatpush1.bf16.msra.mxu1 %v5982_v20 }
  0xc3   : > { %721 = vmatprep.subr.bf16.mxu0 %v5983_v21  ;;  %914 = vmatprep.subr.bf16.mxu1 %v5985_v22 }
  0xc6   : > { %722 = vmatpush1.bf16.msra.mxu0 %v5987_v23  ;;  %915 = vmatpush1.bf16.msra.mxu1 %v5988_v24 }
  0xc7   : > { %723 = vmatprep.subr.bf16.mxu0 %v5989_v25  ;;  %916 = vmatprep.subr.bf16.mxu1 %v5991_v26 }
  0xca   : > { %724 = vmatpush1.bf16.msra.mxu0 %v5993_v27  ;;  %917 = vmatpush1.bf16.msra.mxu1 %v5994_v28 }
  0xcb   : > { %725 = vmatprep.subr.bf16.mxu0 %v5995_v29  ;;  %918 = vmatprep.subr.bf16.mxu1 %v5997_v30 }
  0xce   : > { %726 = vmatpush1.bf16.msra.mxu0 %v5999_v31  ;;  %919 = vmatpush1.bf16.msra.mxu1 %v6000_v32 }
  0xd1   : > { %744 = vmatmul.mubr.bf16.vlgmr.msra.gmra.mxu0 %v6001_v33  ;;  %937 = vmatmul.mubr.bf16.vlgmr.msra.gmra.mxu1 %v6001_v33 }
  0xd2   : > { %753 = vmatprep.mubr.bf16.mxu0 %v6840_v2  ;;  %946 = vmatprep.mubr.bf16.mxu1 %v6840_v2 }
  0xd9   : > { %754 = vmatmul.mubr.bf16.gmra.mxu0 %v6002_v34  ;;  %947 = vmatmul.mubr.bf16.gmra.mxu1 %v6002_v34 }
  0xda   : > { %763 = vmatprep.mubr.bf16.mxu0 %v6840_v2  ;;  %956 = vmatprep.mubr.bf16.mxu1 %v6840_v2 }
  0xe1   : > { %764 = vmatmul.mubr.bf16.gmra.mxu0 %v6003_v35  ;;  %957 = vmatmul.mubr.bf16.gmra.mxu1 %v6003_v35 }
  0xe2   : > { %773 = vmatprep.mubr.bf16.mxu0 %v6840_v2  ;;  %966 = vmatprep.mubr.bf16.mxu1 %v6840_v2 }
  0xe9   : > { %774 = vmatmul.mubr.bf16.gmra.mxu0 %v6004_v36  ;;  %967 = vmatmul.mubr.bf16.gmra.mxu1 %v6004_v36 }
  0xea   : > { %783 = vmatprep.mubr.bf16.mxu0 %v6840_v2  ;;  %976 = vmatprep.mubr.bf16.mxu1 %v6840_v2 }
  0xf1   : > { %784 = vmatmul.mubr.bf16.gmra.mxu0 %v6005_v37  ;;  %977 = vmatmul.mubr.bf16.gmra.mxu1 %v6005_v37 }
  0xf2   : > { %793 = vmatprep.mubr.bf16.mxu0 %v6840_v2  ;;  %986 = vmatprep.mubr.bf16.mxu1 %v6840_v2 }
  0xf9   : > { %794 = vmatmul.mubr.bf16.gmra.mxu0 %v6006_v38  ;;  %987 = vmatmul.mubr.bf16.gmra.mxu1 %v6006_v38 }
  0xfa   : > { %803 = vmatprep.mubr.bf16.mxu0 %v6840_v2  ;;  %996 = vmatprep.mubr.bf16.mxu1 %v6840_v2 }
 0x101   : > { %804 = vmatmul.mubr.bf16.gmra.mxu0 %v6007_v39  ;;  %997 = vmatmul.mubr.bf16.gmra.mxu1 %v6007_v39 }
 0x102   : > { %813 = vmatprep.mubr.bf16.mxu0 %v6840_v2  ;;  %1006 = vmatprep.mubr.bf16.mxu1 %v6840_v2 }
 0x109   : > { %814 = vmatmul.mubr.bf16.gmra.mxu0 %v6008_v40  ;;  %1007 = vmatmul.mubr.bf16.gmra.mxu1 %v6008_v40 }
 0x10a   : > { %823 = vmatprep.mubr.bf16.mxu0 %v6840_v2  ;;  %1016 = vmatprep.mubr.bf16.mxu1 %v6840_v2 }
 0x111   : > { %824 = vmatmul.mubr.bf16.gmra.mxu0 %v6009_v41  ;;  %1017 = vmatmul.mubr.bf16.gmra.mxu1 %v6009_v41 }
 0x112   : > { %833 = vmatprep.mubr.bf16.mxu0 %v6840_v2  ;;  %1026 = vmatprep.mubr.bf16.mxu1 %v6840_v2 }
 0x119   : > { %834 = vmatmul.mubr.bf16.gmra.mxu0 %v6010_v42  ;;  %1027 = vmatmul.mubr.bf16.gmra.mxu1 %v6010_v42 }
 0x11a   : > { %843 = vmatprep.mubr.bf16.mxu0 %v6840_v2  ;;  %1036 = vmatprep.mubr.bf16.mxu1 %v6840_v2 }
 0x121   : > { %844 = vmatmul.mubr.bf16.gmra.mxu0 %v6011_v43  ;;  %1037 = vmatmul.mubr.bf16.gmra.mxu1 %v6011_v43 }
 0x122   : > { %853 = vmatprep.mubr.bf16.mxu0 %v6840_v2  ;;  %1046 = vmatprep.mubr.bf16.mxu1 %v6840_v2 }
 0x129   : > { %854 = vmatmul.mubr.bf16.gmra.mxu0 %v6012_v44  ;;  %1047 = vmatmul.mubr.bf16.gmra.mxu1 %v6012_v44 }
 0x12a   : > { %863 = vmatprep.mubr.bf16.mxu0 %v6840_v2  ;;  %1056 = vmatprep.mubr.bf16.mxu1 %v6840_v2 }
 0x131   : > { %864 = vmatmul.mubr.bf16.gmra.mxu0 %v6013_v45  ;;  %1057 = vmatmul.mubr.bf16.gmra.mxu1 %v6013_v45 }
 0x132   : > { %873 = vmatprep.mubr.bf16.mxu0 %v6840_v2  ;;  %1066 = vmatprep.mubr.bf16.mxu1 %v6840_v2 }
 0x139   : > { %874 = vmatmul.mubr.bf16.gmra.mxu0 %v6014_v46  ;;  %1067 = vmatmul.mubr.bf16.gmra.mxu1 %v6014_v46 }
 0x13a   : > { %883 = vmatprep.mubr.bf16.mxu0 %v6840_v2  ;;  %1076 = vmatprep.mubr.bf16.mxu1 %v6840_v2 }
 0x141   : > { %884 = vmatmul.mubr.bf16.gmra.mxu0 %v6015_v47  ;;  %1077 = vmatmul.mubr.bf16.gmra.mxu1 %v6015_v47 }
 0x142   : > { %893 = vmatprep.mubr.bf16.mxu0 %v6840_v2  ;;  %1086 = vmatprep.mubr.bf16.mxu1 %v6840_v2 }
 0x149   : > { %894 = vmatmul.mubr.bf16.gmra.mxu0 %v6016_v48  ;;  %1087 = vmatmul.mubr.bf16.gmra.mxu1 %v6016_v48 }
 0x191   : > { %v745_v60 = vpop.f32.mrf.mxu0  ;;  %v938_v61 = vpop.f32.mrf.mxu1 }
 0x192   : > { %v7201_v62 = vadd.f32 %v745_v60, %v7192_v56  ;;  %v7204_v63 = vadd.f32 %v938_v61, %v7194_v57 }
 0x193   : > { %v747_v0 = vpop.f32.mrf.mxu0  ;;  %v940_v1 = vpop.f32.mrf.mxu1 }
 0x194   : > { %v1097_v2 = vmul.f32 %v7201_v62, %v7201_v62  ;;  %v1099_v3 = vmul.f32 %v7204_v63, %v7204_v63  ;;  %v7211_v4 = vadd.f32 %v747_v0, %v7196_v58  ;;  %v7214_v5 = vadd.f32 %v940_v1, %v7198_v59 }
 0x195   : > { %v749_v6 = vpop.f32.mrf.mxu0  ;;  %v942_v7 = vpop.f32.mrf.mxu1 }
 0x196   : > { %v1225_v8 = vmul.f32 %v1097_v2, %v7201_v62  ;;  %v1227_v9 = vmul.f32 %v1099_v3, %v7204_v63  ;;  %v1098_v10 = vmul.f32 %v7211_v4, %v7211_v4  ;;  %v1100_v11 = vmul.f32 %v7214_v5, %v7214_v5 }
 0x197   : > { %v7223_v12 = vadd.f32 %v749_v6, %v7192_v56  ;;  %v7226_v13 = vadd.f32 %v942_v7, %v7194_v57  ;;  %v751_v14 = vpop.f32.mrf.mxu0  ;;  %v944_v15 = vpop.f32.mrf.mxu1 }
 0x198   : > { %v1353_v16 = vmul.f32 0.044715, %v1225_v8  ;;  %v1355_v17 = vmul.f32 0.044715, %v1227_v9  ;;  %v1226_v18 = vmul.f32 %v1098_v10, %v7211_v4  ;;  %v1228_v19 = vmul.f32 %v1100_v11, %v7214_v5 }
 0x199   : > { %v1101_v20 = vmul.f32 %v7223_v12, %v7223_v12  ;;  %v1103_v21 = vmul.f32 %v7226_v13, %v7226_v13  ;;  %v7235_v22 = vadd.f32 %v751_v14, %v7196_v58  ;;  %v7238_v23 = vadd.f32 %v944_v15, %v7198_v59  ;;  %v755_v24 = vpop.f32.mrf.mxu0  ;;  %v948_v25 = vpop.f32.mrf.mxu1 }
 0x19a   : > { %v1481_v26 = vadd.f32 %v1353_v16, %v7201_v62  ;;  %v1483_v27 = vadd.f32 %v1355_v17, %v7204_v63  ;;  %v1354_v28 = vmul.f32 0.044715, %v1226_v18  ;;  %v1356_v29 = vmul.f32 0.044715, %v1228_v19 }
 0x19b   : > { %v1229_v30 = vmul.f32 %v1101_v20, %v7223_v12  ;;  %v1231_v31 = vmul.f32 %v1103_v21, %v7226_v13  ;;  %v1102_v32 = vmul.f32 %v7235_v22, %v7235_v22  ;;  %v1104_v33 = vmul.f32 %v7238_v23, %v7238_v23  ;;  %v757_v38 = vpop.f32.mrf.mxu0  ;;  %v950_v43 = vpop.f32.mrf.mxu1 }
 0x19c   : > { %v1609_v34 = vmul.f32 0.7978846, %v1481_v26  ;;  %v1611_v35 = vmul.f32 0.7978846, %v1483_v27  ;;  %v1482_v36 = vadd.f32 %v1354_v28, %v7211_v4  ;;  %v1484_v37 = vadd.f32 %v1356_v29, %v7214_v5 }
 0x19d   : > { %v1357_v39 = vmul.f32 0.044715, %v1229_v30  ;;  %v1359_v40 = vmul.f32 0.044715, %v1231_v31  ;;  %v1230_v41 = vmul.f32 %v1102_v32, %v7235_v22  ;;  %v1232_v42 = vmul.f32 %v1104_v33, %v7238_v23  ;;  %v759_v53 = vpop.f32.mrf.mxu0  ;;  %v952_v61 = vpop.f32.mrf.mxu1 }
 0x19e   : > { %6017 = vtanh.f32 %v1609_v34  ;;  %v1610_v44 = vmul.f32 0.7978846, %v1482_v36  ;;  %v1612_v45 = vmul.f32 0.7978846, %v1484_v37  ;;  %v7253_v46 = vadd.f32 %v755_v24, %v7192_v56 }
 0x19f   : > { %6019 = vtanh.f32 %v1611_v35  ;;  %v1485_v47 = vadd.f32 %v1357_v39, %v7223_v12  ;;  %v1487_v48 = vadd.f32 %v1359_v40, %v7226_v13  ;;  %v1358_v49 = vmul.f32 0.044715, %v1230_v41  ;;  %v761_v14 = vpop.f32.mrf.mxu0  ;;  %v954_v18 = vpop.f32.mrf.mxu1 }
 0x1a0   : > { %6021 = vtanh.f32 %v1610_v44  ;;  %v1360_v50 = vmul.f32 0.044715, %v1232_v42  ;;  %v1105_v51 = vmul.f32 %v7253_v46, %v7253_v46  ;;  %v7260_v52 = vadd.f32 %v948_v25, %v7194_v57 }
 0x1a1   : > { %6023 = vtanh.f32 %v1612_v45  ;;  %v1613_v54 = vmul.f32 0.7978846, %v1485_v47  ;;  %v1615_v55 = vmul.f32 0.7978846, %v1487_v48  ;;  %v1486_v60 = vadd.f32 %v1358_v49, %v7235_v22  ;;  %v765_v39 = vpop.f32.mrf.mxu0 }
 0x1a2   : > { %v1488_v0 = vadd.f32 %v1360_v50, %v7238_v23  ;;  %v1233_v1 = vmul.f32 %v1105_v51, %v7253_v46  ;;  %v1107_v2 = vmul.f32 %v7260_v52, %v7260_v52  ;;  %v7268_v3 = vadd.f32 %v757_v38, %v7196_v58 }
 0x1a3   : > { %6025 = vtanh.f32 %v1613_v54  ;;  %v1614_v6 = vmul.f32 0.7978846, %v1486_v60  ;;  %v7271_v7 = vadd.f32 %v950_v43, %v7198_v59  ;;  %v7274_v8 = vadd.f32 %v759_v53, %v7192_v56 }
 0x1a4   : > { %6027 = vtanh.f32 %v1615_v55  ;;  %v1616_v9 = vmul.f32 0.7978846, %v1488_v0  ;;  %v1361_v10 = vmul.f32 0.044715, %v1233_v1  ;;  %v1235_v11 = vmul.f32 %v1107_v2, %v7260_v52 }
 0x1a5   : > { %6029 = vtanh.f32 %v1614_v6  ;;  %v1106_v15 = vmul.f32 %v7268_v3, %v7268_v3  ;;  %v1108_v16 = vmul.f32 %v7271_v7, %v7271_v7  ;;  %v1109_v17 = vmul.f32 %v7274_v8, %v7274_v8 }
 0x1a6   : > { %6031 = vtanh.f32 %v1616_v9  ;;  %v1489_v19 = vadd.f32 %v1361_v10, %v7253_v46  ;;  %v1363_v20 = vmul.f32 0.044715, %v1235_v11  ;;  %v7285_v21 = vadd.f32 %v952_v61, %v7194_v57 }
 0x1a7   : > { %v1234_v24 = vmul.f32 %v1106_v15, %v7268_v3  ;;  %v1236_v25 = vmul.f32 %v1108_v16, %v7271_v7  ;;  %v1237_v26 = vmul.f32 %v1109_v17, %v7274_v8  ;;  %v7291_v27 = vadd.f32 %v761_v14, %v7196_v58 }
 0x1a8   : > { %v1617_v28 = vmul.f32 0.7978846, %v1489_v19  ;;  %v1491_v29 = vadd.f32 %v1363_v20, %v7260_v52  ;;  %v1111_v30 = vmul.f32 %v7285_v21, %v7285_v21  ;;  %v7297_v31 = vadd.f32 %v954_v18, %v7198_v59 }
 0x1a9   : > { %v1362_v32 = vmul.f32 0.044715, %v1234_v24  ;;  %v1364_v33 = vmul.f32 0.044715, %v1236_v25  ;;  %v1365_v34 = vmul.f32 0.044715, %v1237_v26  ;;  %v1110_v35 = vmul.f32 %v7291_v27, %v7291_v27  ;;  %v958_v24 = vpop.f32.mrf.mxu1 }
 0x1aa   : > { %6033 = vtanh.f32 %v1617_v28  ;;  %v1619_v36 = vmul.f32 0.7978846, %v1491_v29  ;;  %v1239_v37 = vmul.f32 %v1111_v30, %v7285_v21  ;;  %v1112_v38 = vmul.f32 %v7297_v31, %v7297_v31 }
 0x1ab   : > { %v6018_v40 = vpop.eup %6017  ;;  %v1490_v41 = vadd.f32 %v1362_v32, %v7268_v3  ;;  %v1492_v42 = vadd.f32 %v1364_v33, %v7271_v7  ;;  %v1493_v43 = vadd.f32 %v1365_v34, %v7274_v8  ;;  %v1238_v44 = vmul.f32 %v1110_v35, %v7291_v27 }
 0x1ac   : > { %v6020_v45 = vpop.eup %6019  ;;  %v1865_v47 = vadd.f32 1.0, %v6018_v40  ;;  %6035 = vtanh.f32 %v1619_v36  ;;  %v1367_v48 = vmul.f32 0.044715, %v1239_v37  ;;  %v1240_v49 = vmul.f32 %v1112_v38, %v7297_v31  ;;  %v767_v38 = vpop.f32.mrf.mxu0 }
 0x1ad   : > { %v6022_v50 = vpop.eup %6021  ;;  %v1867_v51 = vadd.f32 1.0, %v6020_v45  ;;  %v1618_v53 = vmul.f32 0.7978846, %v1490_v41  ;;  %v1620_v54 = vmul.f32 0.7978846, %v1492_v42  ;;  %v7310_v55 = vadd.f32 %v765_v39, %v7192_v56  ;;  %v960_v42 = vpop.f32.mrf.mxu1 }
 0x1ae   : > { %v6024_v60 = vpop.eup %6023  ;;  %v1993_v61 = vmul.f32 0.5, %v1865_v47  ;;  %v1866_v0 = vadd.f32 1.0, %v6022_v50  ;;  %v1621_v1 = vmul.f32 0.7978846, %v1493_v43  ;;  %v1495_v2 = vadd.f32 %v1367_v48, %v7285_v21 }
 0x1af   : > { %v1995_v6 = vmul.f32 0.5, %v1867_v51  ;;  %v1868_v9 = vadd.f32 1.0, %v6024_v60  ;;  %6037 = vtanh.f32 %v1618_v53  ;;  %v1366_v10 = vmul.f32 0.044715, %v1238_v44 }
 0x1b0   : > { %v6026_v11 = vpop.eup %6025  ;;  %v2121_v14 = vmul.f32 %v1993_v61, %v7201_v62  ;;  %v1994_v15 = vmul.f32 0.5, %v1866_v0  ;;  %6039 = vtanh.f32 %v1620_v54  ;;  %v1623_v16 = vmul.f32 0.7978846, %v1495_v2  ;;  %v769_v54 = vpop.f32.mrf.mxu0 }
 0x1b1   : > { %v6028_v17 = vpop.eup %6027  ;;  %v2123_v18 = vmul.f32 %v1995_v6, %v7204_v63  ;;  %v1996_v19 = vmul.f32 0.5, %v1868_v9  ;;  %v1869_v20 = vadd.f32 1.0, %v6026_v11  ;;  %6041 = vtanh.f32 %v1621_v1  ;;  %v962_v1 = vpop.f32.mrf.mxu1 }
 0x1b2   : > { %v6030_v25 = vpop.eup %6029  ;;  %v2122_v26 = vmul.f32 %v1994_v15, %v7211_v4  ;;  %v1871_v28 = vadd.f32 1.0, %v6028_v17  ;;  %6043 = vtanh.f32 %v1623_v16  ;;  %v1494_v29 = vadd.f32 %v1366_v10, %v7291_v27 }
 0x1b3   : > { %v6032_v30 = vpop.eup %6031  ;;  %v2124_v62 = vmul.f32 %v1996_v19, %v7214_v5  ;;  %v1997_v32 = vmul.f32 0.5, %v1869_v20  ;;  %v1870_v33 = vadd.f32 1.0, %v6030_v25  ;;  %v1368_v34 = vmul.f32 0.044715, %v1240_v49 }
 0x1b4   : > { %v5658_v35 = vpack.c.bf16 %v2122_v26, %v2121_v14  ;;  %v1999_v36 = vmul.f32 0.5, %v1871_v28  ;;  %v1872_v63 = vadd.f32 1.0, %v6032_v30  ;;  %v1622_v37 = vmul.f32 0.7978846, %v1494_v29 }
 0x1b5   : > { %v5659_v39 = vpack.c.bf16 %v2124_v62, %v2123_v18  ;;  %v2125_v40 = vmul.f32 %v1997_v32, %v7223_v12  ;;  %v1998_v41 = vmul.f32 0.5, %v1870_v33  ;;  %v1496_v4 = vadd.f32 %v1368_v34, %v7297_v31 }
 0x1b6   : > { %2633 = vst [vmem:[#allocation2 + $0xb0] sm:$0xff] %v5658_v35  ;;  %v2127_v43 = vmul.f32 %v1999_v36, %v7226_v13  ;;  %v2000_v44 = vmul.f32 0.5, %v1872_v63  ;;  %6045 = vtanh.f32 %v1622_v37  ;;  %v1113_v5 = vmul.f32 %v7310_v55, %v7310_v55 }
 0x1b7   : > { %v6034_v45 = vpop.eup %6033  ;;  %2634 = vst [vmem:[#allocation2 + $0x1b0] sm:$0xff] %v5659_v39  ;;  %v2126_v47 = vmul.f32 %v1998_v41, %v7235_v22  ;;  %v1624_v48 = vmul.f32 0.7978846, %v1496_v4  ;;  %v7325_v49 = vadd.f32 %v958_v24, %v7194_v57  ;;  %v7328_v12 = vadd.f32 %v767_v38, %v7196_v58  ;;  %v771_v38 = vpop.f32.mrf.mxu0 }
 0x1b8   : > { %v2128_v50 = vmul.f32 %v2000_v44, %v7238_v23  ;;  %v1873_v51 = vadd.f32 1.0, %v6034_v45  ;;  %v1241_v13 = vmul.f32 %v1113_v5, %v7310_v55  ;;  %v7333_v53 = vadd.f32 %v960_v42, %v7198_v59  ;;  %v964_v39 = vpop.f32.mrf.mxu1 }
 0x1b9   : > { %v6036_v60 = vpop.eup %6035  ;;  %v5660_v61 = vpack.c.bf16 %v2126_v47, %v2125_v40  ;;  %6047 = vtanh.f32 %v1624_v48  ;;  %v1115_v22 = vmul.f32 %v7325_v49, %v7325_v49  ;;  %v1114_v0 = vmul.f32 %v7328_v12, %v7328_v12 }
 0x1ba   : > { %v5661_v2 = vpack.c.bf16 %v2128_v50, %v2127_v43  ;;  %v2001_v6 = vmul.f32 0.5, %v1873_v51  ;;  %v1875_v23 = vadd.f32 1.0, %v6036_v60  ;;  %v1369_v9 = vmul.f32 0.044715, %v1241_v13  ;;  %v775_v60 = vpop.f32.mrf.mxu0 }
 0x1bb   : > { %2635 = vst [vmem:[#allocation2 + $0xd8] sm:$0xff] %v5660_v61  ;;  %v1243_v10 = vmul.f32 %v1115_v22, %v7325_v49  ;;  %v1242_v11 = vmul.f32 %v1114_v0, %v7328_v12  ;;  %v1116_v14 = vmul.f32 %v7333_v53, %v7333_v53  ;;  %v7344_v15 = vadd.f32 %v769_v54, %v7192_v56 }
 0x1bc   : > { %v6038_v16 = vpop.eup %6037  ;;  %2636 = vst [vmem:[#allocation2 + $0x18] sm:$0xff] %v5661_v2  ;;  %v2129_v17 = vmul.f32 %v2001_v6, %v7253_v46  ;;  %v2003_v18 = vmul.f32 0.5, %v1875_v23  ;;  %v1497_v19 = vadd.f32 %v1369_v9, %v7310_v55  ;;  %v7349_v20 = vadd.f32 %v962_v1, %v7194_v57 }
 0x1bd   : > { %v6040_v24 = vpop.eup %6039  ;;  %v1874_v25 = vadd.f32 1.0, %v6038_v16  ;;  %v1371_v26 = vmul.f32 0.044715, %v1243_v10  ;;  %v1370_v28 = vmul.f32 0.044715, %v1242_v11  ;;  %v1244_v29 = vmul.f32 %v1116_v14, %v7333_v53 }
 0x1be   : > { %v6042_v30 = vpop.eup %6041  ;;  %v2131_v62 = vmul.f32 %v2003_v18, %v7260_v52  ;;  %v1876_v32 = vadd.f32 1.0, %v6040_v24  ;;  %v1625_v33 = vmul.f32 0.7978846, %v1497_v19  ;;  %v1117_v46 = vmul.f32 %v7344_v15, %v7344_v15 }
 0x1bf   : > { %v6044_v34 = vpop.eup %6043  ;;  %v2002_v35 = vmul.f32 0.5, %v1874_v25  ;;  %v1877_v36 = vadd.f32 1.0, %v6042_v30  ;;  %v1499_v63 = vadd.f32 %v1371_v26, %v7325_v49  ;;  %v1498_v37 = vadd.f32 %v1370_v28, %v7328_v12  ;;  %v777_v25 = vpop.f32.mrf.mxu0 }
 0x1c0   : > { %v2004_v40 = vmul.f32 0.5, %v1876_v32  ;;  %v1879_v41 = vadd.f32 1.0, %v6044_v34  ;;  %6049 = vtanh.f32 %v1625_v33  ;;  %v1372_v4 = vmul.f32 0.044715, %v1244_v29 }
 0x1c1   : > { %v2130_v52 = vmul.f32 %v2002_v35, %v7268_v3  ;;  %v2005_v42 = vmul.f32 0.5, %v1877_v36  ;;  %v1627_v43 = vmul.f32 0.7978846, %v1499_v63  ;;  %v1626_v44 = vmul.f32 0.7978846, %v1498_v37  ;;  %v968_v3 = vpop.f32.mrf.mxu1 }
 0x1c2   : > { %v2132_v5 = vmul.f32 %v2004_v40, %v7271_v7  ;;  %v2007_v45 = vmul.f32 0.5, %v1879_v41  ;;  %v1500_v47 = vadd.f32 %v1372_v4, %v7333_v53  ;;  %v1245_v48 = vmul.f32 %v1117_v46, %v7344_v15  ;;  %v779_v40 = vpop.f32.mrf.mxu0 }
 0x1c3   : > { %v6046_v50 = vpop.eup %6045  ;;  %v5662_v51 = vpack.c.bf16 %v2130_v52, %v2129_v17  ;;  %v2133_v13 = vmul.f32 %v2005_v42, %v7274_v8  ;;  %6051 = vtanh.f32 %v1627_v43  ;;  %v1119_v54 = vmul.f32 %v7349_v20, %v7349_v20 }
 0x1c4   : > { %v5663_v61 = vpack.c.bf16 %v2132_v5, %v2131_v62  ;;  %v2135_v22 = vmul.f32 %v2007_v45, %v7285_v21  ;;  %v1878_v0 = vadd.f32 1.0, %v6046_v50  ;;  %6053 = vtanh.f32 %v1626_v44  ;;  %v970_v62 = vpop.f32.mrf.mxu1 }
 0x1c5   : > { %2637 = vst [vmem:[#allocation2 + $0x50] sm:$0xff] %v5662_v51  ;;  %v1628_v7 = vmul.f32 0.7978846, %v1500_v47  ;;  %v1373_v1 = vmul.f32 0.044715, %v1245_v48  ;;  %v1247_v2 = vmul.f32 %v1119_v54, %v7349_v20  ;;  %v7367_v6 = vadd.f32 %v771_v38, %v7196_v58 }
 0x1c6   : > { %v6048_v8 = vpop.eup %6047  ;;  %2638 = vst [vmem:[#allocation2 + $0x168] sm:$0xff] %v5663_v61  ;;  %v2006_v23 = vmul.f32 0.5, %v1878_v0  ;;  %v7370_v9 = vadd.f32 %v964_v39, %v7198_v59  ;;  %v7373_v10 = vadd.f32 %v775_v60, %v7192_v56  ;;  %v7376_v21 = vadd.f32 %v968_v3, %v7194_v57 }
 0x1c7   : > { %v1880_v11 = vadd.f32 1.0, %v6048_v8  ;;  %6055 = vtanh.f32 %v1628_v7  ;;  %v1501_v14 = vadd.f32 %v1373_v1, %v7344_v15  ;;  %v1375_v16 = vmul.f32 0.044715, %v1247_v2 }
 0x1c8   : > { %v2134_v17 = vmul.f32 %v2006_v23, %v7291_v27  ;;  %v1118_v18 = vmul.f32 %v7367_v6, %v7367_v6  ;;  %v1120_v19 = vmul.f32 %v7370_v9, %v7370_v9  ;;  %v1121_v24 = vmul.f32 %v7373_v10, %v7373_v10 }
 0x1c9   : > { %v2008_v26 = vmul.f32 0.5, %v1880_v11  ;;  %v1629_v28 = vmul.f32 0.7978846, %v1501_v14  ;;  %v1503_v29 = vadd.f32 %v1375_v16, %v7349_v20  ;;  %v1123_v30 = vmul.f32 %v7376_v21, %v7376_v21 }
 0x1ca   : > { %v5664_v32 = vpack.c.bf16 %v2134_v17, %v2133_v13  ;;  %v1246_v27 = vmul.f32 %v1118_v18, %v7367_v6  ;;  %v1248_v33 = vmul.f32 %v1120_v19, %v7370_v9  ;;  %v1249_v46 = vmul.f32 %v1121_v24, %v7373_v10  ;;  %v781_v18 = vpop.f32.mrf.mxu0 }
 0x1cb   : > { %v2136_v34 = vmul.f32 %v2008_v26, %v7297_v31  ;;  %6057 = vtanh.f32 %v1629_v28  ;;  %v1631_v35 = vmul.f32 0.7978846, %v1503_v29  ;;  %v1251_v36 = vmul.f32 %v1123_v30, %v7376_v21  ;;  %v972_v31 = vpop.f32.mrf.mxu1 }
 0x1cc   : > { %2639 = vst [vmem:[#allocation2 + $0x130] sm:$0xff] %v5664_v32  ;;  %v1374_v63 = vmul.f32 0.044715, %v1246_v27  ;;  %v1376_v37 = vmul.f32 0.044715, %v1248_v33  ;;  %v7395_v39 = vadd.f32 %v777_v25, %v7196_v58  ;;  %v7398_v42 = vadd.f32 %v970_v62, %v7198_v59 }
 0x1cd   : > { %v1377_v38 = vmul.f32 0.044715, %v1249_v46  ;;  %v6050_v41 = vpop.eup %6049  ;;  %v5665_v4 = vpack.c.bf16 %v2136_v34, %v2135_v22  ;;  %6059 = vtanh.f32 %v1631_v35  ;;  %v1379_v52 = vmul.f32 0.044715, %v1251_v36  ;;  %v974_v28 = vpop.f32.mrf.mxu1 }
 0x1ce   : > { %v1881_v43 = vadd.f32 1.0, %v6050_v41  ;;  %v1502_v44 = vadd.f32 %v1374_v63, %v7367_v6  ;;  %v1504_v5 = vadd.f32 %v1376_v37, %v7370_v9  ;;  %v1122_v48 = vmul.f32 %v7395_v39, %v7395_v39 }
 0x1cf   : > { %v1505_v45 = vadd.f32 %v1377_v38, %v7373_v10  ;;  %2640 = vst [vmem:[#allocation2 + $0x48] sm:$0xff] %v5665_v4  ;;  %v1507_v47 = vadd.f32 %v1379_v52, %v7376_v21  ;;  %v1124_v50 = vmul.f32 %v7398_v42, %v7398_v42  ;;  %v7409_v51 = vadd.f32 %v779_v40, %v7192_v56 }
 0x1d0   : > { %v6052_v13 = vpop.eup %6051  ;;  %v2009_v54 = vmul.f32 0.5, %v1881_v43  ;;  %v1630_v60 = vmul.f32 0.7978846, %v1502_v44  ;;  %v1632_v3 = vmul.f32 0.7978846, %v1504_v5  ;;  %v7412_v61 = vadd.f32 %v972_v31, %v7194_v57 }
 0x1d1   : > { %v6054_v22 = vpop.eup %6053  ;;  %v1883_v0 = vadd.f32 1.0, %v6052_v13  ;;  %v1633_v7 = vmul.f32 0.7978846, %v1505_v45  ;;  %v1635_v1 = vmul.f32 0.7978846, %v1507_v47  ;;  %v1250_v2 = vmul.f32 %v1122_v48, %v7395_v39  ;;  %v978_v45 = vpop.f32.mrf.mxu1 }
 0x1d2   : > { %v2137_v8 = vmul.f32 %v2009_v54, %v7310_v55  ;;  %v1882_v23 = vadd.f32 1.0, %v6054_v22  ;;  %6061 = vtanh.f32 %v1630_v60  ;;  %v1252_v11 = vmul.f32 %v1124_v50, %v7398_v42 }
 0x1d3   : > { %v2011_v14 = vmul.f32 0.5, %v1883_v0  ;;  %6063 = vtanh.f32 %v1632_v3  ;;  %v1378_v16 = vmul.f32 0.044715, %v1250_v2  ;;  %v1125_v17 = vmul.f32 %v7409_v51, %v7409_v51 }
 0x1d4   : > { %v6056_v19 = vpop.eup %6055  ;;  %v2010_v24 = vmul.f32 0.5, %v1882_v23  ;;  %6065 = vtanh.f32 %v1633_v7  ;;  %v1380_v25 = vmul.f32 0.044715, %v1252_v11  ;;  %v1127_v26 = vmul.f32 %v7412_v61, %v7412_v61 }
 0x1d5   : > { %v2139_v55 = vmul.f32 %v2011_v14, %v7325_v49  ;;  %v1884_v29 = vadd.f32 1.0, %v6056_v19  ;;  %6067 = vtanh.f32 %v1635_v1  ;;  %v1506_v30 = vadd.f32 %v1378_v16, %v7395_v39  ;;  %v785_v49 = vpop.f32.mrf.mxu0  ;;  %v980_v14 = vpop.f32.mrf.mxu1 }
 0x1d6   : > { %v2138_v62 = vmul.f32 %v2010_v24, %v7328_v12  ;;  %v1508_v32 = vadd.f32 %v1380_v25, %v7398_v42  ;;  %v1253_v27 = vmul.f32 %v1125_v17, %v7409_v51  ;;  %v1255_v33 = vmul.f32 %v1127_v26, %v7412_v61 }
 0x1d7   : > { %v2012_v46 = vmul.f32 0.5, %v1884_v29  ;;  %v1634_v34 = vmul.f32 0.7978846, %v1506_v30  ;;  %v7428_v35 = vadd.f32 %v781_v18, %v7196_v58  ;;  %v7431_v36 = vadd.f32 %v974_v28, %v7198_v59  ;;  %v787_v13 = vpop.f32.mrf.mxu0 }
 0x1d8   : > { %v6058_v63 = vpop.eup %6057  ;;  %v5666_v37 = vpack.c.bf16 %v2138_v62, %v2137_v8  ;;  %v1636_v38 = vmul.f32 0.7978846, %v1508_v32  ;;  %v1381_v40 = vmul.f32 0.044715, %v1253_v27  ;;  %v1383_v12 = vmul.f32 0.044715, %v1255_v33 }
 0x1d9   : > { %v2140_v41 = vmul.f32 %v2012_v46, %v7333_v53  ;;  %v1885_v4 = vadd.f32 1.0, %v6058_v63  ;;  %6069 = vtanh.f32 %v1634_v34  ;;  %v1126_v52 = vmul.f32 %v7428_v35, %v7428_v35 }
 0x1da   : > { %v6060_v31 = vpop.eup %6059  ;;  %2641 = vst [vmem:[#allocation2 + $0x180] sm:$0xff] %v5666_v37  ;;  %6071 = vtanh.f32 %v1636_v38  ;;  %v1509_v43 = vadd.f32 %v1381_v40, %v7409_v51  ;;  %v1511_v44 = vadd.f32 %v1383_v12, %v7412_v61  ;;  %v1128_v5 = vmul.f32 %v7431_v36, %v7431_v36  ;;  %v789_v38 = vpop.f32.mrf.mxu0 }
 0x1db   : > { %v5667_v47 = vpack.c.bf16 %v2140_v41, %v2139_v55  ;;  %v2013_v48 = vmul.f32 0.5, %v1885_v4  ;;  %v1887_v50 = vadd.f32 1.0, %v6060_v31  ;;  %v1254_v53 = vmul.f32 %v1126_v52, %v7428_v35  ;;  %v982_v4 = vpop.f32.mrf.mxu1 }
 0x1dc   : > { %v1637_v54 = vmul.f32 0.7978846, %v1509_v43  ;;  %v1639_v60 = vmul.f32 0.7978846, %v1511_v44  ;;  %v1256_v3 = vmul.f32 %v1128_v5, %v7431_v36  ;;  %v7443_v22 = vadd.f32 %v785_v49, %v7192_v56 }
 0x1dd   : > { %2642 = vst [vmem:[#allocation2 + $0x110] sm:$0xff] %v5667_v47  ;;  %v2141_v0 = vmul.f32 %v2013_v48, %v7344_v15  ;;  %v2015_v7 = vmul.f32 0.5, %v1887_v50  ;;  %v1382_v1 = vmul.f32 0.044715, %v1254_v53  ;;  %v7447_v2 = vadd.f32 %v978_v45, %v7194_v57 }
 0x1de   : > { %6073 = vtanh.f32 %v1637_v54  ;;  %v1384_v8 = vmul.f32 0.044715, %v1256_v3  ;;  %v1129_v23 = vmul.f32 %v7443_v22, %v7443_v22  ;;  %v7452_v11 = vadd.f32 %v787_v13, %v7196_v58 }
 0x1df   : > { %v6062_v16 = vpop.eup %6061  ;;  %v2143_v17 = vmul.f32 %v2015_v7, %v7349_v20  ;;  %6075 = vtanh.f32 %v1639_v60  ;;  %v1510_v15 = vadd.f32 %v1382_v1, %v7428_v35  ;;  %v1131_v18 = vmul.f32 %v7447_v2, %v7447_v2 }
 0x1e0   : > { %v6064_v19 = vpop.eup %6063  ;;  %v1886_v24 = vadd.f32 1.0, %v6062_v16  ;;  %v1512_v25 = vadd.f32 %v1384_v8, %v7431_v36  ;;  %v1257_v26 = vmul.f32 %v1129_v23, %v7443_v22  ;;  %v1130_v28 = vmul.f32 %v7452_v11, %v7452_v11 }
 0x1e1   : > { %v6066_v55 = vpop.eup %6065  ;;  %v1888_v29 = vadd.f32 1.0, %v6064_v19  ;;  %v1638_v30 = vmul.f32 0.7978846, %v1510_v15  ;;  %v1259_v20 = vmul.f32 %v1131_v18, %v7447_v2  ;;  %v7464_v62 = vadd.f32 %v980_v14, %v7198_v59 }
 0x1e2   : > { %v6068_v32 = vpop.eup %6067  ;;  %v2014_v27 = vmul.f32 0.5, %v1886_v24  ;;  %v1889_v33 = vadd.f32 1.0, %v6066_v55  ;;  %v1640_v46 = vmul.f32 0.7978846, %v1512_v25  ;;  %v1385_v34 = vmul.f32 0.044715, %v1257_v26 }
 0x1e3   : > { %v2016_v49 = vmul.f32 0.5, %v1888_v29  ;;  %v1891_v63 = vadd.f32 1.0, %v6068_v32  ;;  %6077 = vtanh.f32 %v1638_v30  ;;  %v1387_v37 = vmul.f32 0.044715, %v1259_v20 }
 0x1e4   : > { %v2142_v40 = vmul.f32 %v2014_v27, %v7367_v6  ;;  %v2017_v12 = vmul.f32 0.5, %v1889_v33  ;;  %6079 = vtanh.f32 %v1640_v46  ;;  %v1513_v41 = vadd.f32 %v1385_v34, %v7443_v22 }
 0x1e5   : > { %v2144_v52 = vmul.f32 %v2016_v49, %v7370_v9  ;;  %v2019_v31 = vmul.f32 0.5, %v1891_v63  ;;  %v1515_v43 = vadd.f32 %v1387_v37, %v7447_v2  ;;  %v1258_v44 = vmul.f32 %v1130_v28, %v7452_v11  ;;  %v791_v9 = vpop.f32.mrf.mxu0 }
 0x1e6   : > { %v6070_v5 = vpop.eup %6069  ;;  %v5668_v45 = vpack.c.bf16 %v2142_v40, %v2141_v0  ;;  %v2145_v47 = vmul.f32 %v2017_v12, %v7373_v10  ;;  %v1641_v48 = vmul.f32 0.7978846, %v1513_v41  ;;  %v1132_v6 = vmul.f32 %v7464_v62, %v7464_v62  ;;  %v984_v0 = vpop.f32.mrf.mxu1 }
 0x1e7   : > { %v6072_v50 = vpop.eup %6071  ;;  %v5669_v53 = vpack.c.bf16 %v2144_v52, %v2143_v17  ;;  %v2147_v13 = vmul.f32 %v2019_v31, %v7376_v21  ;;  %v1890_v54 = vadd.f32 1.0, %v6070_v5  ;;  %v1643_v60 = vmul.f32 0.7978846, %v1515_v43  ;;  %v795_v33 = vpop.f32.mrf.mxu0 }
 0x1e8   : > { %2643 = vst [vmem:[#allocation2 + $0x118] sm:$0xff] %v5668_v45  ;;  %v1892_v3 = vadd.f32 1.0, %v6072_v50  ;;  %6081 = vtanh.f32 %v1641_v48  ;;  %v1386_v7 = vmul.f32 0.044715, %v1258_v44  ;;  %v1260_v1 = vmul.f32 %v1132_v6, %v7464_v62  ;;  %v988_v52 = vpop.f32.mrf.mxu1 }
 0x1e9   : > { %2644 = vst [vmem:[#allocation2 + $0x98] sm:$0xff] %v5669_v53  ;;  %v2018_v10 = vmul.f32 0.5, %v1890_v54  ;;  %6083 = vtanh.f32 %v1643_v60  ;;  %v7477_v8 = vadd.f32 %v789_v38, %v7192_v56  ;;  %v7480_v23 = vadd.f32 %v982_v4, %v7194_v57  ;;  %v797_v50 = vpop.f32.mrf.mxu0 }
 0x1ea   : > { %v2020_v21 = vmul.f32 0.5, %v1892_v3  ;;  %v1514_v14 = vadd.f32 %v1386_v7, %v7452_v11  ;;  %v1388_v16 = vmul.f32 0.044715, %v1260_v1  ;;  %v7484_v17 = vadd.f32 %v791_v9, %v7196_v58 }
 0x1eb   : > { %v6074_v15 = vpop.eup %6073  ;;  %v2146_v18 = vmul.f32 %v2018_v10, %v7395_v39  ;;  %v1133_v19 = vmul.f32 %v7477_v8, %v7477_v8  ;;  %v1135_v24 = vmul.f32 %v7480_v23, %v7480_v23  ;;  %v7492_v25 = vadd.f32 %v984_v0, %v7198_v59 }
 0x1ec   : > { %v6076_v26 = vpop.eup %6075  ;;  %v2148_v28 = vmul.f32 %v2020_v21, %v7398_v42  ;;  %v1893_v55 = vadd.f32 1.0, %v6074_v15  ;;  %v1642_v29 = vmul.f32 0.7978846, %v1514_v14  ;;  %v1516_v30 = vadd.f32 %v1388_v16, %v7464_v62 }
 0x1ed   : > { %v5670_v20 = vpack.c.bf16 %v2146_v18, %v2145_v47  ;;  %v1895_v32 = vadd.f32 1.0, %v6076_v26  ;;  %v1261_v39 = vmul.f32 %v1133_v19, %v7477_v8  ;;  %v1263_v27 = vmul.f32 %v1135_v24, %v7480_v23  ;;  %v990_v19 = vpop.f32.mrf.mxu1  ;;  %v799_v24 = vpop.f32.mrf.mxu0 }
 0x1ee   : > { %v5671_v46 = vpack.c.bf16 %v2148_v28, %v2147_v13  ;;  %v2021_v34 = vmul.f32 0.5, %v1893_v55  ;;  %6085 = vtanh.f32 %v1642_v29  ;;  %v1644_v49 = vmul.f32 0.7978846, %v1516_v30 }
 0x1ef   : > { %2645 = vst [vmem:[#allocation2 + $0x120] sm:$0xff] %v5670_v20  ;;  %v2023_v63 = vmul.f32 0.5, %v1895_v32  ;;  %v1389_v37 = vmul.f32 0.044715, %v1261_v39  ;;  %v1391_v38 = vmul.f32 0.044715, %v1263_v27  ;;  %v1134_v42 = vmul.f32 %v7484_v17, %v7484_v17 }
 0x1f0   : > { %v6078_v40 = vpop.eup %6077  ;;  %2646 = vst [vmem:[#allocation2 + $0x150] sm:$0xff] %v5671_v46  ;;  %v2149_v12 = vmul.f32 %v2021_v34, %v7409_v51  ;;  %6087 = vtanh.f32 %v1644_v49  ;;  %v1136_v41 = vmul.f32 %v7492_v25, %v7492_v25  ;;  %v7504_v4 = vadd.f32 %v795_v33, %v7192_v56 }
 0x1f1   : > { %v6080_v31 = vpop.eup %6079  ;;  %v2151_v43 = vmul.f32 %v2023_v63, %v7412_v61  ;;  %v1894_v44 = vadd.f32 1.0, %v6078_v40  ;;  %v1517_v5 = vadd.f32 %v1389_v37, %v7477_v8  ;;  %v1519_v45 = vadd.f32 %v1391_v38, %v7480_v23  ;;  %v992_v63 = vpop.f32.mrf.mxu1 }
 0x1f2   : > { %v1896_v47 = vadd.f32 1.0, %v6080_v31  ;;  %v1262_v48 = vmul.f32 %v1134_v42, %v7484_v17  ;;  %v1264_v51 = vmul.f32 %v1136_v41, %v7492_v25  ;;  %v1137_v6 = vmul.f32 %v7504_v4, %v7504_v4  ;;  %v801_v37 = vpop.f32.mrf.mxu0 }
 0x1f3   : > { %v2022_v53 = vmul.f32 0.5, %v1894_v44  ;;  %v1645_v13 = vmul.f32 0.7978846, %v1517_v5  ;;  %v1647_v54 = vmul.f32 0.7978846, %v1519_v45  ;;  %v7514_v60 = vadd.f32 %v988_v52, %v7194_v57 }
 0x1f4   : > { %v2024_v61 = vmul.f32 0.5, %v1896_v47  ;;  %v1390_v9 = vmul.f32 0.044715, %v1262_v48  ;;  %v1392_v3 = vmul.f32 0.044715, %v1264_v51  ;;  %v1265_v7 = vmul.f32 %v1137_v6, %v7504_v4 }
 0x1f5   : > { %v6082_v1 = vpop.eup %6081  ;;  %v2150_v0 = vmul.f32 %v2022_v53, %v7428_v35  ;;  %6089 = vtanh.f32 %v1645_v13  ;;  %v1139_v10 = vmul.f32 %v7514_v60, %v7514_v60  ;;  %v7521_v21 = vadd.f32 %v797_v50, %v7196_v58 }
 0x1f6   : > { %v6084_v14 = vpop.eup %6083  ;;  %v2152_v16 = vmul.f32 %v2024_v61, %v7431_v36  ;;  %v1897_v15 = vadd.f32 1.0, %v6082_v1  ;;  %6091 = vtanh.f32 %v1647_v54  ;;  %v1518_v18 = vadd.f32 %v1390_v9, %v7484_v17  ;;  %v994_v54 = vpop.f32.mrf.mxu1 }
 0x1f7   : > { %v5672_v26 = vpack.c.bf16 %v2150_v0, %v2149_v12  ;;  %v1899_v28 = vadd.f32 1.0, %v6084_v14  ;;  %v1520_v35 = vadd.f32 %v1392_v3, %v7492_v25  ;;  %v1393_v55 = vmul.f32 0.044715, %v1265_v7 }
 0x1f8   : > { %v5673_v29 = vpack.c.bf16 %v2152_v16, %v2151_v43  ;;  %v2025_v30 = vmul.f32 0.5, %v1897_v15  ;;  %v1646_v20 = vmul.f32 0.7978846, %v1518_v18  ;;  %v1267_v32 = vmul.f32 %v1139_v10, %v7514_v60 }
 0x1f9   : > { %2647 = vst [vmem:[#allocation2 + $0x108] sm:$0xff] %v5672_v26  ;;  %v2027_v39 = vmul.f32 0.5, %v1899_v28  ;;  %v1648_v27 = vmul.f32 0.7978846, %v1520_v35  ;;  %v1521_v36 = vadd.f32 %v1393_v55, %v7504_v4  ;;  %v1138_v33 = vmul.f32 %v7521_v21, %v7521_v21  ;;  %v805_v35 = vpop.f32.mrf.mxu0 }
 0x1fa   : > { %2648 = vst [vmem:[#allocation2 + $0x60] sm:$0xff] %v5673_v29  ;;  %v2153_v46 = vmul.f32 %v2025_v30, %v7443_v22  ;;  %6093 = vtanh.f32 %v1646_v20  ;;  %v1395_v34 = vmul.f32 0.044715, %v1267_v32  ;;  %v7532_v49 = vadd.f32 %v990_v19, %v7198_v59 }
 0x1fb   : > { %v6086_v38 = vpop.eup %6085  ;;  %v2155_v42 = vmul.f32 %v2027_v39, %v7447_v2  ;;  %6095 = vtanh.f32 %v1648_v27  ;;  %v1649_v40 = vmul.f32 0.7978846, %v1521_v36  ;;  %v1266_v12 = vmul.f32 %v1138_v33, %v7521_v21 }
 0x1fc   : > { %v1898_v41 = vadd.f32 1.0, %v6086_v38  ;;  %v1523_v52 = vadd.f32 %v1395_v34, %v7514_v60  ;;  %v1140_v22 = vmul.f32 %v7532_v49, %v7532_v49  ;;  %v7540_v31 = vadd.f32 %v799_v24, %v7192_v56  ;;  %v998_v34 = vpop.f32.mrf.mxu1 }
 0x1fd   : > { %v6088_v43 = vpop.eup %6087  ;;  %6097 = vtanh.f32 %v1649_v40  ;;  %v1394_v44 = vmul.f32 0.044715, %v1266_v12  ;;  %v7543_v5 = vadd.f32 %v992_v63, %v7194_v57  ;;  %v7546_v2 = vadd.f32 %v801_v37, %v7196_v58  ;;  %v807_v12 = vpop.f32.mrf.mxu0 }
 0x1fe   : > { %v2026_v45 = vmul.f32 0.5, %v1898_v41  ;;  %v1900_v47 = vadd.f32 1.0, %v6088_v43  ;;  %v1651_v48 = vmul.f32 0.7978846, %v1523_v52  ;;  %v1268_v51 = vmul.f32 %v1140_v22, %v7532_v49 }
 0x1ff   : > { %v1522_v6 = vadd.f32 %v1394_v44, %v7521_v21  ;;  %v1141_v50 = vmul.f32 %v7540_v31, %v7540_v31  ;;  %v1143_v53 = vmul.f32 %v7543_v5, %v7543_v5  ;;  %v1142_v13 = vmul.f32 %v7546_v2, %v7546_v2 }
 0x200   : > { %v2154_v61 = vmul.f32 %v2026_v45, %v7452_v11  ;;  %v2028_v9 = vmul.f32 0.5, %v1900_v47  ;;  %6099 = vtanh.f32 %v1651_v48  ;;  %v1396_v3 = vmul.f32 0.044715, %v1268_v51 }
 0x201   : > { %v1650_v7 = vmul.f32 0.7978846, %v1522_v6  ;;  %v1269_v1 = vmul.f32 %v1141_v50, %v7540_v31  ;;  %v1271_v0 = vmul.f32 %v1143_v53, %v7543_v5  ;;  %v1270_v10 = vmul.f32 %v1142_v13, %v7546_v2 }
 0x202   : > { %v6090_v14 = vpop.eup %6089  ;;  %v5674_v16 = vpack.c.bf16 %v2154_v61, %v2153_v46  ;;  %v2156_v15 = vmul.f32 %v2028_v9, %v7464_v62  ;;  %v1524_v18 = vadd.f32 %v1396_v3, %v7532_v49  ;;  %v7563_v19 = vadd.f32 %v994_v54, %v7198_v59 }
 0x203   : > { %v6092_v11 = vpop.eup %6091  ;;  %v1901_v24 = vadd.f32 1.0, %v6090_v14  ;;  %6101 = vtanh.f32 %v1650_v7  ;;  %v1397_v26 = vmul.f32 0.044715, %v1269_v1  ;;  %v1399_v28 = vmul.f32 0.044715, %v1271_v0 }
 0x204   : > { %2649 = vst [vmem:[#allocation2 + $0xe0] sm:$0xff] %v5674_v16  ;;  %v5675_v55 = vpack.c.bf16 %v2156_v15, %v2155_v42  ;;  %v1903_v29 = vadd.f32 1.0, %v6092_v11  ;;  %v1652_v30 = vmul.f32 0.7978846, %v1524_v18  ;;  %v1398_v20 = vmul.f32 0.044715, %v1270_v10  ;;  %v809_v15 = vpop.f32.mrf.mxu0 }
 0x205   : > { %v2029_v32 = vmul.f32 0.5, %v1901_v24  ;;  %v1525_v39 = vadd.f32 %v1397_v26, %v7540_v31  ;;  %v1527_v62 = vadd.f32 %v1399_v28, %v7543_v5  ;;  %v1144_v27 = vmul.f32 %v7563_v19, %v7563_v19 }
 0x206   : > { %2650 = vst [vmem:[#allocation2 + $0x188] sm:$0xff] %v5675_v55  ;;  %v2031_v36 = vmul.f32 0.5, %v1903_v29  ;;  %6103 = vtanh.f32 %v1652_v30  ;;  %v1526_v33 = vadd.f32 %v1398_v20, %v7546_v2  ;;  %v7571_v46 = vadd.f32 %v805_v35, %v7192_v56 }
 0x207   : > { %v6094_v63 = vpop.eup %6093  ;;  %v2157_v37 = vmul.f32 %v2029_v32, %v7477_v8  ;;  %v1653_v38 = vmul.f32 0.7978846, %v1525_v39  ;;  %v1655_v42 = vmul.f32 0.7978846, %v1527_v62  ;;  %v1272_v40 = vmul.f32 %v1144_v27, %v7563_v19 }
 0x208   : > { %v6096_v41 = vpop.eup %6095  ;;  %v2159_v52 = vmul.f32 %v2031_v36, %v7480_v23  ;;  %v1902_v22 = vadd.f32 1.0, %v6094_v63  ;;  %v1654_v43 = vmul.f32 0.7978846, %v1526_v33  ;;  %v1145_v44 = vmul.f32 %v7571_v46, %v7571_v46  ;;  %v1000_v23 = vpop.f32.mrf.mxu1 }
 0x209   : > { %v1904_v45 = vadd.f32 1.0, %v6096_v41  ;;  %6105 = vtanh.f32 %v1653_v38  ;;  %v1400_v47 = vmul.f32 0.044715, %v1272_v40  ;;  %v7579_v48 = vadd.f32 %v998_v34, %v7194_v57 }
 0x20a   : > { %v6098_v8 = vpop.eup %6097  ;;  %v2030_v51 = vmul.f32 0.5, %v1902_v22  ;;  %6107 = vtanh.f32 %v1655_v42  ;;  %v1273_v6 = vmul.f32 %v1145_v44, %v7571_v46  ;;  %v7583_v50 = vadd.f32 %v807_v12, %v7196_v58  ;;  %v1002_v26 = vpop.f32.mrf.mxu1 }
 0x20b   : > { %v2032_v53 = vmul.f32 0.5, %v1904_v45  ;;  %v1905_v13 = vadd.f32 1.0, %v6098_v8  ;;  %6109 = vtanh.f32 %v1654_v43  ;;  %v1528_v54 = vadd.f32 %v1400_v47, %v7563_v19 }
 0x20c   : > { %v2158_v61 = vmul.f32 %v2030_v51, %v7484_v17  ;;  %v1401_v9 = vmul.f32 0.044715, %v1273_v6  ;;  %v1147_v3 = vmul.f32 %v7579_v48, %v7579_v48  ;;  %v1146_v7 = vmul.f32 %v7583_v50, %v7583_v50 }
 0x20d   : > { %v6100_v1 = vpop.eup %6099  ;;  %v2160_v0 = vmul.f32 %v2032_v53, %v7492_v25  ;;  %v2033_v10 = vmul.f32 0.5, %v1905_v13  ;;  %v1656_v14 = vmul.f32 0.7978846, %v1528_v54  ;;  %v7593_v16 = vadd.f32 %v1000_v23, %v7198_v59  ;;  %v1004_v53 = vpop.f32.mrf.mxu1 }
 0x20e   : > { %v5676_v18 = vpack.c.bf16 %v2158_v61, %v2157_v37  ;;  %v1907_v11 = vadd.f32 1.0, %v6100_v1  ;;  %v1529_v17 = vadd.f32 %v1401_v9, %v7571_v46  ;;  %v1275_v24 = vmul.f32 %v1147_v3, %v7579_v48 }
 0x20f   : > { %v5677_v28 = vpack.c.bf16 %v2160_v0, %v2159_v52  ;;  %v2161_v35 = vmul.f32 %v2033_v10, %v7504_v4  ;;  %6111 = vtanh.f32 %v1656_v14  ;;  %v1274_v55 = vmul.f32 %v1146_v7, %v7583_v50  ;;  %v811_v4 = vpop.f32.mrf.mxu0 }
 0x210   : > { %v6102_v25 = vpop.eup %6101  ;;  %2651 = vst [vmem:[#allocation2 + $0x138] sm:$0xff] %v5676_v18  ;;  %v2035_v29 = vmul.f32 0.5, %v1907_v11  ;;  %v1657_v30 = vmul.f32 0.7978846, %v1529_v17  ;;  %v1403_v20 = vmul.f32 0.044715, %v1275_v24  ;;  %v1148_v32 = vmul.f32 %v7593_v16, %v7593_v16 }
 0x211   : > { %2652 = vst [vmem:[#allocation2 + $0x140] sm:$0xff] %v5677_v28  ;;  %v1906_v39 = vadd.f32 1.0, %v6102_v25  ;;  %v1402_v62 = vmul.f32 0.044715, %v1274_v55  ;;  %v7602_v27 = vadd.f32 %v809_v15, %v7192_v56  ;;  %v7605_v36 = vadd.f32 %v1002_v26, %v7194_v57  ;;  %v815_v10 = vpop.f32.mrf.mxu0  ;;  %v1008_v28 = vpop.f32.mrf.mxu1 }
 0x212   : > { %v2163_v33 = vmul.f32 %v2035_v29, %v7514_v60  ;;  %6113 = vtanh.f32 %v1657_v30  ;;  %v1531_v34 = vadd.f32 %v1403_v20, %v7579_v48  ;;  %v1276_v63 = vmul.f32 %v1148_v32, %v7593_v16 }
 0x213   : > { %v6104_v37 = vpop.eup %6103  ;;  %v2034_v38 = vmul.f32 0.5, %v1906_v39  ;;  %v1530_v42 = vadd.f32 %v1402_v62, %v7583_v50  ;;  %v1149_v40 = vmul.f32 %v7602_v27, %v7602_v27  ;;  %v1151_v12 = vmul.f32 %v7605_v36, %v7605_v36  ;;  %v817_v62 = vpop.f32.mrf.mxu0 }
 0x214   : > { %v1908_v41 = vadd.f32 1.0, %v6104_v37  ;;  %v1659_v52 = vmul.f32 0.7978846, %v1531_v34  ;;  %v1404_v22 = vmul.f32 0.044715, %v1276_v63  ;;  %v7616_v60 = vadd.f32 %v811_v4, %v7196_v58  ;;  %v1010_v37 = vpop.f32.mrf.mxu1 }
 0x215   : > { %v2162_v43 = vmul.f32 %v2034_v38, %v7521_v21  ;;  %v1658_v44 = vmul.f32 0.7978846, %v1530_v42  ;;  %v1277_v45 = vmul.f32 %v1149_v40, %v7602_v27  ;;  %v1279_v47 = vmul.f32 %v1151_v12, %v7605_v36 }
 0x216   : > { %v6106_v8 = vpop.eup %6105  ;;  %v2036_v51 = vmul.f32 0.5, %v1908_v41  ;;  %6115 = vtanh.f32 %v1659_v52  ;;  %v1532_v6 = vadd.f32 %v1404_v22, %v7593_v16  ;;  %v1150_v23 = vmul.f32 %v7616_v60, %v7616_v60 }
 0x217   : > { %v6108_v13 = vpop.eup %6107  ;;  %v5678_v54 = vpack.c.bf16 %v2162_v43, %v2161_v35  ;;  %v1909_v61 = vadd.f32 1.0, %v6106_v8  ;;  %6117 = vtanh.f32 %v1658_v44  ;;  %v1405_v9 = vmul.f32 0.044715, %v1277_v45  ;;  %v819_v44 = vpop.f32.mrf.mxu0 }
 0x218   : > { %v6110_v21 = vpop.eup %6109  ;;  %v2164_v3 = vmul.f32 %v2036_v51, %v7532_v49  ;;  %v1911_v7 = vadd.f32 1.0, %v6108_v13  ;;  %v1660_v1 = vmul.f32 0.7978846, %v1532_v6  ;;  %v1407_v0 = vmul.f32 0.044715, %v1279_v47 }
 0x219   : > { %2653 = vst [vmem:[#allocation2 + $0x80] sm:$0xff] %v5678_v54  ;;  %v2037_v14 = vmul.f32 0.5, %v1909_v61  ;;  %v1910_v15 = vadd.f32 1.0, %v6110_v21  ;;  %v1533_v18 = vadd.f32 %v1405_v9, %v7602_v27  ;;  %v1278_v11 = vmul.f32 %v1150_v23, %v7616_v60 }
 0x21a   : > { %v5679_v17 = vpack.c.bf16 %v2164_v3, %v2163_v33  ;;  %v2039_v24 = vmul.f32 0.5, %v1911_v7  ;;  %6119 = vtanh.f32 %v1660_v1  ;;  %v1535_v26 = vadd.f32 %v1407_v0, %v7605_v36 }
 0x21b   : > { %v2165_v35 = vmul.f32 %v2037_v14, %v7540_v31  ;;  %v2038_v49 = vmul.f32 0.5, %v1910_v15  ;;  %v1661_v55 = vmul.f32 0.7978846, %v1533_v18  ;;  %v1406_v25 = vmul.f32 0.044715, %v1278_v11 }
 0x21c   : > { %v6112_v29 = vpop.eup %6111  ;;  %2654 = vst [vmem:[#allocation2 + $0x1a8] sm:$0xff] %v5679_v17  ;;  %v2167_v30 = vmul.f32 %v2039_v24, %v7543_v5  ;;  %v1663_v20 = vmul.f32 0.7978846, %v1535_v26  ;;  %v7631_v32 = vadd.f32 %v1004_v53, %v7198_v59  ;;  %v7634_v39 = vadd.f32 %v815_v10, %v7192_v56  ;;  %v1012_v10 = vpop.f32.mrf.mxu1 }
 0x21d   : > { %v2166_v4 = vmul.f32 %v2038_v49, %v7546_v2  ;;  %v1912_v33 = vadd.f32 1.0, %v6112_v29  ;;  %6121 = vtanh.f32 %v1661_v55  ;;  %v1534_v31 = vadd.f32 %v1406_v25, %v7616_v60  ;;  %v821_v29 = vpop.f32.mrf.mxu0 }
 0x21e   : > { %6123 = vtanh.f32 %v1663_v20  ;;  %v1152_v34 = vmul.f32 %v7631_v32, %v7631_v32  ;;  %v1153_v5 = vmul.f32 %v7634_v39, %v7634_v39  ;;  %v7643_v63 = vadd.f32 %v1008_v28, %v7194_v57 }
 0x21f   : > { %v6114_v38 = vpop.eup %6113  ;;  %v5680_v42 = vpack.c.bf16 %v2166_v4, %v2165_v35  ;;  %v2040_v40 = vmul.f32 0.5, %v1912_v33  ;;  %v1662_v12 = vmul.f32 0.7978846, %v1534_v31  ;;  %v7646_v2 = vadd.f32 %v817_v62, %v7196_v58  ;;  %v1014_v4 = vpop.f32.mrf.mxu1 }
 0x220   : > { %v1913_v41 = vadd.f32 1.0, %v6114_v38  ;;  %v1280_v52 = vmul.f32 %v1152_v34, %v7631_v32  ;;  %v1281_v22 = vmul.f32 %v1153_v5, %v7634_v39  ;;  %v1155_v43 = vmul.f32 %v7643_v63, %v7643_v63 }
 0x221   : > { %2655 = vst [vmem:[#allocation2 + $0x1b8] sm:$0xff] %v5680_v42  ;;  %v2168_v45 = vmul.f32 %v2040_v40, %v7563_v19  ;;  %6125 = vtanh.f32 %v1662_v12  ;;  %v1154_v47 = vmul.f32 %v7646_v2, %v7646_v2  ;;  %v7656_v8 = vadd.f32 %v1010_v37, %v7198_v59 }
 0x222   : > { %v2041_v51 = vmul.f32 0.5, %v1913_v41  ;;  %v1408_v6 = vmul.f32 0.044715, %v1280_v52  ;;  %v1409_v23 = vmul.f32 0.044715, %v1281_v22  ;;  %v1283_v53 = vmul.f32 %v1155_v43, %v7643_v63  ;;  %v825_v22 = vpop.f32.mrf.mxu0 }
 0x223   : > { %v6116_v13 = vpop.eup %6115  ;;  %v5681_v54 = vpack.c.bf16 %v2168_v45, %v2167_v30  ;;  %v1282_v61 = vmul.f32 %v1154_v47, %v7646_v2  ;;  %v1156_v9 = vmul.f32 %v7656_v8, %v7656_v8  ;;  %v7663_v19 = vadd.f32 %v819_v44, %v7192_v56  ;;  %v1018_v45 = vpop.f32.mrf.mxu1 }
 0x224   : > { %v6118_v21 = vpop.eup %6117  ;;  %v2169_v3 = vmul.f32 %v2041_v51, %v7571_v46  ;;  %v1915_v7 = vadd.f32 1.0, %v6116_v13  ;;  %v1536_v1 = vadd.f32 %v1408_v6, %v7631_v32  ;;  %v1537_v0 = vadd.f32 %v1409_v23, %v7634_v39 }
 0x225   : > { %2656 = vst [vmem:[#allocation2 + $0x28] sm:$0xff] %v5681_v54  ;;  %v1914_v14 = vadd.f32 1.0, %v6118_v21  ;;  %v1411_v15 = vmul.f32 0.044715, %v1283_v53  ;;  %v1410_v18 = vmul.f32 0.044715, %v1282_v61  ;;  %v1284_v11 = vmul.f32 %v1156_v9, %v7656_v8 }
 0x226   : > { %v2043_v17 = vmul.f32 0.5, %v1915_v7  ;;  %v1664_v24 = vmul.f32 0.7978846, %v1536_v1  ;;  %v1665_v26 = vmul.f32 0.7978846, %v1537_v0  ;;  %v1157_v28 = vmul.f32 %v7663_v19, %v7663_v19  ;;  %v827_v7 = vpop.f32.mrf.mxu0 }
 0x227   : > { %v6120_v35 = vpop.eup %6119  ;;  %v2042_v46 = vmul.f32 0.5, %v1914_v14  ;;  %v1539_v49 = vadd.f32 %v1411_v15, %v7643_v63  ;;  %v1538_v55 = vadd.f32 %v1410_v18, %v7646_v2  ;;  %v1412_v25 = vmul.f32 0.044715, %v1284_v11  ;;  %v1020_v15 = vpop.f32.mrf.mxu1 }
 0x228   : > { %v2171_v30 = vmul.f32 %v2043_v17, %v7579_v48  ;;  %v1916_v20 = vadd.f32 1.0, %v6120_v35  ;;  %6127 = vtanh.f32 %v1664_v24  ;;  %v1285_v62 = vmul.f32 %v1157_v28, %v7663_v19 }
 0x229   : > { %v2170_v33 = vmul.f32 %v2042_v46, %v7583_v50  ;;  %6129 = vtanh.f32 %v1665_v26  ;;  %v1667_v31 = vmul.f32 0.7978846, %v1539_v49  ;;  %v1666_v34 = vmul.f32 0.7978846, %v1538_v55 }
 0x22a   : > { %v6122_v5 = vpop.eup %6121  ;;  %v2044_v37 = vmul.f32 0.5, %v1916_v20  ;;  %v1540_v38 = vadd.f32 %v1412_v25, %v7656_v8  ;;  %v1413_v42 = vmul.f32 0.044715, %v1285_v62  ;;  %v7678_v40 = vadd.f32 %v1012_v10, %v7194_v57 }
 0x22b   : > { %v6124_v12 = vpop.eup %6123  ;;  %v5682_v48 = vpack.c.bf16 %v2170_v33, %v2169_v3  ;;  %v1917_v41 = vadd.f32 1.0, %v6122_v5  ;;  %6131 = vtanh.f32 %v1667_v31  ;;  %v7681_v52 = vadd.f32 %v821_v29, %v7196_v58 }
 0x22c   : > { %v2172_v50 = vmul.f32 %v2044_v37, %v7593_v16  ;;  %v1919_v43 = vadd.f32 1.0, %v6124_v12  ;;  %6133 = vtanh.f32 %v1666_v34  ;;  %v1668_v44 = vmul.f32 0.7978846, %v1540_v38 }
 0x22d   : > { %2657 = vst [vmem:[#allocation2 + $0x1e8] sm:$0xff] %v5682_v48  ;;  %v2045_v47 = vmul.f32 0.5, %v1917_v41  ;;  %v1541_v51 = vadd.f32 %v1413_v42, %v7663_v19  ;;  %v1159_v6 = vmul.f32 %v7678_v40, %v7678_v40  ;;  %v1158_v23 = vmul.f32 %v7681_v52, %v7681_v52  ;;  %v829_v41 = vpop.f32.mrf.mxu0 }
 0x22e   : > { %v6126_v53 = vpop.eup %6125  ;;  %v5683_v13 = vpack.c.bf16 %v2172_v50, %v2171_v30  ;;  %v2047_v54 = vmul.f32 0.5, %v1919_v43  ;;  %6135 = vtanh.f32 %v1668_v44  ;;  %v7690_v16 = vadd.f32 %v1014_v4, %v7198_v59 }
 0x22f   : > { %v2173_v61 = vmul.f32 %v2045_v47, %v7602_v27  ;;  %v1918_v9 = vadd.f32 1.0, %v6126_v53  ;;  %v1669_v21 = vmul.f32 0.7978846, %v1541_v51  ;;  %v1287_v3 = vmul.f32 %v1159_v6, %v7678_v40  ;;  %v1022_v53 = vpop.f32.mrf.mxu1 }
 0x230   : > { %2658 = vst [vmem:[#allocation2 + $0xf8] sm:$0xff] %v5683_v13  ;;  %v7695_v1 = vmul.f32 %v2047_v54, %v7605_v36  ;;  %v1286_v0 = vmul.f32 %v1158_v23, %v7681_v52  ;;  %v1160_v10 = vmul.f32 %v7690_v16, %v7690_v16  ;;  %v7701_v14 = vadd.f32 %v825_v22, %v7192_v56 }
 0x231   : > { %v2046_v18 = vmul.f32 0.5, %v1918_v9  ;;  %6137 = vtanh.f32 %v1669_v21  ;;  %v1415_v27 = vmul.f32 0.044715, %v1287_v3  ;;  %v7704_v11 = vadd.f32 %v1018_v45, %v7194_v57 }
 0x232   : > { %v1414_v17 = vmul.f32 0.044715, %v1286_v0  ;;  %v1288_v24 = vmul.f32 %v1160_v10, %v7690_v16  ;;  %v1161_v36 = vmul.f32 %v7701_v14, %v7701_v14  ;;  %v7710_v26 = vadd.f32 %v827_v7, %v7196_v58  ;;  %v831_v10 = vpop.f32.mrf.mxu0 }
 0x233   : > { %v2174_v28 = vmul.f32 %v2046_v18, %v7616_v60  ;;  %v1543_v35 = vadd.f32 %v1415_v27, %v7678_v40  ;;  %v1163_v46 = vmul.f32 %v7704_v11, %v7704_v11  ;;  %v7717_v49 = vadd.f32 %v1020_v15, %v7198_v59 }
 0x234   : > { %v1542_v55 = vadd.f32 %v1414_v17, %v7681_v52  ;;  %v1416_v25 = vmul.f32 0.044715, %v1288_v24  ;;  %v1289_v29 = vmul.f32 %v1161_v36, %v7701_v14  ;;  %v1162_v30 = vmul.f32 %v7710_v26, %v7710_v26  ;;  %v1024_v36 = vpop.f32.mrf.mxu1 }
 0x235   : > { %v6128_v20 = vpop.eup %6127  ;;  %v5684_v62 = vpack.c.bf16 %v2174_v28, %v2173_v61  ;;  %v1671_v4 = vmul.f32 0.7978846, %v1543_v35  ;;  %v1291_v60 = vmul.f32 %v1163_v46, %v7704_v11  ;;  %v1164_v33 = vmul.f32 %v7717_v49, %v7717_v49 }
 0x236   : > { %v6130_v31 = vpop.eup %6129  ;;  %v1920_v34 = vadd.f32 1.0, %v6128_v20  ;;  %v1670_v5 = vmul.f32 0.7978846, %v1542_v55  ;;  %v1544_v37 = vadd.f32 %v1416_v25, %v7690_v16  ;;  %v1417_v38 = vmul.f32 0.044715, %v1289_v29  ;;  %v835_v29 = vpop.f32.mrf.mxu0 }
 0x237   : > { %2659 = vst [vmem:[#allocation2 + $0x160] sm:$0xff] %v5684_v62  ;;  %v1921_v42 = vadd.f32 1.0, %v6130_v31  ;;  %6139 = vtanh.f32 %v1671_v4  ;;  %v1419_v12 = vmul.f32 0.044715, %v1291_v60  ;;  %v1290_v48 = vmul.f32 %v1162_v30, %v7710_v26 }
 0x238   : > { %v6132_v22 = vpop.eup %6131  ;;  %v2048_v50 = vmul.f32 0.5, %v1920_v34  ;;  %6141 = vtanh.f32 %v1670_v5  ;;  %v1672_v43 = vmul.f32 0.7978846, %v1544_v37  ;;  %v1545_v44 = vadd.f32 %v1417_v38, %v7701_v14  ;;  %v1028_v34 = vpop.f32.mrf.mxu1 }
 0x239   : > { %v6134_v45 = vpop.eup %6133  ;;  %v2049_v47 = vmul.f32 0.5, %v1921_v42  ;;  %v1923_v51 = vadd.f32 1.0, %v6132_v22  ;;  %v1547_v6 = vadd.f32 %v1419_v12, %v7704_v11  ;;  %v1418_v23 = vmul.f32 0.044715, %v1290_v48 }
 0x23a   : > { %v2176_v13 = vmul.f32 %v2048_v50, %v7631_v32  ;;  %v1922_v54 = vadd.f32 1.0, %v6134_v45  ;;  %6143 = vtanh.f32 %v1672_v43  ;;  %v1673_v61 = vmul.f32 0.7978846, %v1545_v44 }
 0x23b   : > { %v6136_v9 = vpop.eup %6135  ;;  %v2177_v21 = vmul.f32 %v2049_v47, %v7634_v39  ;;  %v2051_v3 = vmul.f32 0.5, %v1923_v51  ;;  %v1675_v7 = vmul.f32 0.7978846, %v1547_v6  ;;  %v1546_v0 = vadd.f32 %v1418_v23, %v7710_v26 }
 0x23c   : > { %v5685_v15 = vpack.c.bf16 %v2176_v13, %v7695_v1  ;;  %v2050_v18 = vmul.f32 0.5, %v1922_v54  ;;  %v1924_v27 = vadd.f32 1.0, %v6136_v9  ;;  %6145 = vtanh.f32 %v1673_v61  ;;  %v837_v61 = vpop.f32.mrf.mxu0  ;;  %v1030_v9 = vpop.f32.mrf.mxu1 }
 0x23d   : > { %v2179_v17 = vmul.f32 %v2051_v3, %v7643_v63  ;;  %6147 = vtanh.f32 %v1675_v7  ;;  %v1674_v32 = vmul.f32 0.7978846, %v1546_v0  ;;  %v1292_v24 = vmul.f32 %v1164_v33, %v7717_v49 }
 0x23e   : > { %v6138_v28 = vpop.eup %6137  ;;  %2660 = vst [vmem:[#allocation2 + $0x30] sm:$0xff] %v5685_v15  ;;  %v2178_v39 = vmul.f32 %v2050_v18, %v7646_v2  ;;  %v2052_v35 = vmul.f32 0.5, %v1924_v27  ;;  %v7738_v46 = vadd.f32 %v829_v41, %v7192_v56  ;;  %v7741_v1 = vadd.f32 %v1022_v53, %v7194_v57 }
 0x23f   : > { %v1925_v55 = vadd.f32 1.0, %v6138_v28  ;;  %6149 = vtanh.f32 %v1674_v32  ;;  %v1420_v25 = vmul.f32 0.044715, %v1292_v24  ;;  %v7744_v63 = vadd.f32 %v831_v10, %v7196_v58 }
 0x240   : > { %v5686_v30 = vpack.c.bf16 %v2178_v39, %v2177_v21  ;;  %v2180_v20 = vmul.f32 %v2052_v35, %v7656_v8  ;;  %v1165_v2 = vmul.f32 %v7738_v46, %v7738_v46  ;;  %v1167_v62 = vmul.f32 %v7741_v1, %v7741_v1 }
 0x241   : > { %v2053_v4 = vmul.f32 0.5, %v1925_v55  ;;  %v1548_v60 = vadd.f32 %v1420_v25, %v7717_v49  ;;  %v1166_v33 = vmul.f32 %v7744_v63, %v7744_v63  ;;  %v7755_v31 = vadd.f32 %v1024_v36, %v7198_v59 }
 0x242   : > { %2661 = vst [vmem:[#allocation2 + $0x1e0] sm:$0xff] %v5686_v30  ;;  %v5687_v5 = vpack.c.bf16 %v2180_v20, %v2179_v17  ;;  %v1293_v8 = vmul.f32 %v1165_v2, %v7738_v46  ;;  %v1295_v37 = vmul.f32 %v1167_v62, %v7741_v1  ;;  %v7760_v38 = vadd.f32 %v835_v29, %v7192_v56  ;;  %v839_v30 = vpop.f32.mrf.mxu0  ;;  %v1032_v20 = vpop.f32.mrf.mxu1 }
 0x243   : > { %v2181_v42 = vmul.f32 %v2053_v4, %v7663_v19  ;;  %v1676_v12 = vmul.f32 0.7978846, %v1548_v60  ;;  %v1294_v48 = vmul.f32 %v1166_v33, %v7744_v63  ;;  %v1168_v41 = vmul.f32 %v7755_v31, %v7755_v31 }
 0x244   : > { %v6140_v22 = vpop.eup %6139  ;;  %2662 = vst [vmem:[#allocation2] sm:$0xff] %v5687_v5  ;;  %v1421_v50 = vmul.f32 0.044715, %v1293_v8  ;;  %v1423_v43 = vmul.f32 0.044715, %v1295_v37  ;;  %v1169_v44 = vmul.f32 %v7760_v38, %v7760_v38  ;;  %v7769_v45 = vadd.f32 %v1028_v34, %v7194_v57 }
 0x245   : > { %v6142_v47 = vpop.eup %6141  ;;  %v1927_v51 = vadd.f32 1.0, %v6140_v22  ;;  %6151 = vtanh.f32 %v1676_v12  ;;  %v1422_v19 = vmul.f32 0.044715, %v1294_v48  ;;  %v1296_v6 = vmul.f32 %v1168_v41, %v7755_v31  ;;  %v841_v22 = vpop.f32.mrf.mxu0 }
 0x246   : > { %v1926_v23 = vadd.f32 1.0, %v6142_v47  ;;  %v1549_v53 = vadd.f32 %v1421_v50, %v7738_v46  ;;  %v1551_v13 = vadd.f32 %v1423_v43, %v7741_v1  ;;  %v1297_v54 = vmul.f32 %v1169_v44, %v7760_v38  ;;  %v1034_v50 = vpop.f32.mrf.mxu1 }
 0x247   : > { %v6144_v21 = vpop.eup %6143  ;;  %v2055_v3 = vmul.f32 0.5, %v1927_v51  ;;  %v1550_v7 = vadd.f32 %v1422_v19, %v7744_v63  ;;  %v1424_v0 = vmul.f32 0.044715, %v1296_v6  ;;  %v1171_v10 = vmul.f32 %v7769_v45, %v7769_v45 }
 0x248   : > { %v2054_v15 = vmul.f32 0.5, %v1926_v23  ;;  %v1928_v18 = vadd.f32 1.0, %v6144_v21  ;;  %v1677_v27 = vmul.f32 0.7978846, %v1549_v53  ;;  %v1679_v17 = vmul.f32 0.7978846, %v1551_v13 }
 0x249   : > { %v6146_v32 = vpop.eup %6145  ;;  %v2183_v24 = vmul.f32 %v2055_v3, %v7678_v40  ;;  %v1678_v36 = vmul.f32 0.7978846, %v1550_v7  ;;  %v1552_v28 = vadd.f32 %v1424_v0, %v7755_v31  ;;  %v1425_v39 = vmul.f32 0.044715, %v1297_v54 }
 0x24a   : > { %v6148_v35 = vpop.eup %6147  ;;  %v2182_v55 = vmul.f32 %v2054_v15, %v7681_v52  ;;  %v2056_v25 = vmul.f32 0.5, %v1928_v18  ;;  %v1929_v29 = vadd.f32 1.0, %v6146_v32  ;;  %6153 = vtanh.f32 %v1677_v27  ;;  %v845_v27 = vpop.f32.mrf.mxu0 }
 0x24b   : > { %v1931_v2 = vadd.f32 1.0, %v6148_v35  ;;  %6155 = vtanh.f32 %v1679_v17  ;;  %v1680_v62 = vmul.f32 0.7978846, %v1552_v28  ;;  %v1553_v4 = vadd.f32 %v1425_v39, %v7760_v38 }
 0x24c   : > { %v6150_v60 = vpop.eup %6149  ;;  %v5688_v33 = vpack.c.bf16 %v2182_v55, %v2181_v42  ;;  %v2184_v40 = vmul.f32 %v2056_v25, %v7690_v16  ;;  %v2057_v34 = vmul.f32 0.5, %v1929_v29  ;;  %6157 = vtanh.f32 %v1678_v36 }
 0x24d   : > { %v2059_v5 = vmul.f32 0.5, %v1931_v2  ;;  %v1930_v8 = vadd.f32 1.0, %v6150_v60  ;;  %6159 = vtanh.f32 %v1680_v62  ;;  %v1681_v52 = vmul.f32 0.7978846, %v1553_v4 }
 0x24e   : > { %2663 = vst [vmem:[#allocation2 + $0xf0] sm:$0xff] %v5688_v33  ;;  %v5689_v37 = vpack.c.bf16 %v2184_v40, %v2183_v24  ;;  %v2185_v12 = vmul.f32 %v2057_v34, %v7701_v14  ;;  %v1299_v48 = vmul.f32 %v1171_v10, %v7769_v45  ;;  %v7786_v41 = vadd.f32 %v837_v61, %v7196_v58  ;;  %v1038_v40 = vpop.f32.mrf.mxu1  ;;  %v847_v34 = vpop.f32.mrf.mxu0 }
 0x24f   : > { %v2187_v42 = vmul.f32 %v2059_v5, %v7704_v11  ;;  %v2058_v16 = vmul.f32 0.5, %v1930_v8  ;;  %6161 = vtanh.f32 %v1681_v52  ;;  %v7790_v43 = vadd.f32 %v1030_v9, %v7198_v59 }
 0x250   : > { %2664 = vst [vmem:[#allocation2 + $0x8] sm:$0xff] %v5689_v37  ;;  %v1427_v44 = vmul.f32 0.044715, %v1299_v48  ;;  %v1170_v47 = vmul.f32 %v7786_v41, %v7786_v41  ;;  %v7795_v14 = vadd.f32 %v839_v30, %v7192_v56  ;;  %v7798_v51 = vadd.f32 %v1032_v20, %v7194_v57 }
 0x251   : > { %v2186_v19 = vmul.f32 %v2058_v16, %v7710_v26  ;;  %v1172_v11 = vmul.f32 %v7790_v43, %v7790_v43  ;;  %v7804_v6 = vadd.f32 %v841_v22, %v7196_v58  ;;  %v7807_v23 = vadd.f32 %v1034_v50, %v7198_v59 }
 0x252   : > { %v6152_v53 = vpop.eup %6151  ;;  %v1555_v13 = vadd.f32 %v1427_v44, %v7769_v45  ;;  %v1298_v54 = vmul.f32 %v1170_v47, %v7786_v41  ;;  %v1173_v61 = vmul.f32 %v7795_v14, %v7795_v14  ;;  %v1175_v26 = vmul.f32 %v7798_v51, %v7798_v51 }
 0x253   : > { %v5690_v9 = vpack.c.bf16 %v2186_v19, %v2185_v12  ;;  %v1932_v21 = vadd.f32 1.0, %v6152_v53  ;;  %v1300_v3 = vmul.f32 %v1172_v11, %v7790_v43  ;;  %v1174_v7 = vmul.f32 %v7804_v6, %v7804_v6 }
 0x254   : > { %v1683_v0 = vmul.f32 0.7978846, %v1555_v13  ;;  %v1426_v10 = vmul.f32 0.044715, %v1298_v54  ;;  %v1301_v15 = vmul.f32 %v1173_v61, %v7795_v14  ;;  %v1303_v18 = vmul.f32 %v1175_v26, %v7798_v51  ;;  %v1040_v13 = vpop.f32.mrf.mxu1  ;;  %v849_v54 = vpop.f32.mrf.mxu0 }
 0x255   : > { %2665 = vst [vmem:[#allocation2 + $0x148] sm:$0xff] %v5690_v9  ;;  %v2060_v17 = vmul.f32 0.5, %v1932_v21  ;;  %v1428_v32 = vmul.f32 0.044715, %v1300_v3  ;;  %v1302_v24 = vmul.f32 %v1174_v7, %v7804_v6  ;;  %v1176_v36 = vmul.f32 %v7807_v23, %v7807_v23 }
 0x256   : > { %6163 = vtanh.f32 %v1683_v0  ;;  %v1554_v28 = vadd.f32 %v1426_v10, %v7786_v41  ;;  %v1429_v39 = vmul.f32 0.044715, %v1301_v15  ;;  %v1431_v35 = vmul.f32 0.044715, %v1303_v18 }
 0x257   : > { %v6154_v55 = vpop.eup %6153  ;;  %v2188_v25 = vmul.f32 %v2060_v17, %v7717_v49  ;;  %v1556_v29 = vadd.f32 %v1428_v32, %v7790_v43  ;;  %v1430_v30 = vmul.f32 0.044715, %v1302_v24  ;;  %v1304_v20 = vmul.f32 %v1176_v36, %v7807_v23  ;;  %v851_v32 = vpop.f32.mrf.mxu0 }
 0x258   : > { %v6156_v2 = vpop.eup %6155  ;;  %v1933_v62 = vadd.f32 1.0, %v6154_v55  ;;  %v1682_v4 = vmul.f32 0.7978846, %v1554_v28  ;;  %v1557_v60 = vadd.f32 %v1429_v39, %v7795_v14  ;;  %v1559_v33 = vadd.f32 %v1431_v35, %v7798_v51 }
 0x259   : > { %v6158_v5 = vpop.eup %6157  ;;  %v5691_v8 = vpack.c.bf16 %v2188_v25, %v2187_v42  ;;  %v1935_v52 = vadd.f32 1.0, %v6156_v2  ;;  %v1684_v37 = vmul.f32 0.7978846, %v1556_v29  ;;  %v1558_v49 = vadd.f32 %v1430_v30, %v7804_v6 }
 0x25a   : > { %v6160_v12 = vpop.eup %6159  ;;  %v2061_v48 = vmul.f32 0.5, %v1933_v62  ;;  %v1934_v22 = vadd.f32 1.0, %v6158_v5  ;;  %6165 = vtanh.f32 %v1682_v4  ;;  %v1685_v50 = vmul.f32 0.7978846, %v1557_v60 }
 0x25b   : > { %2666 = vst [vmem:[#allocation2 + $0x1d0] sm:$0xff] %v5691_v8  ;;  %v2063_v16 = vmul.f32 0.5, %v1935_v52  ;;  %v1936_v44 = vadd.f32 1.0, %v6160_v12  ;;  %6167 = vtanh.f32 %v1684_v37  ;;  %v1687_v47 = vmul.f32 0.7978846, %v1559_v33 }
 0x25c   : > { %v6162_v19 = vpop.eup %6161  ;;  %v2189_v11 = vmul.f32 %v2061_v48, %v7738_v46  ;;  %v2062_v53 = vmul.f32 0.5, %v1934_v22  ;;  %6169 = vtanh.f32 %v1685_v50  ;;  %v1686_v42 = vmul.f32 0.7978846, %v1558_v49 }
 0x25d   : > { %v2191_v61 = vmul.f32 %v2063_v16, %v7741_v1  ;;  %v2064_v26 = vmul.f32 0.5, %v1936_v44  ;;  %v1937_v9 = vadd.f32 1.0, %v6162_v19  ;;  %6171 = vtanh.f32 %v1687_v47 }
 0x25e   : > { %v2190_v21 = vmul.f32 %v2062_v53, %v7744_v63  ;;  %6173 = vtanh.f32 %v1686_v42  ;;  %v1432_v3 = vmul.f32 0.044715, %v1304_v20  ;;  %v7834_v7 = vadd.f32 %v845_v27, %v7192_v56  ;;  %v1042_v27 = vpop.f32.mrf.mxu1 }
 0x25f   : > { %v2192_v0 = vmul.f32 %v2064_v26, %v7755_v31  ;;  %v2065_v46 = vmul.f32 0.5, %v1937_v9  ;;  %v7838_v10 = vadd.f32 %v1038_v40, %v7194_v57  ;;  %v7841_v15 = vadd.f32 %v847_v34, %v7196_v58 }
 0x260   : > { %v5692_v1 = vpack.c.bf16 %v2190_v21, %v2189_v11  ;;  %v1560_v18 = vadd.f32 %v1432_v3, %v7807_v23  ;;  %v1177_v63 = vmul.f32 %v7834_v7, %v7834_v7  ;;  %v7847_v17 = vadd.f32 %v1040_v13, %v7198_v59  ;;  %v1044_v42 = vpop.f32.mrf.mxu1 }
 0x261   : > { %v5693_v24 = vpack.c.bf16 %v2192_v0, %v2191_v61  ;;  %v7850_v31 = vmul.f32 %v2065_v46, %v7760_v38  ;;  %v1179_v36 = vmul.f32 %v7838_v10, %v7838_v10  ;;  %v1178_v28 = vmul.f32 %v7841_v15, %v7841_v15 }
 0x262   : > { %2667 = vst [vmem:[#allocation2 + $0x100] sm:$0xff] %v5692_v1  ;;  %v1688_v39 = vmul.f32 0.7978846, %v1560_v18  ;;  %v1305_v35 = vmul.f32 %v1177_v63, %v7834_v7  ;;  %v1180_v55 = vmul.f32 %v7847_v17, %v7847_v17  ;;  %v7860_v25 = vadd.f32 %v849_v54, %v7192_v56  ;;  %v855_v1 = vpop.f32.mrf.mxu0 }
 0x263   : > { %v6164_v29 = vpop.eup %6163  ;;  %2668 = vst [vmem:[#allocation2 + $0xc8] sm:$0xff] %v5693_v24  ;;  %v1307_v38 = vmul.f32 %v1179_v36, %v7838_v10  ;;  %v1306_v30 = vmul.f32 %v1178_v28, %v7841_v15  ;;  %v7865_v20 = vadd.f32 %v1042_v27, %v7194_v57  ;;  %v7868_v2 = vadd.f32 %v851_v32, %v7196_v58  ;;  %v1048_v28 = vpop.f32.mrf.mxu1 }
 0x264   : > { %v1939_v62 = vadd.f32 1.0, %v6164_v29  ;;  %6175 = vtanh.f32 %v1688_v39  ;;  %v1433_v4 = vmul.f32 0.044715, %v1305_v35  ;;  %v1308_v60 = vmul.f32 %v1180_v55, %v7847_v17 }
 0x265   : > { %v1435_v33 = vmul.f32 0.044715, %v1307_v38  ;;  %v1434_v40 = vmul.f32 0.044715, %v1306_v30  ;;  %v1181_v34 = vmul.f32 %v7860_v25, %v7860_v25  ;;  %v1183_v5 = vmul.f32 %v7865_v20, %v7865_v20 }
 0x266   : > { %v2067_v8 = vmul.f32 0.5, %v1939_v62  ;;  %v1561_v52 = vadd.f32 %v1433_v4, %v7834_v7  ;;  %v1436_v37 = vmul.f32 0.044715, %v1308_v60  ;;  %v1182_v49 = vmul.f32 %v7868_v2, %v7868_v2  ;;  %v857_v4 = vpop.f32.mrf.mxu0 }
 0x267   : > { %v6166_v12 = vpop.eup %6165  ;;  %v1563_v48 = vadd.f32 %v1435_v33, %v7838_v10  ;;  %v1562_v22 = vadd.f32 %v1434_v40, %v7841_v15  ;;  %v1309_v50 = vmul.f32 %v1181_v34, %v7860_v25  ;;  %v1311_v16 = vmul.f32 %v1183_v5, %v7865_v20 }
 0x268   : > { %v6168_v44 = vpop.eup %6167  ;;  %v2195_v47 = vmul.f32 %v2067_v8, %v7769_v45  ;;  %v1938_v19 = vadd.f32 1.0, %v6166_v12  ;;  %v1689_v11 = vmul.f32 0.7978846, %v1561_v52  ;;  %v1564_v53 = vadd.f32 %v1436_v37, %v7847_v17 }
 0x269   : > { %v6170_v13 = vpop.eup %6169  ;;  %v1940_v54 = vadd.f32 1.0, %v6168_v44  ;;  %v1691_v61 = vmul.f32 0.7978846, %v1563_v48  ;;  %v1690_v26 = vmul.f32 0.7978846, %v1562_v22  ;;  %v1310_v9 = vmul.f32 %v1182_v49, %v7868_v2 }
 0x26a   : > { %v6172_v21 = vpop.eup %6171  ;;  %v2066_v3 = vmul.f32 0.5, %v1938_v19  ;;  %v1941_v0 = vadd.f32 1.0, %v6170_v13  ;;  %6177 = vtanh.f32 %v1689_v11  ;;  %v1692_v46 = vmul.f32 0.7978846, %v1564_v53 }
 0x26b   : > { %v6174_v18 = vpop.eup %6173  ;;  %v2068_v63 = vmul.f32 0.5, %v1940_v54  ;;  %v1943_v45 = vadd.f32 1.0, %v6172_v21  ;;  %6179 = vtanh.f32 %v1691_v61  ;;  %v1437_v27 = vmul.f32 0.044715, %v1309_v50 }
 0x26c   : > { %v2194_v32 = vmul.f32 %v2066_v3, %v7786_v41  ;;  %v2069_v24 = vmul.f32 0.5, %v1941_v0  ;;  %v1942_v36 = vadd.f32 1.0, %v6174_v18  ;;  %6181 = vtanh.f32 %v1690_v26 }
 0x26d   : > { %v2196_v39 = vmul.f32 %v2068_v63, %v7790_v43  ;;  %v2071_v35 = vmul.f32 0.5, %v1943_v45  ;;  %6183 = vtanh.f32 %v1692_v46  ;;  %v1565_v55 = vadd.f32 %v1437_v27, %v7860_v25 }
 0x26e   : > { %v5694_v29 = vpack.c.bf16 %v2194_v32, %v7850_v31  ;;  %v2197_v38 = vmul.f32 %v2069_v24, %v7795_v14  ;;  %v2070_v30 = vmul.f32 0.5, %v1942_v36  ;;  %v1439_v62 = vmul.f32 0.044715, %v1311_v16  ;;  %v1050_v14 = vpop.f32.mrf.mxu1 }
 0x26f   : > { %v5695_v60 = vpack.c.bf16 %v2196_v39, %v2195_v47  ;;  %v2199_v41 = vmul.f32 %v2071_v35, %v7798_v51  ;;  %v1693_v33 = vmul.f32 0.7978846, %v1565_v55  ;;  %v1438_v40 = vmul.f32 0.044715, %v1310_v9  ;;  %v859_v47 = vpop.f32.mrf.mxu0 }
 0x270   : > { %2669 = vst [vmem:[#allocation2 + $0x40] sm:$0xff] %v5694_v29  ;;  %v2198_v34 = vmul.f32 %v2070_v30, %v7804_v6  ;;  %v1567_v43 = vadd.f32 %v1439_v62, %v7865_v20  ;;  %v7894_v5 = vadd.f32 %v1044_v42, %v7198_v59  ;;  %v7897_v31 = vadd.f32 %v855_v1, %v7192_v56  ;;  %v1052_v42 = vpop.f32.mrf.mxu1 }
 0x271   : > { %v6176_v8 = vpop.eup %6175  ;;  %2670 = vst [vmem:[#allocation2 + $0x1f8] sm:$0xff] %v5695_v60  ;;  %6185 = vtanh.f32 %v1693_v33  ;;  %v1566_v52 = vadd.f32 %v1438_v40, %v7868_v2  ;;  %v7901_v51 = vadd.f32 %v1048_v28, %v7194_v57  ;;  %v7904_v37 = vadd.f32 %v857_v4, %v7196_v58 }
 0x272   : > { %v5696_v6 = vpack.c.bf16 %v2198_v34, %v2197_v38  ;;  %v1944_v49 = vadd.f32 1.0, %v6176_v8  ;;  %v1695_v12 = vmul.f32 0.7978846, %v1567_v43  ;;  %v1184_v48 = vmul.f32 %v7894_v5, %v7894_v5  ;;  %v861_v8 = vpop.f32.mrf.mxu0 }
 0x273   : > { %v1694_v22 = vmul.f32 0.7978846, %v1566_v52  ;;  %v1185_v50 = vmul.f32 %v7897_v31, %v7897_v31  ;;  %v1187_v16 = vmul.f32 %v7901_v51, %v7901_v51  ;;  %v1186_v44 = vmul.f32 %v7904_v37, %v7904_v37 }
 0x274   : > { %2671 = vst [vmem:[#allocation2 + $0x20] sm:$0xff] %v5696_v6  ;;  %v2072_v19 = vmul.f32 0.5, %v1944_v49  ;;  %6187 = vtanh.f32 %v1695_v12  ;;  %v1312_v11 = vmul.f32 %v1184_v48, %v7894_v5  ;;  %v7916_v53 = vadd.f32 %v1050_v14, %v7198_v59  ;;  %v1054_v12 = vpop.f32.mrf.mxu1 }
 0x275   : > { %6189 = vtanh.f32 %v1694_v22  ;;  %v1313_v13 = vmul.f32 %v1185_v50, %v7897_v31  ;;  %v1315_v54 = vmul.f32 %v1187_v16, %v7901_v51  ;;  %v1314_v61 = vmul.f32 %v1186_v44, %v7904_v37 }
 0x276   : > { %v2200_v26 = vmul.f32 %v2072_v19, %v7807_v23  ;;  %v1440_v9 = vmul.f32 0.044715, %v1312_v11  ;;  %v1188_v21 = vmul.f32 %v7916_v53, %v7916_v53  ;;  %v7925_v3 = vadd.f32 %v859_v47, %v7192_v56 }
 0x277   : > { %v6178_v0 = vpop.eup %6177  ;;  %v1441_v46 = vmul.f32 0.044715, %v1313_v13  ;;  %v1443_v1 = vmul.f32 0.044715, %v1315_v54  ;;  %v1442_v18 = vmul.f32 0.044715, %v1314_v61  ;;  %v7928_v63 = vadd.f32 %v1052_v42, %v7194_v57 }
 0x278   : > { %v6180_v45 = vpop.eup %6179  ;;  %v5697_v27 = vpack.c.bf16 %v2200_v26, %v2199_v41  ;;  %v1945_v32 = vadd.f32 1.0, %v6178_v0  ;;  %v1568_v24 = vadd.f32 %v1440_v9, %v7894_v5  ;;  %v1316_v23 = vmul.f32 %v1188_v21, %v7916_v53 }
 0x279   : > { %v6182_v36 = vpop.eup %6181  ;;  %v1947_v28 = vadd.f32 1.0, %v6180_v45  ;;  %v1569_v39 = vadd.f32 %v1441_v46, %v7897_v31  ;;  %v1571_v35 = vadd.f32 %v1443_v1, %v7901_v51  ;;  %v1570_v55 = vadd.f32 %v1442_v18, %v7904_v37 }
 0x27a   : > { %v6184_v29 = vpop.eup %6183  ;;  %2672 = vst [vmem:[#allocation2 + $0x128] sm:$0xff] %v5697_v27  ;;  %v2073_v38 = vmul.f32 0.5, %v1945_v32  ;;  %v1946_v30 = vadd.f32 1.0, %v6182_v36  ;;  %v1696_v62 = vmul.f32 0.7978846, %v1568_v24  ;;  %v1189_v50 = vmul.f32 %v7925_v3, %v7925_v3 }
 0x27b   : > { %v1444_v4 = vmul.f32 0.044715, %v1316_v23  ;;  %v2075_v60 = vmul.f32 0.5, %v1947_v28  ;;  %v1948_v41 = vadd.f32 1.0, %v6184_v29  ;;  %v1697_v33 = vmul.f32 0.7978846, %v1569_v39 }
 0x27c   : > { %v1699_v40 = vmul.f32 0.7978846, %v1571_v35  ;;  %v2201_v34 = vmul.f32 %v2073_v38, %v7834_v7  ;;  %v2074_v43 = vmul.f32 0.5, %v1946_v30  ;;  %6191 = vtanh.f32 %v1696_v62 }
 0x27d   : > { %v1698_v14 = vmul.f32 0.7978846, %v1570_v55  ;;  %v2203_v52 = vmul.f32 %v2075_v60, %v7838_v10  ;;  %v2076_v6 = vmul.f32 0.5, %v1948_v41  ;;  %6193 = vtanh.f32 %v1697_v33 }
 0x27e   : > { %v1572_v49 = vadd.f32 %v1444_v4, %v7916_v53  ;;  %v6186_v48 = vpop.eup %6185  ;;  %v2202_v22 = vmul.f32 %v2074_v43, %v7841_v15  ;;  %6195 = vtanh.f32 %v1699_v40  ;;  %v1191_v7 = vmul.f32 %v7928_v63, %v7928_v63  ;;  %v865_v15 = vpop.f32.mrf.mxu0 }
 0x27f   : > { %v2204_v16 = vmul.f32 %v2076_v6, %v7847_v17  ;;  %v1949_v44 = vadd.f32 1.0, %v6186_v48  ;;  %6197 = vtanh.f32 %v1698_v14  ;;  %v1317_v19 = vmul.f32 %v1189_v50, %v7925_v3  ;;  %v1058_v17 = vpop.f32.mrf.mxu1 }
 0x280   : > { %v1700_v10 = vmul.f32 0.7978846, %v1572_v49  ;;  %v5698_v47 = vpack.c.bf16 %v2202_v22, %v2201_v34  ;;  %v1319_v11 = vmul.f32 %v1191_v7, %v7928_v63  ;;  %v7947_v42 = vadd.f32 %v861_v8, %v7196_v58  ;;  %v867_v29 = vpop.f32.mrf.mxu0 }
 0x281   : > { %v6188_v13 = vpop.eup %6187  ;;  %v5699_v54 = vpack.c.bf16 %v2204_v16, %v2203_v52  ;;  %v2077_v61 = vmul.f32 0.5, %v1949_v44  ;;  %v7950_v26 = vadd.f32 %v1054_v12, %v7198_v59  ;;  %v1445_v0 = vmul.f32 0.044715, %v1317_v19  ;;  %v1060_v38 = vpop.f32.mrf.mxu1 }
 0x282   : > { %6199 = vtanh.f32 %v1700_v10  ;;  %v6190_v9 = vpop.eup %6189  ;;  %2673 = vst [vmem:[#allocation2 + $0x1a0] sm:$0xff] %v5698_v47  ;;  %v1951_v21 = vadd.f32 1.0, %v6188_v13  ;;  %v1447_v46 = vmul.f32 0.044715, %v1319_v11  ;;  %v1190_v1 = vmul.f32 %v7947_v42, %v7947_v42  ;;  %v869_v7 = vpop.f32.mrf.mxu0 }
 0x283   : > { %2674 = vst [vmem:[#allocation2 + $0x1f0] sm:$0xff] %v5699_v54  ;;  %v2205_v18 = vmul.f32 %v2077_v61, %v7860_v25  ;;  %v1950_v45 = vadd.f32 1.0, %v6190_v9  ;;  %v1192_v27 = vmul.f32 %v7950_v26, %v7950_v26  ;;  %v7958_v32 = vadd.f32 %v865_v15, %v7192_v56 }
 0x284   : > { %v2079_v24 = vmul.f32 0.5, %v1951_v21  ;;  %v1573_v23 = vadd.f32 %v1445_v0, %v7925_v3  ;;  %v1575_v36 = vadd.f32 %v1447_v46, %v7928_v63  ;;  %v1318_v28 = vmul.f32 %v1190_v1, %v7947_v42  ;;  %v1062_v21 = vpop.f32.mrf.mxu1 }
 0x285   : > { %v2078_v39 = vmul.f32 0.5, %v1950_v45  ;;  %v1320_v35 = vmul.f32 %v1192_v27, %v7950_v26  ;;  %v1193_v25 = vmul.f32 %v7958_v32, %v7958_v32  ;;  %v7967_v55 = vadd.f32 %v1058_v17, %v7194_v57  ;;  %v871_v27 = vpop.f32.mrf.mxu0 }
 0x286   : > { %v2207_v30 = vmul.f32 %v2079_v24, %v7865_v20  ;;  %v1701_v62 = vmul.f32 0.7978846, %v1573_v23  ;;  %v1703_v4 = vmul.f32 0.7978846, %v1575_v36  ;;  %v1446_v60 = vmul.f32 0.044715, %v1318_v28 }
 0x287   : > { %v2206_v41 = vmul.f32 %v2078_v39, %v7868_v2  ;;  %v1448_v33 = vmul.f32 0.044715, %v1320_v35  ;;  %v1321_v40 = vmul.f32 %v1193_v25, %v7958_v32  ;;  %v1195_v34 = vmul.f32 %v7967_v55, %v7967_v55 }
 0x288   : > { %6201 = vtanh.f32 %v1701_v62  ;;  %v1574_v43 = vadd.f32 %v1446_v60, %v7947_v42  ;;  %v7976_v14 = vadd.f32 %v867_v29, %v7196_v58  ;;  %v7979_v8 = vadd.f32 %v1060_v38, %v7198_v59 }
 0x289   : > { %v6192_v20 = vpop.eup %6191  ;;  %v5700_v52 = vpack.c.bf16 %v2206_v41, %v2205_v18  ;;  %6203 = vtanh.f32 %v1703_v4  ;;  %v1576_v2 = vadd.f32 %v1448_v33, %v7950_v26  ;;  %v1449_v6 = vmul.f32 0.044715, %v1321_v40  ;;  %v1064_v4 = vpop.f32.mrf.mxu1 }
 0x28a   : > { %v6194_v49 = vpop.eup %6193  ;;  %v1952_v12 = vadd.f32 1.0, %v6192_v20  ;;  %v1702_v48 = vmul.f32 0.7978846, %v1574_v43  ;;  %v1323_v22 = vmul.f32 %v1195_v34, %v7967_v55  ;;  %v1194_v50 = vmul.f32 %v7976_v14, %v7976_v14 }
 0x28b   : > { %v6196_v16 = vpop.eup %6195  ;;  %2675 = vst [vmem:[#allocation2 + $0xe8] sm:$0xff] %v5700_v52  ;;  %v1953_v44 = vadd.f32 1.0, %v6194_v49  ;;  %v1704_v10 = vmul.f32 0.7978846, %v1576_v2  ;;  %v1577_v47 = vadd.f32 %v1449_v6, %v7958_v32  ;;  %v1196_v19 = vmul.f32 %v7979_v8, %v7979_v8 }
 0x28c   : > { %v6198_v11 = vpop.eup %6197  ;;  %v2080_v15 = vmul.f32 0.5, %v1952_v12  ;;  %v1955_v13 = vadd.f32 1.0, %v6196_v16  ;;  %6205 = vtanh.f32 %v1702_v48  ;;  %v1451_v54 = vmul.f32 0.044715, %v1323_v22 }
 0x28d   : > { %v2081_v61 = vmul.f32 0.5, %v1953_v44  ;;  %v1954_v17 = vadd.f32 1.0, %v6198_v11  ;;  %6207 = vtanh.f32 %v1704_v10  ;;  %v1705_v9 = vmul.f32 0.7978846, %v1577_v47 }
 0x28e   : > { %v2208_v46 = vmul.f32 %v2080_v15, %v7894_v5  ;;  %v2083_v1 = vmul.f32 0.5, %v1955_v13  ;;  %v1579_v18 = vadd.f32 %v1451_v54, %v7967_v55  ;;  %v1322_v45 = vmul.f32 %v1194_v50, %v7976_v14 }
 0x28f   : > { %v6200_v0 = vpop.eup %6199  ;;  %v2209_v24 = vmul.f32 %v2081_v61, %v7897_v31  ;;  %v2082_v23 = vmul.f32 0.5, %v1954_v17  ;;  %6209 = vtanh.f32 %v1705_v9  ;;  %v1324_v5 = vmul.f32 %v1196_v19, %v7979_v8  ;;  %v1068_v19 = vpop.f32.mrf.mxu1 }
 0x290   : > { %v1956_v36 = vadd.f32 1.0, %v6200_v0  ;;  %v5701_v28 = vpack.c.bf16 %v2208_v46, %v2207_v30  ;;  %v2211_v39 = vmul.f32 %v2083_v1, %v7901_v51  ;;  %v1707_v35 = vmul.f32 0.7978846, %v1579_v18  ;;  %v875_v30 = vpop.f32.mrf.mxu0 }
 0x291   : > { %v1450_v25 = vmul.f32 0.044715, %v1322_v45  ;;  %v2210_v29 = vmul.f32 %v2082_v23, %v7904_v37  ;;  %v7996_v62 = vadd.f32 %v869_v7, %v7192_v56  ;;  %v8000_v60 = vadd.f32 %v1062_v21, %v7194_v57 }
 0x292   : > { %v2084_v38 = vmul.f32 0.5, %v1956_v36  ;;  %2676 = vst [vmem:[#allocation2 + $0x78] sm:$0xff] %v5701_v28  ;;  %6211 = vtanh.f32 %v1707_v35  ;;  %v8003_v51 = vadd.f32 %v871_v27, %v7196_v58  ;;  %v1452_v33 = vmul.f32 0.044715, %v1324_v5  ;;  %v877_v61 = vpop.f32.mrf.mxu0 }
 0x293   : > { %v1578_v31 = vadd.f32 %v1450_v25, %v7976_v14  ;;  %v5702_v41 = vpack.c.bf16 %v2210_v29, %v2209_v24  ;;  %v1197_v40 = vmul.f32 %v7996_v62, %v7996_v62  ;;  %v1199_v43 = vmul.f32 %v8000_v60, %v8000_v60 }
 0x294   : > { %v2212_v37 = vmul.f32 %v2084_v38, %v7916_v53  ;;  %v1198_v20 = vmul.f32 %v8003_v51, %v8003_v51  ;;  %v8013_v52 = vadd.f32 %v1064_v4, %v7198_v59  ;;  %v1580_v49 = vadd.f32 %v1452_v33, %v7979_v8  ;;  %v879_v4 = vpop.f32.mrf.mxu0 }
 0x295   : > { %v1706_v34 = vmul.f32 0.7978846, %v1578_v31  ;;  %v6202_v2 = vpop.eup %6201  ;;  %2677 = vst [vmem:[#allocation2 + $0x70] sm:$0xff] %v5702_v41  ;;  %v1325_v53 = vmul.f32 %v1197_v40, %v7996_v62  ;;  %v8018_v12 = vadd.f32 %v875_v30, %v7192_v56  ;;  %v1327_v50 = vmul.f32 %v1199_v43, %v8000_v60 }
 0x296   : > { %v5703_v6 = vpack.c.bf16 %v2212_v37, %v2211_v39  ;;  %v6204_v48 = vpop.eup %6203  ;;  %v1957_v22 = vadd.f32 1.0, %v6202_v2  ;;  %v1326_v7 = vmul.f32 %v1198_v20, %v8003_v51  ;;  %v1708_v44 = vmul.f32 0.7978846, %v1580_v49  ;;  %v1070_v39 = vpop.f32.mrf.mxu1 }
 0x297   : > { %6213 = vtanh.f32 %v1706_v34  ;;  %v1959_v16 = vadd.f32 1.0, %v6204_v48  ;;  %v1453_v10 = vmul.f32 0.044715, %v1325_v53  ;;  %v1200_v47 = vmul.f32 %v8013_v52, %v8013_v52 }
 0x298   : > { %2678 = vst [vmem:[#allocation2 + $0x90] sm:$0xff] %v5703_v6  ;;  %v2085_v11 = vmul.f32 0.5, %v1957_v22  ;;  %v1455_v15 = vmul.f32 0.044715, %v1327_v50  ;;  %v1454_v13 = vmul.f32 0.044715, %v1326_v7  ;;  %v1201_v54 = vmul.f32 %v8018_v12, %v8018_v12  ;;  %v1072_v20 = vpop.f32.mrf.mxu1 }
 0x299   : > { %v6206_v17 = vpop.eup %6205  ;;  %v2087_v9 = vmul.f32 0.5, %v1959_v16  ;;  %6215 = vtanh.f32 %v1708_v44  ;;  %v1581_v21 = vadd.f32 %v1453_v10, %v7996_v62  ;;  %v1328_v0 = vmul.f32 %v1200_v47, %v8013_v52 }
 0x29a   : > { %v6208_v46 = vpop.eup %6207  ;;  %v2213_v1 = vmul.f32 %v2085_v11, %v7925_v3  ;;  %v1958_v18 = vadd.f32 1.0, %v6206_v17  ;;  %v1583_v45 = vadd.f32 %v1455_v15, %v8000_v60  ;;  %v1582_v27 = vadd.f32 %v1454_v13, %v8003_v51  ;;  %v1074_v15 = vpop.f32.mrf.mxu1 }
 0x29b   : > { %v2215_v24 = vmul.f32 %v2087_v9, %v7928_v63  ;;  %v1960_v23 = vadd.f32 1.0, %v6208_v46  ;;  %v1709_v36 = vmul.f32 0.7978846, %v1581_v21  ;;  %v1456_v28 = vmul.f32 0.044715, %v1328_v0 }
 0x29c   : > { %v6210_v35 = vpop.eup %6209  ;;  %v2086_v25 = vmul.f32 0.5, %v1958_v18  ;;  %v1711_v29 = vmul.f32 0.7978846, %v1583_v45  ;;  %v1710_v38 = vmul.f32 0.7978846, %v1582_v27  ;;  %v1329_v5 = vmul.f32 %v1201_v54, %v8018_v12 }
 0x29d   : > { %v2088_v31 = vmul.f32 0.5, %v1960_v23  ;;  %v1961_v3 = vadd.f32 1.0, %v6210_v35  ;;  %6217 = vtanh.f32 %v1709_v36  ;;  %v1584_v30 = vadd.f32 %v1456_v28, %v8013_v52 }
 0x29e   : > { %v2214_v41 = vmul.f32 %v2086_v25, %v7947_v42  ;;  %6219 = vtanh.f32 %v1711_v29  ;;  %v1457_v63 = vmul.f32 0.044715, %v1329_v5  ;;  %v8036_v37 = vadd.f32 %v1068_v19, %v7194_v57  ;;  %v881_v42 = vpop.f32.mrf.mxu0 }
 0x29f   : > { %v6212_v33 = vpop.eup %6211  ;;  %v2216_v40 = vmul.f32 %v2088_v31, %v7950_v26  ;;  %v2089_v34 = vmul.f32 0.5, %v1961_v3  ;;  %6221 = vtanh.f32 %v1710_v38  ;;  %v1712_v43 = vmul.f32 0.7978846, %v1584_v30 }
 0x2a0   : > { %v5704_v2 = vpack.c.bf16 %v2214_v41, %v2213_v1  ;;  %v1963_v6 = vadd.f32 1.0, %v6212_v33  ;;  %v1585_v49 = vadd.f32 %v1457_v63, %v8018_v12  ;;  %v1203_v53 = vmul.f32 %v8036_v37, %v8036_v37  ;;  %v885_v63 = vpop.f32.mrf.mxu0 }
 0x2a1   : > { %v5705_v48 = vpack.c.bf16 %v2216_v40, %v2215_v24  ;;  %v2217_v22 = vmul.f32 %v2089_v34, %v7958_v32  ;;  %6223 = vtanh.f32 %v1712_v43  ;;  %v8044_v50 = vadd.f32 %v877_v61, %v7196_v58 }
 0x2a2   : > { %2679 = vst [vmem:[#allocation2 + $0x1d8] sm:$0xff] %v5704_v2  ;;  %v2091_v26 = vmul.f32 0.5, %v1963_v6  ;;  %v1713_v7 = vmul.f32 0.7978846, %v1585_v49  ;;  %v1331_v16 = vmul.f32 %v1203_v53, %v8036_v37  ;;  %v8048_v44 = vadd.f32 %v1070_v39, %v7198_v59 }
 0x2a3   : > { %2680 = vst [vmem:[#allocation2 + $0xd0] sm:$0xff] %v5705_v48  ;;  %v1202_v47 = vmul.f32 %v8044_v50, %v8044_v50  ;;  %v8053_v19 = vadd.f32 %v879_v4, %v7192_v56  ;;  %v8056_v32 = vadd.f32 %v1072_v20, %v7194_v57  ;;  %v8059_v11 = vadd.f32 %v881_v42, %v7196_v58  ;;  %v1078_v42 = vpop.f32.mrf.mxu1 }
 0x2a4   : > { %v6214_v10 = vpop.eup %6213  ;;  %v2219_v13 = vmul.f32 %v2091_v26, %v7967_v55  ;;  %6225 = vtanh.f32 %v1713_v7  ;;  %v1459_v61 = vmul.f32 0.044715, %v1331_v16  ;;  %v1204_v9 = vmul.f32 %v8048_v44, %v8048_v44 }
 0x2a5   : > { %v1962_v54 = vadd.f32 1.0, %v6214_v10  ;;  %v1330_v17 = vmul.f32 %v1202_v47, %v8044_v50  ;;  %v1205_v21 = vmul.f32 %v8053_v19, %v8053_v19  ;;  %v1207_v0 = vmul.f32 %v8056_v32, %v8056_v32 }
 0x2a6   : > { %v6216_v46 = vpop.eup %6215  ;;  %v1587_v18 = vadd.f32 %v1459_v61, %v8036_v37  ;;  %v1206_v55 = vmul.f32 %v8059_v11, %v8059_v11  ;;  %v8073_v45 = vadd.f32 %v1074_v15, %v7198_v59  ;;  %v1332_v23 = vmul.f32 %v1204_v9, %v8048_v44  ;;  %v887_v15 = vpop.f32.mrf.mxu0 }
 0x2a7   : > { %v2090_v1 = vmul.f32 0.5, %v1962_v54  ;;  %v1964_v27 = vadd.f32 1.0, %v6216_v46  ;;  %v1458_v24 = vmul.f32 0.044715, %v1330_v17  ;;  %v1333_v36 = vmul.f32 %v1205_v21, %v8053_v19  ;;  %v1080_v46 = vpop.f32.mrf.mxu1 }
 0x2a8   : > { %v1715_v39 = vmul.f32 0.7978846, %v1587_v18  ;;  %v1335_v35 = vmul.f32 %v1207_v0, %v8056_v32  ;;  %v1334_v25 = vmul.f32 %v1206_v55, %v8059_v11  ;;  %v1460_v5 = vmul.f32 0.044715, %v1332_v23 }
 0x2a9   : > { %v2218_v28 = vmul.f32 %v2090_v1, %v7976_v14  ;;  %v2092_v29 = vmul.f32 0.5, %v1964_v27  ;;  %v1586_v38 = vadd.f32 %v1458_v24, %v8044_v50  ;;  %v1461_v4 = vmul.f32 0.044715, %v1333_v36 }
 0x2aa   : > { %v6218_v31 = vpop.eup %6217  ;;  %6227 = vtanh.f32 %v1715_v39  ;;  %v1463_v30 = vmul.f32 0.044715, %v1335_v35  ;;  %v1462_v41 = vmul.f32 0.044715, %v1334_v25  ;;  %v1588_v43 = vadd.f32 %v1460_v5, %v8048_v44 }
 0x2ab   : > { %v5706_v3 = vpack.c.bf16 %v2218_v28, %v2217_v22  ;;  %v6220_v33 = vpop.eup %6219  ;;  %v2220_v40 = vmul.f32 %v2092_v29, %v7979_v8  ;;  %v1965_v14 = vadd.f32 1.0, %v6218_v31  ;;  %v1714_v34 = vmul.f32 0.7978846, %v1586_v38  ;;  %v1082_v38 = vpop.f32.mrf.mxu1 }
 0x2ac   : > { %v6222_v20 = vpop.eup %6221  ;;  %v1967_v2 = vadd.f32 1.0, %v6220_v33  ;;  %v1589_v6 = vadd.f32 %v1461_v4, %v8053_v19  ;;  %v1591_v49 = vadd.f32 %v1463_v30, %v8056_v32  ;;  %v1590_v53 = vadd.f32 %v1462_v41, %v8059_v11 }
 0x2ad   : > { %2681 = vst [vmem:[#allocation2 + $0xb8] sm:$0xff] %v5706_v3  ;;  %v5707_v48 = vpack.c.bf16 %v2220_v40, %v2219_v13  ;;  %v2093_v22 = vmul.f32 0.5, %v1965_v14  ;;  %v1966_v26 = vadd.f32 1.0, %v6222_v20  ;;  %6229 = vtanh.f32 %v1714_v34 }
 0x2ae   : > { %v6224_v7 = vpop.eup %6223  ;;  %v2095_v8 = vmul.f32 0.5, %v1967_v2  ;;  %v1716_v16 = vmul.f32 0.7978846, %v1588_v43  ;;  %v1717_v10 = vmul.f32 0.7978846, %v1589_v6  ;;  %v1208_v47 = vmul.f32 %v8073_v45, %v8073_v45 }
 0x2af   : > { %2682 = vst [vmem:[#allocation2 + $0x88] sm:$0xff] %v5707_v48  ;;  %v2221_v54 = vmul.f32 %v2093_v22, %v7996_v62  ;;  %v2094_v61 = vmul.f32 0.5, %v1966_v26  ;;  %v1968_v17 = vadd.f32 1.0, %v6224_v7  ;;  %v1719_v9 = vmul.f32 0.7978846, %v1591_v49 }
 0x2b0   : > { %v2223_v21 = vmul.f32 %v2095_v8, %v8000_v60  ;;  %6231 = vtanh.f32 %v1716_v16  ;;  %v1718_v13 = vmul.f32 0.7978846, %v1590_v53  ;;  %v1336_v0 = vmul.f32 %v1208_v47, %v8073_v45  ;;  %v889_v60 = vpop.f32.mrf.mxu0 }
 0x2b1   : > { %v6226_v1 = vpop.eup %6225  ;;  %v2222_v18 = vmul.f32 %v2094_v61, %v8003_v51  ;;  %v2096_v55 = vmul.f32 0.5, %v1968_v17  ;;  %6233 = vtanh.f32 %v1717_v10  ;;  %v8093_v27 = vadd.f32 %v885_v63, %v7192_v56  ;;  %v1084_v61 = vpop.f32.mrf.mxu1 }
 0x2b2   : > { %v1969_v24 = vadd.f32 1.0, %v6226_v1  ;;  %6235 = vtanh.f32 %v1719_v9  ;;  %v1464_v62 = vmul.f32 0.044715, %v1336_v0  ;;  %v8096_v23 = vadd.f32 %v1078_v42, %v7194_v57 }
 0x2b3   : > { %v5708_v36 = vpack.c.bf16 %v2222_v18, %v2221_v54  ;;  %v2224_v28 = vmul.f32 %v2096_v55, %v8013_v52  ;;  %6237 = vtanh.f32 %v1718_v13  ;;  %v1209_v39 = vmul.f32 %v8093_v27, %v8093_v27 }
 0x2b4   : > { %v2097_v51 = vmul.f32 0.5, %v1969_v24  ;;  %v1592_v35 = vadd.f32 %v1464_v62, %v8073_v45  ;;  %v1211_v25 = vmul.f32 %v8096_v23, %v8096_v23  ;;  %v8105_v29 = vadd.f32 %v887_v15, %v7196_v58 }
 0x2b5   : > { %2683 = vst [vmem:[#allocation2 + $0xa8] sm:$0xff] %v5708_v36  ;;  %v5709_v5 = vpack.c.bf16 %v2224_v28, %v2223_v21  ;;  %v1337_v4 = vmul.f32 %v1209_v39, %v8093_v27  ;;  %v8109_v52 = vadd.f32 %v1080_v46, %v7198_v59  ;;  %v8112_v31 = vadd.f32 %v889_v60, %v7192_v56 }
 0x2b6   : > { %v8115_v3 = vmul.f32 %v2097_v51, %v8018_v12  ;;  %v1720_v30 = vmul.f32 0.7978846, %v1592_v35  ;;  %v1339_v41 = vmul.f32 %v1211_v25, %v8096_v23  ;;  %v1210_v63 = vmul.f32 %v8105_v29, %v8105_v29  ;;  %v891_v12 = vpop.f32.mrf.mxu0  ;;  %v1088_v25 = vpop.f32.mrf.mxu1 }
 0x2b7   : > { %v6228_v33 = vpop.eup %6227  ;;  %2684 = vst [vmem:[#allocation2 + $0x1c8] sm:$0xff] %v5709_v5  ;;  %v1465_v40 = vmul.f32 0.044715, %v1337_v4  ;;  %v1212_v14 = vmul.f32 %v8109_v52, %v8109_v52  ;;  %v1213_v34 = vmul.f32 %v8112_v31, %v8112_v31  ;;  %v8125_v43 = vadd.f32 %v1082_v38, %v7194_v57 }
 0x2b8   : > { %v1971_v20 = vadd.f32 1.0, %v6228_v33  ;;  %6239 = vtanh.f32 %v1720_v30  ;;  %v1467_v2 = vmul.f32 0.044715, %v1339_v41  ;;  %v1338_v6 = vmul.f32 %v1210_v63, %v8105_v29  ;;  %v895_v36 = vpop.f32.mrf.mxu0 }
 0x2b9   : > { %v1593_v49 = vadd.f32 %v1465_v40, %v8093_v27  ;;  %v1340_v53 = vmul.f32 %v1212_v14, %v8109_v52  ;;  %v1341_v42 = vmul.f32 %v1213_v34, %v8112_v31  ;;  %v1215_v48 = vmul.f32 %v8125_v43, %v8125_v43 }
 0x2ba   : > { %v6230_v22 = vpop.eup %6229  ;;  %v2099_v26 = vmul.f32 0.5, %v1971_v20  ;;  %v1595_v7 = vadd.f32 %v1467_v2, %v8096_v23  ;;  %v1466_v8 = vmul.f32 0.044715, %v1338_v6  ;;  %v8135_v16 = vadd.f32 %v891_v12, %v7196_v58  ;;  %v897_v34 = vpop.f32.mrf.mxu0 }
 0x2bb   : > { %v1970_v10 = vadd.f32 1.0, %v6230_v22  ;;  %v1721_v47 = vmul.f32 0.7978846, %v1593_v49  ;;  %v1468_v15 = vmul.f32 0.044715, %v1340_v53  ;;  %v1343_v54 = vmul.f32 %v1215_v48, %v8125_v43 }
 0x2bc   : > { %v2227_v17 = vmul.f32 %v2099_v26, %v8036_v37  ;;  %v1723_v9 = vmul.f32 0.7978846, %v1595_v7  ;;  %v1594_v21 = vadd.f32 %v1466_v8, %v8105_v29  ;;  %v1469_v13 = vmul.f32 0.044715, %v1341_v42 }
 0x2bd   : > { %v6232_v0 = vpop.eup %6231  ;;  %v2098_v46 = vmul.f32 0.5, %v1970_v10  ;;  %6241 = vtanh.f32 %v1721_v47  ;;  %v1596_v1 = vadd.f32 %v1468_v15, %v8109_v52  ;;  %v1471_v18 = vmul.f32 0.044715, %v1343_v54 }
 0x2be   : > { %v6234_v55 = vpop.eup %6233  ;;  %v1972_v24 = vadd.f32 1.0, %v6232_v0  ;;  %6243 = vtanh.f32 %v1723_v9  ;;  %v1722_v62 = vmul.f32 0.7978846, %v1594_v21  ;;  %v1597_v60 = vadd.f32 %v1469_v13, %v8112_v31 }
 0x2bf   : > { %v6236_v28 = vpop.eup %6235  ;;  %v2226_v37 = vmul.f32 %v2098_v46, %v8044_v50  ;;  %v1973_v39 = vadd.f32 1.0, %v6234_v55  ;;  %v1724_v51 = vmul.f32 0.7978846, %v1596_v1  ;;  %v1599_v35 = vadd.f32 %v1471_v18, %v8125_v43 }
 0x2c0   : > { %v6238_v38 = vpop.eup %6237  ;;  %v2100_v5 = vmul.f32 0.5, %v1972_v24  ;;  %v1975_v4 = vadd.f32 1.0, %v6236_v28  ;;  %6245 = vtanh.f32 %v1722_v62  ;;  %v1725_v30 = vmul.f32 0.7978846, %v1597_v60 }
 0x2c1   : > { %v5710_v41 = vpack.c.bf16 %v2226_v37, %v8115_v3  ;;  %v2101_v63 = vmul.f32 0.5, %v1973_v39  ;;  %v1974_v33 = vadd.f32 1.0, %v6238_v38  ;;  %6247 = vtanh.f32 %v1724_v51  ;;  %v1090_v3 = vpop.f32.mrf.mxu1 }
 0x2c2   : > { %v2228_v40 = vmul.f32 %v2100_v5, %v8048_v44  ;;  %v2103_v14 = vmul.f32 0.5, %v1975_v4  ;;  %6249 = vtanh.f32 %v1725_v30  ;;  %v1727_v50 = vmul.f32 0.7978846, %v1599_v35 }
 0x2c3   : > { %2685 = vst [vmem:[#allocation2 + $0x170] sm:$0xff] %v5710_v41  ;;  %v2229_v12 = vmul.f32 %v2101_v63, %v8053_v19  ;;  %v2102_v20 = vmul.f32 0.5, %v1974_v33  ;;  %v1214_v2 = vmul.f32 %v8135_v16, %v8135_v16  ;;  %v8150_v6 = vadd.f32 %v1084_v61, %v7198_v59 }
 0x2c4   : > { %v5711_v49 = vpack.c.bf16 %v2228_v40, %v2227_v17  ;;  %v2231_v53 = vmul.f32 %v2103_v14, %v8056_v32  ;;  %6251 = vtanh.f32 %v1727_v50  ;;  %v8154_v44 = vadd.f32 %v895_v36, %v7192_v56 }
 0x2c5   : > { %v6240_v42 = vpop.eup %6239  ;;  %v2230_v48 = vmul.f32 %v2102_v20, %v8059_v11  ;;  %v1342_v19 = vmul.f32 %v1214_v2, %v8135_v16  ;;  %v1216_v22 = vmul.f32 %v8150_v6, %v8150_v6  ;;  %v8161_v26 = vadd.f32 %v1088_v25, %v7194_v57  ;;  %v899_v11 = vpop.f32.mrf.mxu0 }
 0x2c6   : > { %2686 = vst [vmem:[#allocation2 + $0x178] sm:$0xff] %v5711_v49  ;;  %v1976_v7 = vadd.f32 1.0, %v6240_v42  ;;  %v1217_v32 = vmul.f32 %v8154_v44, %v8154_v44  ;;  %v8166_v8 = vadd.f32 %v897_v34, %v7196_v58  ;;  %v8169_v10 = vadd.f32 %v1090_v3, %v7198_v59  ;;  %v1092_v2 = vpop.f32.mrf.mxu1 }
 0x2c7   : > { %v5712_v47 = vpack.c.bf16 %v2230_v48, %v2229_v12  ;;  %v1470_v15 = vmul.f32 0.044715, %v1342_v19  ;;  %v1344_v54 = vmul.f32 %v1216_v22, %v8150_v6  ;;  %v1219_v61 = vmul.f32 %v8161_v26, %v8161_v26 }
 0x2c8   : > { %v2104_v17 = vmul.f32 0.5, %v1976_v7  ;;  %v1345_v9 = vmul.f32 %v1217_v32, %v8154_v44  ;;  %v1218_v21 = vmul.f32 %v8166_v8, %v8166_v8  ;;  %v1220_v13 = vmul.f32 %v8169_v10, %v8169_v10 }
 0x2c9   : > { %2687 = vst [vmem:[#allocation2 + $0x68] sm:$0xff] %v5712_v47  ;;  %v1598_v0 = vadd.f32 %v1470_v15, %v8135_v16  ;;  %v1472_v46 = vmul.f32 0.044715, %v1344_v54  ;;  %v1347_v1 = vmul.f32 %v1219_v61, %v8161_v26  ;;  %v8182_v18 = vadd.f32 %v899_v11, %v7192_v56  ;;  %v901_v11 = vpop.f32.mrf.mxu0  ;;  %v1094_v61 = vpop.f32.mrf.mxu1 }
 0x2ca   : > { %v6242_v55 = vpop.eup %6241  ;;  %v2232_v24 = vmul.f32 %v2104_v17, %v8073_v45  ;;  %v1473_v62 = vmul.f32 0.044715, %v1345_v9  ;;  %v1346_v60 = vmul.f32 %v1218_v21, %v8166_v8  ;;  %v1348_v36 = vmul.f32 %v1220_v13, %v8169_v10 }
 0x2cb   : > { %v6244_v28 = vpop.eup %6243  ;;  %v1977_v37 = vadd.f32 1.0, %v6242_v55  ;;  %v1726_v39 = vmul.f32 0.7978846, %v1598_v0  ;;  %v1600_v51 = vadd.f32 %v1472_v46, %v8150_v6  ;;  %v1475_v35 = vmul.f32 0.044715, %v1347_v1 }
 0x2cc   : > { %v5713_v25 = vpack.c.bf16 %v2232_v24, %v2231_v53  ;;  %v1979_v38 = vadd.f32 1.0, %v6244_v28  ;;  %v1601_v5 = vadd.f32 %v1473_v62, %v8154_v44  ;;  %v1474_v56 = vmul.f32 0.044715, %v1346_v60 }
 0x2cd   : > { %v6246_v4 = vpop.eup %6245  ;;  %v2105_v30 = vmul.f32 0.5, %v1977_v37  ;;  %6253 = vtanh.f32 %v1726_v39  ;;  %v1728_v45 = vmul.f32 0.7978846, %v1600_v51  ;;  %v1603_v41 = vadd.f32 %v1475_v35, %v8161_v26 }
 0x2ce   : > { %v6248_v63 = vpop.eup %6247  ;;  %2688 = vst [vmem:[#allocation2 + $0x190] sm:$0xff] %v5713_v25  ;;  %v2107_v33 = vmul.f32 0.5, %v1979_v38  ;;  %v1978_v40 = vadd.f32 1.0, %v6246_v4  ;;  %v1729_v14 = vmul.f32 0.7978846, %v1601_v5  ;;  %v1602_v50 = vadd.f32 %v1474_v56, %v8166_v8 }
 0x2cf   : > { %v6250_v34 = vpop.eup %6249  ;;  %v1980_v12 = vadd.f32 1.0, %v6248_v63  ;;  %6255 = vtanh.f32 %v1728_v45  ;;  %v1731_v20 = vmul.f32 0.7978846, %v1603_v41  ;;  %v1476_v48 = vmul.f32 0.044715, %v1348_v36 }
 0x2d0   : > { %v2106_v3 = vmul.f32 0.5, %v1978_v40  ;;  %6257 = vtanh.f32 %v1729_v14  ;;  %v1730_v42 = vmul.f32 0.7978846, %v1602_v50  ;;  %v2233_v19 = vmul.f32 %v2105_v30, %v8093_v27 }
 0x2d1   : > { %v6252_v49 = vpop.eup %6251  ;;  %v2108_v53 = vmul.f32 0.5, %v1980_v12  ;;  %6259 = vtanh.f32 %v1731_v20  ;;  %v2235_v22 = vmul.f32 %v2107_v33, %v8096_v23  ;;  %v1221_v32 = vmul.f32 %v8182_v18, %v8182_v18 }
 0x2d2   : > { %v2234_v7 = vmul.f32 %v2106_v3, %v8105_v29  ;;  %6261 = vtanh.f32 %v1730_v42  ;;  %v1604_v15 = vadd.f32 %v1476_v48, %v8169_v10  ;;  %v8199_v54 = vadd.f32 %v1092_v2, %v7194_v57 }
 0x2d3   : > { %v2236_v47 = vmul.f32 %v2108_v53, %v8109_v52  ;;  %v1349_v27 = vmul.f32 %v1221_v32, %v8182_v18  ;;  %v8205_v21 = vadd.f32 %v901_v11, %v7196_v58  ;;  %v8208_v13 = vadd.f32 %v1094_v61, %v7198_v59 }
 0x2d4   : > { %v5714_v17 = vpack.c.bf16 %v2234_v7, %v2233_v19  ;;  %v1732_v23 = vmul.f32 0.7978846, %v1604_v15  ;;  %v1223_v29 = vmul.f32 %v8199_v54, %v8199_v54  ;;  %v1981_v57 = vadd.f32 1.0, %v6250_v34 }
 0x2d5   : > { %v5715_v9 = vpack.c.bf16 %v2236_v47, %v2235_v22  ;;  %v1477_v52 = vmul.f32 0.044715, %v1349_v27  ;;  %v1222_v46 = vmul.f32 %v8205_v21, %v8205_v21  ;;  %v1983_v1 = vadd.f32 1.0, %v6252_v49 }
 0x2d6   : > { %2689 = vst [vmem:[#allocation2 + $0x198] sm:$0xff] %v5714_v17  ;;  %6263 = vtanh.f32 %v1732_v23  ;;  %v1351_v0 = vmul.f32 %v1223_v29, %v8199_v54  ;;  %v1224_v58 = vmul.f32 %v8208_v13, %v8208_v13  ;;  %v2109_v28 = vmul.f32 0.5, %v1981_v57 }
 0x2d7   : > { %2690 = vst [vmem:[#allocation2 + $0x38] sm:$0xff] %v5715_v9  ;;  %v1605_v55 = vadd.f32 %v1477_v52, %v8182_v18  ;;  %v1350_v62 = vmul.f32 %v1222_v46, %v8205_v21  ;;  %v2111_v25 = vmul.f32 0.5, %v1983_v1 }
 0x2d8   : > { %v1479_v24 = vmul.f32 0.044715, %v1351_v0  ;;  %v1352_v36 = vmul.f32 %v1224_v58, %v8208_v13  ;;  %v2237_v40 = vmul.f32 %v2109_v28, %v8112_v31 }
 0x2d9   : > { %v1733_v59 = vmul.f32 0.7978846, %v1605_v55  ;;  %v1478_v51 = vmul.f32 0.044715, %v1350_v62  ;;  %v2239_v12 = vmul.f32 %v2111_v25, %v8125_v43 }
 0x2da   : > { %v6254_v60 = vpop.eup %6253  ;;  %v1607_v39 = vadd.f32 %v1479_v24, %v8199_v54  ;;  %v1480_v38 = vmul.f32 0.044715, %v1352_v36 }
 0x2db   : > { %v1982_v37 = vadd.f32 1.0, %v6254_v60  ;;  %6265 = vtanh.f32 %v1733_v59  ;;  %v1606_v45 = vadd.f32 %v1478_v51, %v8205_v21 }
 0x2dc   : > { %v6256_v35 = vpop.eup %6255  ;;  %v1735_v30 = vmul.f32 0.7978846, %v1607_v39  ;;  %v1608_v33 = vadd.f32 %v1480_v38, %v8208_v13 }
 0x2dd   : > { %v6258_v5 = vpop.eup %6257  ;;  %v2110_v56 = vmul.f32 0.5, %v1982_v37  ;;  %v1984_v4 = vadd.f32 1.0, %v6256_v35  ;;  %v1734_v2 = vmul.f32 0.7978846, %v1606_v45 }
 0x2de   : > { %v6260_v41 = vpop.eup %6259  ;;  %v1985_v63 = vadd.f32 1.0, %v6258_v5  ;;  %6267 = vtanh.f32 %v1735_v30  ;;  %v1736_v3 = vmul.f32 0.7978846, %v1608_v33 }
 0x2df   : > { %v2238_v14 = vmul.f32 %v2110_v56, %v8135_v16  ;;  %v2112_v50 = vmul.f32 0.5, %v1984_v4  ;;  %v6262_v34 = vpop.eup %6261  ;;  %v1987_v20 = vadd.f32 1.0, %v6260_v41  ;;  %6269 = vtanh.f32 %v1734_v2 }
 0x2e0   : > { %v2113_v42 = vmul.f32 0.5, %v1985_v63  ;;  %v1986_v48 = vadd.f32 1.0, %v6262_v34  ;;  %6271 = vtanh.f32 %v1736_v3 }
 0x2e1   : > { %v5716_v49 = vpack.c.bf16 %v2238_v14, %v2237_v40  ;;  %v2240_v53 = vmul.f32 %v2112_v50, %v8150_v6  ;;  %v2115_v7 = vmul.f32 0.5, %v1987_v20 }
 0x2e2   : > { %v2114_v22 = vmul.f32 0.5, %v1986_v48  ;;  %v2241_v16 = vmul.f32 %v2113_v42, %v8154_v44 }
 0x2e3   : > { %2691 = vst [vmem:[#allocation2 + $0xc0] sm:$0xff] %v5716_v49  ;;  %v5717_v19 = vpack.c.bf16 %v2240_v53, %v2239_v12  ;;  %v6264_v31 = vpop.eup %6263  ;;  %v2243_v6 = vmul.f32 %v2115_v7, %v8161_v26 }
 0x2e4   : > { %v2242_v43 = vmul.f32 %v2114_v22, %v8166_v8  ;;  %v1988_v32 = vadd.f32 1.0, %v6264_v31 }
 0x2e5   : > { %2692 = vst [vmem:[#allocation2 + $0x1c0] sm:$0xff] %v5717_v19 }
 0x2e6   : > { %v5718_v11 = vpack.c.bf16 %v2242_v43, %v2241_v16  ;;  %v2116_v47 = vmul.f32 0.5, %v1988_v32 }
 0x2e8   : > { %v6266_v15 = vpop.eup %6265  ;;  %2693 = vst [vmem:[#allocation2 + $0x158] sm:$0xff] %v5718_v11  ;;  %v2244_v61 = vmul.f32 %v2116_v47, %v8169_v10 }
 0x2e9   : > { %v1989_v9 = vadd.f32 1.0, %v6266_v15 }
 0x2ea   : > { %v5719_v17 = vpack.c.bf16 %v2244_v61, %v2243_v6 }
 0x2eb   : > { %v6268_v27 = vpop.eup %6267  ;;  %v2117_v44 = vmul.f32 0.5, %v1989_v9 }
 0x2ec   : > { %2694 = vst [vmem:[#allocation2 + $0x10] sm:$0xff] %v5719_v17  ;;  %v1991_v23 = vadd.f32 1.0, %v6268_v27  ;;  %v6270_v29 = vpop.eup %6269 }
 0x2ed   : > { %v6272_v52 = vpop.eup %6271  ;;  %v1990_v57 = vadd.f32 1.0, %v6270_v29  ;;  %v2245_v55 = vmul.f32 %v2117_v44, %v8182_v18 }
 0x2ee   : > { %v2119_v0 = vmul.f32 0.5, %v1991_v23  ;;  %v1992_v8 = vadd.f32 1.0, %v6272_v52 }
 0x2ef   : > { %v2118_v46 = vmul.f32 0.5, %v1990_v57 }
 0x2f0   : > { %v2120_v1 = vmul.f32 0.5, %v1992_v8  ;;  %v2247_v58 = vmul.f32 %v2119_v0, %v8199_v54 }
 0x2f1   : > { %v2246_v26 = vmul.f32 %v2118_v46, %v8205_v21 }
 0x2f2   : > { %v2248_v10 = vmul.f32 %v2120_v1, %v8208_v13 }
 0x2f3   : > { %v5720_v24 = vpack.c.bf16 %v2246_v26, %v2245_v55 }
 0x2f4   : > { %v5721_v62 = vpack.c.bf16 %v2248_v10, %v2247_v58 }
 0x2f5   : > { %2695 = vst [vmem:[#allocation2 + $0x58] sm:$0xff] %v5720_v24 }
 0x2f6   : > { %2696 = vst [vmem:[#allocation2 + $0xa0] sm:$0xff] %v5721_v62 }
 0x2f7 PF: > { %v6273_v18 = vld [vmem:[%s7129_s8 + $0xe4] ss:$16 sps:$4 sm:$0xff]   ;;  %v6277_v21 = vld [vmem:[%s7129_s8 + $0xe0] ss:$16 sps:$4 sm:$0xff]   ;;  %s9006_s9 = sld [smem:[#allocation20_spill]]  ;;  %s5108_s17 = sshll.u32 %s7141_s2, 4  ;;  %s8838_s17 = int_to_ptr.vmem [resolvable:$true] %s5108_s17 }
 0x2f8   : > { %v6275_v54 = vld [vmem:[%s7129_s8 + $0x2e4] ss:$16 sps:$4 sm:$0xff]   ;;  %3871 = vmatprep.subr.bf16.mxu0 %v6273_v18  ;;  %v6278_v13 = vld [vmem:[%s7129_s8 + $0x2e0] ss:$16 sps:$4 sm:$0xff]   ;;  %s9007_s28 = sld [smem:[#allocation21_spill]]  ;;  %s8843_s27 = scalar_lea.sflag [#allocation5], %s356_s3 }
 0x2f9   : > { %4064 = vmatprep.subr.bf16.mxu1 %v6275_v54  ;;  %v6279_v60 = vld [vmem:[%s7129_s8 + $0xc4] ss:$16 sps:$4 sm:$0xff]   ;;  %3872 = vmatpush1.bf16.msra.mxu0 %v6277_v21  ;;  %v6283_v36 = vld [vmem:[%s7129_s8 + $0xc0] ss:$16 sps:$4 sm:$0xff]   ;;  %v6377_v21 = vld [vmem:[%s7129_s8 + $0xec] ss:$16 sps:$4 sm:$0xff]  }
 0x2fa   : > { %4065 = vmatpush1.bf16.msra.mxu1 %v6278_v13  ;;  %v6281_v59 = vld [vmem:[%s7129_s8 + $0x2c4] ss:$16 sps:$4 sm:$0xff]   ;;  %3873 = vmatprep.subr.bf16.mxu0 %v6279_v60  ;;  %v6284_v28 = vld [vmem:[%s7129_s8 + $0x2c0] ss:$16 sps:$4 sm:$0xff]   ;;  %v6380_v13 = vld [vmem:[%s7129_s8 + $0x2ec] ss:$16 sps:$4 sm:$0xff]  }
 0x2fb   : > { %4066 = vmatprep.subr.bf16.mxu1 %v6281_v59  ;;  %v6285_v37 = vld [vmem:[%s7129_s8 + $0xa4] ss:$16 sps:$4 sm:$0xff]   ;;  %v6289_v51 = vld [vmem:[%s7129_s8 + $0xa0] ss:$16 sps:$4 sm:$0xff]   ;;  %s9009_s18 = sld [smem:[#allocation25_spill]]  ;;  %s6676_s10 = scalar_lea.vmem %s8838_s17, 8192 }
 0x2fc   : > { %v6287_v39 = vld [vmem:[%s7129_s8 + $0x2a4] ss:$16 sps:$4 sm:$0xff]   ;;  %v6290_v35 = vld [vmem:[%s7129_s8 + $0x2a0] ss:$16 sps:$4 sm:$0xff]   ;;  %s9010_s21 = sld [smem:[#allocation35_spill]]  ;;  %p6677_p2 = scmp.ne.s32.totalorder %s8838_s17, %s6676_s10 }
 0x2fd   : > { %3874 = vmatpush1.bf16.msra.mxu0 %v6283_v36  ;;  %v6291_v25 = vld [vmem:[%s7129_s8 + $0x84] ss:$16 sps:$4 sm:$0xff]   ;;  %v6295_v5 = vld [vmem:[%s7129_s8 + $0x80] ss:$16 sps:$4 sm:$0xff]   ;;  %s5650_s16 = sshll.u32 %s9006_s9, 2 }
 0x2fe   : > { %4067 = vmatpush1.bf16.msra.mxu1 %v6284_v28  ;;  %3875 = vmatprep.subr.bf16.mxu0 %v6285_v37  ;;  %v6293_v38 = vld [vmem:[%s7129_s8 + $0x284] ss:$16 sps:$4 sm:$0xff]   ;;  %v6296_v56 = vld [vmem:[%s7129_s8 + $0x280] ss:$16 sps:$4 sm:$0xff]   ;;  %s5786_s7 = sshll.u32 %s9007_s28, 8 }
 0x2ff   : > { %4068 = vmatprep.subr.bf16.mxu1 %v6287_v39  ;;  %v6297_v4 = vld [vmem:[%s7129_s8 + $0x64] ss:$16 sps:$4 sm:$0xff]   ;;  %v6301_v45 = vld [vmem:[%s7129_s8 + $0x60] ss:$16 sps:$4 sm:$0xff]   ;;  %s5105_s0 = sadd.s32 %s5786_s7, %s5650_s16 }
 0x300   : > { %v6299_v30 = vld [vmem:[%s7129_s8 + $0x264] ss:$16 sps:$4 sm:$0xff]   ;;  %v6302_v41 = vld [vmem:[%s7129_s8 + $0x260] ss:$16 sps:$4 sm:$0xff]   ;;  %s5652_s13 = sshll.u32 %s5105_s0, 6 }
 0x301   : > { %3876 = vmatpush1.bf16.msra.mxu0 %v6289_v51  ;;  %v6303_v63 = vld [vmem:[%s7129_s8 + $0x44] ss:$16 sps:$4 sm:$0xff]   ;;  %v6307_v40 = vld [vmem:[%s7129_s8 + $0x40] ss:$16 sps:$4 sm:$0xff]   ;;  %v6375_v51 = vld [vmem:[%s7129_s8 + $0xe8] ss:$16 sps:$4 sm:$0xff]  }
 0x302   : > { %4069 = vmatpush1.bf16.msra.mxu1 %v6290_v35  ;;  %3877 = vmatprep.subr.bf16.mxu0 %v6291_v25  ;;  %v6305_v33 = vld [vmem:[%s7129_s8 + $0x244] ss:$16 sps:$4 sm:$0xff]   ;;  %v6308_v14 = vld [vmem:[%s7129_s8 + $0x240] ss:$16 sps:$4 sm:$0xff]   ;;  %v6378_v35 = vld [vmem:[%s7129_s8 + $0x2e8] ss:$16 sps:$4 sm:$0xff]   ;;  %s8836_s5 = scalar_lea.hbm %s9010_s21, %s5652_s13 }
 0x303   : > { %4070 = vmatprep.subr.bf16.mxu1 %v6293_v38  ;;  %v6309_v50 = vld [vmem:[%s7129_s8 + $0x24] ss:$16 sps:$4 sm:$0xff]   ;;  %v6313_v12 = vld [vmem:[%s7129_s8 + $0x20] ss:$16 sps:$4 sm:$0xff]   ;;  %p9012_p0 = scmp.ne.s32.totalorder %s9009_s18, 0 }
 0x304   : > { %v6311_v34 = vld [vmem:[%s7129_s8 + $0x224] ss:$16 sps:$4 sm:$0xff]   ;;  %v6314_v20 = vld [vmem:[%s7129_s8 + $0x220] ss:$16 sps:$4 sm:$0xff]  }
 0x305   : > { %3878 = vmatpush1.bf16.msra.mxu0 %v6295_v5  ;;  %v6315_v2 = vld [vmem:[%s7129_s8 + $0x4] ss:$16 sps:$4 sm:$0xff]   ;;  %v6319_v49 = vld [vmem:[%s7129_s8] ss:$16 sps:$4 sm:$0xff]   ;;  %v6383_v5 = vld [vmem:[%s7129_s8 + $0xcc] ss:$16 sps:$4 sm:$0xff]   ;;  %p6678_p12 = pnand %p6677_p2, %p9012_p0 }
 0x306   : > { %4071 = vmatpush1.bf16.msra.mxu1 %v6296_v56  ;;  %3879 = vmatprep.subr.bf16.mxu0 %v6297_v4  ;;  %v6317_v3 = vld [vmem:[%s7129_s8 + $0x204] ss:$16 sps:$4 sm:$0xff]   ;;  %v6320_v53 = vld [vmem:[%s7129_s8 + $0x200] ss:$16 sps:$4 sm:$0xff]   ;;  %v6386_v56 = vld [vmem:[%s7129_s8 + $0x2cc] ss:$16 sps:$4 sm:$0xff]  }
 0x307   : > { %4072 = vmatprep.subr.bf16.mxu1 %v6299_v30  ;;  %v6321_v42 = vld [vmem:[%s7129_s8 + $0x1e4] ss:$16 sps:$4 sm:$0xff]   ;;  %v6325_v19 = vld [vmem:[%s7129_s8 + $0x1e0] ss:$16 sps:$4 sm:$0xff]   ;;  %v6381_v4 = vld [vmem:[%s7129_s8 + $0xc8] ss:$16 sps:$4 sm:$0xff]   ;;  %p6679_p5 = pneg %p6678_p12 }
 0x308   : > { %v6323_v48 = vld [vmem:[%s7129_s8 + $0x3e4] ss:$16 sps:$4 sm:$0xff]   ;;  %v6326_v22 = vld [vmem:[%s7129_s8 + $0x3e0] ss:$16 sps:$4 sm:$0xff]   ;;  %v6384_v30 = vld [vmem:[%s7129_s8 + $0x2c8] ss:$16 sps:$4 sm:$0xff]  }
 0x309   : > { %3880 = vmatpush1.bf16.msra.mxu0 %v6301_v45  ;;  %v6327_v31 = vld [vmem:[%s7129_s8 + $0x1c4] ss:$16 sps:$4 sm:$0xff]   ;;  %v6331_v7 = vld [vmem:[%s7129_s8 + $0x1c0] ss:$16 sps:$4 sm:$0xff]   ;;  %v6395_v45 = vld [vmem:[%s7129_s8 + $0xac] ss:$16 sps:$4 sm:$0xff]  }
 0x30a   : > { %4073 = vmatpush1.bf16.msra.mxu1 %v6302_v41  ;;  %3881 = vmatprep.subr.bf16.mxu0 %v6303_v63  ;;  %v6329_v16 = vld [vmem:[%s7129_s8 + $0x3c4] ss:$16 sps:$4 sm:$0xff]   ;;  %v6332_v43 = vld [vmem:[%s7129_s8 + $0x3c0] ss:$16 sps:$4 sm:$0xff]   ;;  %v6398_v41 = vld [vmem:[%s7129_s8 + $0x2ac] ss:$16 sps:$4 sm:$0xff]  }
 0x30b   : > { %4074 = vmatprep.subr.bf16.mxu1 %v6305_v33  ;;  %v6333_v32 = vld [vmem:[%s7129_s8 + $0x1a4] ss:$16 sps:$4 sm:$0xff]   ;;  %v6337_v47 = vld [vmem:[%s7129_s8 + $0x1a0] ss:$16 sps:$4 sm:$0xff]  }
 0x30c   : > { %v6335_v11 = vld [vmem:[%s7129_s8 + $0x3a4] ss:$16 sps:$4 sm:$0xff]   ;;  %v6338_v15 = vld [vmem:[%s7129_s8 + $0x3a0] ss:$16 sps:$4 sm:$0xff]  }
 0x30d   : > { %3882 = vmatpush1.bf16.msra.mxu0 %v6307_v40  ;;  %v6339_v6 = vld [vmem:[%s7129_s8 + $0x184] ss:$16 sps:$4 sm:$0xff]   ;;  %v6343_v17 = vld [vmem:[%s7129_s8 + $0x180] ss:$16 sps:$4 sm:$0xff]  }
 0x30e   : > { %4075 = vmatpush1.bf16.msra.mxu1 %v6308_v14  ;;  %3883 = vmatprep.subr.bf16.mxu0 %v6309_v50  ;;  %v6341_v61 = vld [vmem:[%s7129_s8 + $0x384] ss:$16 sps:$4 sm:$0xff]   ;;  %v6344_v27 = vld [vmem:[%s7129_s8 + $0x380] ss:$16 sps:$4 sm:$0xff]   ;;  %v6393_v50 = vld [vmem:[%s7129_s8 + $0xa8] ss:$16 sps:$4 sm:$0xff]  }
 0x30f   : > { %4076 = vmatprep.subr.bf16.mxu1 %v6311_v34  ;;  %v6345_v9 = vld [vmem:[%s7129_s8 + $0x164] ss:$16 sps:$4 sm:$0xff]   ;;  %v8282_v23 = vld [vmem:[#allocation2 + $0xb4] ss:$40 sps:$4 sm:$0xff]  }
 0x310   : > { %v6347_v29 = vld [vmem:[%s7129_s8 + $0x364] ss:$16 sps:$4 sm:$0xff]   ;;  %v8285_v52 = vld [vmem:[#allocation2 + $0x1b4] ss:$-408 sps:$4 sm:$0xff]   ;;  %3903 = vmatprep.mubr.bf16.mxu0 %v8282_v23 }
 0x311   : > { %3884 = vmatpush1.bf16.msra.mxu0 %v6313_v12  ;;  %4096 = vmatprep.mubr.bf16.mxu1 %v8285_v52  ;;  %v6349_v44 = vld [vmem:[%s7129_s8 + $0x160] ss:$16 sps:$4 sm:$0xff]   ;;  %v6351_v0 = vld [vmem:[%s7129_s8 + $0x144] ss:$16 sps:$4 sm:$0xff]   ;;  %v6396_v34 = vld [vmem:[%s7129_s8 + $0x2a8] ss:$16 sps:$4 sm:$0xff]  }
 0x312   : > { %4077 = vmatpush1.bf16.msra.mxu1 %v6314_v20  ;;  %3885 = vmatprep.subr.bf16.mxu0 %v6315_v2  ;;  %v6350_v57 = vld [vmem:[%s7129_s8 + $0x360] ss:$16 sps:$4 sm:$0xff]   ;;  %v6353_v8 = vld [vmem:[%s7129_s8 + $0x344] ss:$16 sps:$4 sm:$0xff]   ;;  %v6407_v12 = vld [vmem:[%s7129_s8 + $0x8c] ss:$16 sps:$4 sm:$0xff]  }
 0x313   : > { %4078 = vmatprep.subr.bf16.mxu1 %v6317_v3  ;;  %v6355_v46 = vld [vmem:[%s7129_s8 + $0x140] ss:$16 sps:$4 sm:$0xff]   ;;  %v6357_v55 = vld [vmem:[%s7129_s8 + $0x124] ss:$16 sps:$4 sm:$0xff]   ;;  %v6410_v20 = vld [vmem:[%s7129_s8 + $0x28c] ss:$16 sps:$4 sm:$0xff]  }
 0x314   : > { %v6356_v1 = vld [vmem:[%s7129_s8 + $0x340] ss:$16 sps:$4 sm:$0xff]   ;;  %v6359_v26 = vld [vmem:[%s7129_s8 + $0x324] ss:$16 sps:$4 sm:$0xff]   ;;  %v6405_v2 = vld [vmem:[%s7129_s8 + $0x88] ss:$16 sps:$4 sm:$0xff]  }
 0x315   : > { %3886 = vmatpush1.bf16.msra.mxu0 %v6319_v49  ;;  %v6361_v58 = vld [vmem:[%s7129_s8 + $0x120] ss:$16 sps:$4 sm:$0xff]   ;;  %v6363_v24 = vld [vmem:[%s7129_s8 + $0x104] ss:$16 sps:$4 sm:$0xff]  }
 0x316   : > { %4079 = vmatpush1.bf16.msra.mxu1 %v6320_v53  ;;  %3887 = vmatprep.subr.bf16.mxu0 %v6321_v42  ;;  %v6362_v10 = vld [vmem:[%s7129_s8 + $0x320] ss:$16 sps:$4 sm:$0xff]   ;;  %v6365_v62 = vld [vmem:[%s7129_s8 + $0x304] ss:$16 sps:$4 sm:$0xff]   ;;  %v6408_v53 = vld [vmem:[%s7129_s8 + $0x288] ss:$16 sps:$4 sm:$0xff]  }
 0x317   : > { %4080 = vmatprep.subr.bf16.mxu1 %v6323_v48  ;;  %v6367_v18 = vld [vmem:[%s7129_s8 + $0x100] ss:$16 sps:$4 sm:$0xff]   ;;  %v8305_v59 = vld [vmem:[#allocation2 + $0xb0] ss:$40 sps:$4 sm:$0xff]   ;;  %v2702_v28 = vld [vmem:[#allocation2 + $0x168] sm:$0xff] }
 0x318   : > { %v6368_v54 = vld [vmem:[%s7129_s8 + $0x300] ss:$16 sps:$4 sm:$0xff]   ;;  %v2704_v37 = vld [vmem:[#allocation2 + $0x48] sm:$0xff]  ;;  %v8307_v39 = vld [vmem:[#allocation2 + $0x1b0] ss:$-408 sps:$4 sm:$0xff]  }
 0x319   : > { %3888 = vmatpush2.bf16.msra.mxu0 %v6325_v19  ;;  %v2701_v60 = vld [vmem:[#allocation2 + $0x50] sm:$0xff]  ;;  %v8313_v38 = vcombine.high %v2702_v28, %v2704_v37  ;;  %v8327_v33 = vcombine.low %v2702_v28, %v2704_v37  ;;  %v8329_v40 = vld [vmem:[#allocation2 + $0x184] ss:$-104 sps:$4 sm:$0xff]   ;;  %v8342_v3 = vld [vmem:[#allocation2 + $0x180] ss:$-104 sps:$4 sm:$0xff]  }
 0x31a   : > { %4081 = vmatpush2.bf16.msra.mxu1 %v6326_v22  ;;  %3889 = vmatprep.subr.bf16.mxu0 %v6327_v31  ;;  %v2703_v36 = vld [vmem:[#allocation2 + $0x130] sm:$0xff]  ;;  %v8349_v19 = vld [vmem:[#allocation2 + $0x124] ss:$-24 sps:$4 sm:$0xff]  }
 0x31b   : > { %4082 = vmatprep.subr.bf16.mxu1 %v6329_v16  ;;  %v8311_v25 = vcombine.high %v2701_v60, %v2703_v36  ;;  %v8325_v63 = vcombine.low %v2701_v60, %v2703_v36  ;;  %v8331_v14 = vld [vmem:[#allocation2 + $0x114] ss:$-120 sps:$4 sm:$0xff]   ;;  %v8344_v49 = vld [vmem:[#allocation2 + $0x110] ss:$-120 sps:$4 sm:$0xff]  }
 0x31c   : > { %v6419_v42 = vld [vmem:[%s7129_s8 + $0x6c] ss:$16 sps:$4 sm:$0xff]   ;;  %v8351_v22 = vld [vmem:[#allocation2 + $0x154] ss:$-240 sps:$4 sm:$0xff]   ;;  %v6417_v31 = vld [vmem:[%s7129_s8 + $0x68] ss:$16 sps:$4 sm:$0xff]  }
 0x31d   : > { %3890 = vmatpush2.bf16.msra.mxu0 %v6331_v7  ;;  %v6422_v48 = vld [vmem:[%s7129_s8 + $0x26c] ss:$16 sps:$4 sm:$0xff]   ;;  %v6420_v16 = vld [vmem:[%s7129_s8 + $0x268] ss:$16 sps:$4 sm:$0xff]  }
 0x31e   : > { %4083 = vmatpush2.bf16.msra.mxu1 %v6332_v43  ;;  %3891 = vmatprep.subr.bf16.mxu0 %v6333_v32  ;;  %v6428_v7 = vld [vmem:[%s7129_s8 + $0x4c] ss:$16 sps:$4 sm:$0xff]   ;;  %v6471_v60 = vld [vmem:[%s7129_s8 + $0x1c8] ss:$16 sps:$4 sm:$0xff]  }
 0x31f   : > { %4084 = vmatprep.subr.bf16.mxu1 %v6335_v11  ;;  %v6431_v43 = vld [vmem:[%s7129_s8 + $0x24c] ss:$16 sps:$4 sm:$0xff]   ;;  %v6426_v11 = vld [vmem:[%s7129_s8 + $0x48] ss:$16 sps:$4 sm:$0xff]  }
 0x320   : > { %v8361_v32 = vld [vmem:[#allocation2 + $0x120] ss:$-24 sps:$4 sm:$0xff]   ;;  %v6474_v36 = vld [vmem:[%s7129_s8 + $0x3c8] ss:$16 sps:$4 sm:$0xff]  }
 0x321   : > { %3892 = vmatpush2.bf16.msra.mxu0 %v6337_v47  ;;  %v6429_v47 = vld [vmem:[%s7129_s8 + $0x248] ss:$16 sps:$4 sm:$0xff]   ;;  %v6485_v28 = vld [vmem:[%s7129_s8 + $0x1ac] ss:$16 sps:$4 sm:$0xff]  }
 0x322   : > { %4085 = vmatpush2.bf16.msra.mxu1 %v6338_v15  ;;  %3893 = vmatprep.subr.bf16.mxu0 %v6339_v6  ;;  %v6440_v15 = vld [vmem:[%s7129_s8 + $0x2c] ss:$16 sps:$4 sm:$0xff]  }
 0x323   : > { %4086 = vmatprep.subr.bf16.mxu1 %v6341_v61  ;;  %v6443_v6 = vld [vmem:[%s7129_s8 + $0x22c] ss:$16 sps:$4 sm:$0xff]  }
 0x324   : > { %v8367_v61 = vld [vmem:[#allocation2 + $0x150] ss:$-240 sps:$4 sm:$0xff]  }
 0x325   : > { %3894 = vmatpush2.bf16.msra.mxu0 %v6343_v17  ;;  %v8369_v17 = vld [vmem:[#allocation2 + $0xe4] ss:$88 sps:$4 sm:$0xff]   ;;  %v6488_v37 = vld [vmem:[%s7129_s8 + $0x3ac] ss:$16 sps:$4 sm:$0xff]  }
 0x326   : > { %4087 = vmatpush2.bf16.msra.mxu1 %v6344_v27  ;;  %3895 = vmatprep.subr.bf16.mxu0 %v6345_v9  ;;  %v8371_v27 = vld [vmem:[#allocation2 + $0x18c] ss:$-72 sps:$4 sm:$0xff]  }
 0x327   : > { %4088 = vmatprep.subr.bf16.mxu1 %v6347_v29  ;;  %v6438_v9 = vld [vmem:[%s7129_s8 + $0x28] ss:$16 sps:$4 sm:$0xff]  }
 0x328   : > { %v6441_v29 = vld [vmem:[%s7129_s8 + $0x228] ss:$16 sps:$4 sm:$0xff]  }
 0x329   : > { %3896 = vmatpush2.bf16.msra.mxu0 %v6349_v44  ;;  %v6452_v44 = vld [vmem:[%s7129_s8 + $0xc] ss:$16 sps:$4 sm:$0xff]  }
 0x32a   : > { %4089 = vmatpush2.bf16.msra.mxu1 %v6350_v57  ;;  %3897 = vmatprep.subr.bf16.mxu0 %v6351_v0  ;;  %v6455_v57 = vld [vmem:[%s7129_s8 + $0x20c] ss:$16 sps:$4 sm:$0xff]   ;;  %v2718_v0 = vld [vmem:[#allocation2 + $0x1a8] sm:$0xff] }
 0x32b   : > { %4090 = vmatprep.subr.bf16.mxu1 %v6353_v8  ;;  %v2720_v8 = vld [vmem:[#allocation2 + $0x28] sm:$0xff] }
 0x32d   : > { %3898 = vmatpush2.bf16.msra.mxu0 %v6355_v46  ;;  %v6450_v46 = vld [vmem:[%s7129_s8 + $0x8] ss:$16 sps:$4 sm:$0xff]  }
 0x32e   : > { %4091 = vmatpush2.bf16.msra.mxu1 %v6356_v1  ;;  %3899 = vmatprep.subr.bf16.mxu0 %v6357_v55  ;;  %v6453_v1 = vld [vmem:[%s7129_s8 + $0x208] ss:$16 sps:$4 sm:$0xff]   ;;  %v6464_v55 = vld [vmem:[%s7129_s8 + $0x1ec] ss:$16 sps:$4 sm:$0xff]  }
 0x32f   : > { %4092 = vmatprep.subr.bf16.mxu1 %v6359_v26  ;;  %v6467_v26 = vld [vmem:[%s7129_s8 + $0x3ec] ss:$16 sps:$4 sm:$0xff]  }
 0x331   : > { %3900 = vmatpush2.bf16.msra.mxu0 %v6361_v58  ;;  %v8385_v58 = vld [vmem:[#allocation2 + $0xe0] ss:$88 sps:$4 sm:$0xff]  }
 0x332   : > { %4093 = vmatpush2.bf16.msra.mxu1 %v6362_v10  ;;  %3901 = vmatprep.subr.bf16.mxu0 %v6363_v24  ;;  %v8387_v10 = vld [vmem:[#allocation2 + $0x188] ss:$-72 sps:$4 sm:$0xff]   ;;  %v8389_v24 = vld [vmem:[#allocation2 + $0x84] ss:$312 sps:$4 sm:$0xff]  }
 0x333   : > { %4094 = vmatprep.subr.bf16.mxu1 %v6365_v62  ;;  %v8391_v62 = vcombine.high %v2718_v0, %v2720_v8 }
 0x335   : > { %3902 = vmatpush2.bf16.msra.mxu0 %v6367_v18  ;;  %v6462_v18 = vld [vmem:[%s7129_s8 + $0x1e8] ss:$16 sps:$4 sm:$0xff]  }
 0x336   : > { %4095 = vmatpush2.bf16.msra.mxu1 %v6368_v54  ;;  %4257 = vmatprep.subr.bf16.mxu0 %v6377_v21  ;;  %v6465_v54 = vld [vmem:[%s7129_s8 + $0x3e8] ss:$16 sps:$4 sm:$0xff]   ;;  %v6473_v21 = vld [vmem:[%s7129_s8 + $0x1cc] ss:$16 sps:$4 sm:$0xff]  }
 0x337   : > { %4450 = vmatprep.subr.bf16.mxu1 %v6380_v13  ;;  %v6476_v13 = vld [vmem:[%s7129_s8 + $0x3cc] ss:$16 sps:$4 sm:$0xff]  }
 0x338   : > { %3904 = vmatmul.mubr.bf16.vlgmr.msra.gmra.mxu0 %v8305_v59 }
 0x339   : > { %4097 = vmatmul.mubr.bf16.vlgmr.msra.gmra.mxu1 %v8307_v39  ;;  %4258 = vmatpush1.bf16.msra.mxu0 %v6375_v51  ;;  %v8405_v51 = vld [vmem:[#allocation2 + $0x80] ss:$312 sps:$4 sm:$0xff]  }
 0x33a   : > { %4451 = vmatpush1.bf16.msra.mxu1 %v6378_v35  ;;  %3913 = vmatprep.mubr.bf16.mxu0 %v8311_v25  ;;  %v8407_v35 = vcombine.low %v2718_v0, %v2720_v8  ;;  %v6525_v0 = vld [vmem:[%s7129_s8 + $0x128] ss:$16 sps:$4 sm:$0xff]  }
 0x33b   : > { %4106 = vmatprep.mubr.bf16.mxu1 %v8313_v38  ;;  %4259 = vmatprep.subr.bf16.mxu0 %v6383_v5  ;;  %v8409_v5 = vld [vmem:[#allocation2 + $0x1ec] ss:$-136 sps:$4 sm:$0xff]  }
 0x33c   : > { %4452 = vmatprep.subr.bf16.mxu1 %v6386_v56  ;;  %v8411_v56 = vld [vmem:[#allocation2 + $0xfc] ss:$-200 sps:$4 sm:$0xff]  }
 0x33d   : > { %4260 = vmatpush1.bf16.msra.mxu0 %v6381_v4  ;;  %v6483_v4 = vld [vmem:[%s7129_s8 + $0x1a8] ss:$16 sps:$4 sm:$0xff]  }
 0x33e   : > { %4453 = vmatpush1.bf16.msra.mxu1 %v6384_v30  ;;  %4261 = vmatprep.subr.bf16.mxu0 %v6395_v45  ;;  %v6486_v30 = vld [vmem:[%s7129_s8 + $0x3a8] ss:$16 sps:$4 sm:$0xff]   ;;  %v6494_v45 = vld [vmem:[%s7129_s8 + $0x18c] ss:$16 sps:$4 sm:$0xff]  }
 0x33f   : > { %4454 = vmatprep.subr.bf16.mxu1 %v6398_v41  ;;  %v6497_v41 = vld [vmem:[%s7129_s8 + $0x38c] ss:$16 sps:$4 sm:$0xff]   ;;  %v6528_v8 = vld [vmem:[%s7129_s8 + $0x328] ss:$16 sps:$4 sm:$0xff]  }
 0x340   : > { %3914 = vmatmul.mubr.bf16.gmra.mxu0 %v8325_v63 }
 0x341   : > { %4107 = vmatmul.mubr.bf16.gmra.mxu1 %v8327_v33  ;;  %3923 = vmatprep.mubr.bf16.mxu0 %v8329_v40 }
 0x342   : > { %4116 = vmatprep.mubr.bf16.mxu1 %v8331_v14  ;;  %4262 = vmatpush1.bf16.msra.mxu0 %v6393_v50  ;;  %v6492_v50 = vld [vmem:[%s7129_s8 + $0x188] ss:$16 sps:$4 sm:$0xff]  }
 0x343   : > { %4455 = vmatpush1.bf16.msra.mxu1 %v6396_v34  ;;  %4263 = vmatprep.subr.bf16.mxu0 %v6407_v12  ;;  %v8422_v34 = vld [vmem:[#allocation2 + $0x1e8] ss:$-136 sps:$4 sm:$0xff]   ;;  %v8424_v12 = vld [vmem:[#allocation2 + $0xf8] ss:$-200 sps:$4 sm:$0xff]  }
 0x344   : > { %4456 = vmatprep.subr.bf16.mxu1 %v6410_v20  ;;  %v6495_v20 = vld [vmem:[%s7129_s8 + $0x388] ss:$16 sps:$4 sm:$0xff]  }
 0x346   : > { %4264 = vmatpush1.bf16.msra.mxu0 %v6405_v2  ;;  %v8427_v2 = vld [vmem:[#allocation2 + $0x1e4] ss:$-240 sps:$4 sm:$0xff]  }
 0x347   : > { %4457 = vmatpush1.bf16.msra.mxu1 %v6408_v53  ;;  %4265 = vmatprep.subr.bf16.mxu0 %v6419_v42  ;;  %v6503_v53 = vld [vmem:[%s7129_s8 + $0x16c] ss:$16 sps:$4 sm:$0xff]  }
 0x348   : > { %4458 = vmatprep.subr.bf16.mxu1 %v6422_v48  ;;  %3924 = vmatmul.mubr.bf16.gmra.mxu0 %v8342_v3  ;;  %v6506_v42 = vld [vmem:[%s7129_s8 + $0x36c] ss:$16 sps:$4 sm:$0xff]   ;;  %v8431_v48 = vld [vmem:[#allocation2 + $0x4] ss:$8 sps:$4 sm:$0xff]  }
 0x349   : > { %4117 = vmatmul.mubr.bf16.gmra.mxu1 %v8344_v49  ;;  %3933 = vmatprep.mubr.bf16.mxu0 %v8349_v19 }
 0x34a   : > { %4126 = vmatprep.mubr.bf16.mxu1 %v8351_v22  ;;  %4266 = vmatpush1.bf16.msra.mxu0 %v6417_v31  ;;  %v6501_v31 = vld [vmem:[%s7129_s8 + $0x168] ss:$16 sps:$4 sm:$0xff]  }
 0x34b   : > { %4459 = vmatpush1.bf16.msra.mxu1 %v6420_v16  ;;  %4267 = vmatprep.subr.bf16.mxu0 %v6428_v7  ;;  %v6504_v16 = vld [vmem:[%s7129_s8 + $0x368] ss:$16 sps:$4 sm:$0xff]   ;;  %v6515_v7 = vld [vmem:[%s7129_s8 + $0x14c] ss:$16 sps:$4 sm:$0xff]  }
 0x34c   : > { %4460 = vmatprep.subr.bf16.mxu1 %v6431_v43  ;;  %v6518_v43 = vld [vmem:[%s7129_s8 + $0x34c] ss:$16 sps:$4 sm:$0xff]  }
 0x34e   : > { %4268 = vmatpush1.bf16.msra.mxu0 %v6426_v11  ;;  %v6513_v11 = vld [vmem:[%s7129_s8 + $0x148] ss:$16 sps:$4 sm:$0xff]  }
 0x34f   : > { %4461 = vmatpush1.bf16.msra.mxu1 %v6429_v47  ;;  %4269 = vmatprep.subr.bf16.mxu0 %v6440_v15  ;;  %v6516_v47 = vld [vmem:[%s7129_s8 + $0x348] ss:$16 sps:$4 sm:$0xff]   ;;  %v8443_v15 = vld [vmem:[#allocation2 + $0x1e0] ss:$-240 sps:$4 sm:$0xff]  }
 0x350   : > { %4462 = vmatprep.subr.bf16.mxu1 %v6443_v6  ;;  %3934 = vmatmul.mubr.bf16.gmra.mxu0 %v8361_v32  ;;  %v6527_v6 = vld [vmem:[%s7129_s8 + $0x12c] ss:$16 sps:$4 sm:$0xff]  }
 0x351   : > { %4127 = vmatmul.mubr.bf16.gmra.mxu1 %v8367_v61  ;;  %3943 = vmatprep.mubr.bf16.mxu0 %v8369_v17 }
 0x352   : > { %4136 = vmatprep.mubr.bf16.mxu1 %v8371_v27  ;;  %4270 = vmatpush1.bf16.msra.mxu0 %v6438_v9  ;;  %v6530_v9 = vld [vmem:[%s7129_s8 + $0x32c] ss:$16 sps:$4 sm:$0xff]  }
 0x353   : > { %4463 = vmatpush1.bf16.msra.mxu1 %v6441_v29  ;;  %4271 = vmatprep.subr.bf16.mxu0 %v6452_v44  ;;  %v8447_v29 = vld [vmem:[#allocation2] ss:$8 sps:$4 sm:$0xff]   ;;  %v8449_v44 = vld [vmem:[#allocation2 + $0x14c] ss:$-72 sps:$4 sm:$0xff]  }
 0x354   : > { %4464 = vmatprep.subr.bf16.mxu1 %v6455_v57  ;;  %v8451_v57 = vld [vmem:[#allocation2 + $0x1d4] ss:$-264 sps:$4 sm:$0xff]  }
 0x356   : > { %4272 = vmatpush1.bf16.msra.mxu0 %v6450_v46  ;;  %v6536_v46 = vld [vmem:[%s7129_s8 + $0x10c] ss:$16 sps:$4 sm:$0xff]  }
 0x357   : > { %4465 = vmatpush1.bf16.msra.mxu1 %v6453_v1  ;;  %4273 = vmatprep.subr.bf16.mxu0 %v6464_v55  ;;  %v6539_v1 = vld [vmem:[%s7129_s8 + $0x30c] ss:$16 sps:$4 sm:$0xff]  }
 0x358   : > { %4466 = vmatprep.subr.bf16.mxu1 %v6467_v26  ;;  %3944 = vmatmul.mubr.bf16.gmra.mxu0 %v8385_v58  ;;  %v2733_v55 = vld [vmem:[#allocation2 + $0x40] sm:$0xff] }
 0x359   : > { %4137 = vmatmul.mubr.bf16.gmra.mxu1 %v8387_v10  ;;  %3953 = vmatprep.mubr.bf16.mxu0 %v8389_v24  ;;  %v2735_v26 = vld [vmem:[#allocation2 + $0x20] sm:$0xff] }
 0x35a   : > { %4146 = vmatprep.mubr.bf16.mxu1 %v8391_v62  ;;  %4274 = vmatpush2.bf16.msra.mxu0 %v6462_v18  ;;  %v6534_v18 = vld [vmem:[%s7129_s8 + $0x108] ss:$16 sps:$4 sm:$0xff]  }
 0x35b   : > { %4467 = vmatpush2.bf16.msra.mxu1 %v6465_v54  ;;  %4275 = vmatprep.subr.bf16.mxu0 %v6473_v21  ;;  %v6537_v54 = vld [vmem:[%s7129_s8 + $0x308] ss:$16 sps:$4 sm:$0xff]   ;;  %v8463_v21 = vld [vmem:[#allocation2 + $0x148] ss:$-72 sps:$4 sm:$0xff]   ;;  %s9011_s8 = smov %s9010_s21 }
 0x35c   : > { %4468 = vmatprep.subr.bf16.mxu1 %v6476_v13  ;;  %v8465_v13 = vld [vmem:[#allocation2 + $0x1d0] ss:$-264 sps:$4 sm:$0xff]  }
 0x35e   : > { %4276 = vmatpush2.bf16.msra.mxu0 %v6471_v60  ;;  %v8467_v60 = vcombine.high %v2733_v55, %v2735_v26 }
 0x35f   : > { %4469 = vmatpush2.bf16.msra.mxu1 %v6474_v36  ;;  %4277 = vmatprep.subr.bf16.mxu0 %v6485_v28  ;;  %v8469_v36 = vld [vmem:[#allocation2 + $0x1fc] ss:$-208 sps:$4 sm:$0xff]   ;;  %v8475_v28 = vcombine.low %v2733_v55, %v2735_v26 }
 0x360   : > { %4470 = vmatprep.subr.bf16.mxu1 %v6488_v37  ;;  %3954 = vmatmul.mubr.bf16.gmra.mxu0 %v8405_v51  ;;  %v8477_v37 = vld [vmem:[#allocation2 + $0x1f8] ss:$-208 sps:$4 sm:$0xff]   ;;  %v8527_v55 = vld [vmem:[#allocation2 + $0x19c] ss:$-216 sps:$4 sm:$0xff]  }
 0x361   : > { %4147 = vmatmul.mubr.bf16.gmra.mxu1 %v8407_v35  ;;  %3963 = vmatprep.mubr.bf16.mxu0 %v8409_v5  ;;  %9002 = vst [vmem:[#allocation29_spill] sm:$0xff] %v8527_v55  ;;  %v8529_v26 = vld [vmem:[#allocation2 + $0x3c] ss:$392 sps:$4 sm:$0xff]  }
 0x362   : > { %4156 = vmatprep.mubr.bf16.mxu1 %v8411_v56  ;;  %4278 = vmatpush2.bf16.msra.mxu0 %v6483_v4  ;;  %v8479_v4 = vld [vmem:[#allocation2 + $0x1a4] ss:$-184 sps:$4 sm:$0xff]   ;;  %9003 = vst [vmem:[#allocation30_spill] sm:$0xff] %v8529_v26 }
 0x363   : > { %4471 = vmatpush2.bf16.msra.mxu1 %v6486_v30  ;;  %4279 = vmatprep.subr.bf16.mxu0 %v6494_v45  ;;  %v8481_v30 = vld [vmem:[#allocation2 + $0x1f4] ss:$-376 sps:$4 sm:$0xff]  }
 0x364   : > { %4472 = vmatprep.subr.bf16.mxu1 %v6497_v41  ;;  %v2742_v45 = vld [vmem:[#allocation2 + $0x90] sm:$0xff] }
 0x365   : > { %v2744_v41 = vld [vmem:[#allocation2 + $0xd0] sm:$0xff] }
 0x366   : > { %4280 = vmatpush2.bf16.msra.mxu0 %v6492_v50  ;;  %v8487_v50 = vld [vmem:[#allocation2 + $0x1a0] ss:$-184 sps:$4 sm:$0xff]  }
 0x367   : > { %4473 = vmatpush2.bf16.msra.mxu1 %v6495_v20  ;;  %4281 = vmatprep.subr.bf16.mxu0 %v6503_v53  ;;  %v8489_v20 = vld [vmem:[#allocation2 + $0x1f0] ss:$-376 sps:$4 sm:$0xff]   ;;  %v8491_v53 = vld [vmem:[#allocation2 + $0x74] ss:$360 sps:$4 sm:$0xff]  }
 0x368   : > { %4474 = vmatprep.subr.bf16.mxu1 %v6506_v42  ;;  %3964 = vmatmul.mubr.bf16.gmra.mxu0 %v8422_v34  ;;  %v8493_v42 = vcombine.high %v2742_v45, %v2744_v41 }
 0x369   : > { %4157 = vmatmul.mubr.bf16.gmra.mxu1 %v8424_v12  ;;  %3973 = vmatprep.mubr.bf16.mxu0 %v8427_v2 }
 0x36a   : > { %4166 = vmatprep.mubr.bf16.mxu1 %v8431_v48  ;;  %4282 = vmatpush2.bf16.msra.mxu0 %v6501_v31  ;;  %v2746_v31 = vld [vmem:[#allocation2 + $0x88] sm:$0xff] }
 0x36b   : > { %4475 = vmatpush2.bf16.msra.mxu1 %v6504_v16  ;;  %4283 = vmatprep.subr.bf16.mxu0 %v6515_v7  ;;  %v2748_v16 = vld [vmem:[#allocation2 + $0x1c8] sm:$0xff]  ;;  %v8499_v7 = vld [vmem:[#allocation2 + $0x70] ss:$360 sps:$4 sm:$0xff]  }
 0x36c   : > { %4476 = vmatprep.subr.bf16.mxu1 %v6518_v43  ;;  %v8501_v43 = vcombine.low %v2742_v45, %v2744_v41  ;;  %v8535_v45 = vld [vmem:[#allocation2 + $0x198] ss:$-216 sps:$4 sm:$0xff]  }
 0x36d   : > { %v8537_v41 = vld [vmem:[#allocation2 + $0x38] ss:$392 sps:$4 sm:$0xff]  }
 0x36e   : > { %4284 = vmatpush2.bf16.msra.mxu0 %v6513_v11  ;;  %v8503_v11 = vld [vmem:[#allocation2 + $0xbc] ss:$-16 sps:$4 sm:$0xff]  }
 0x36f   : > { %4477 = vmatpush2.bf16.msra.mxu1 %v6516_v47  ;;  %4285 = vmatprep.subr.bf16.mxu0 %v6527_v6  ;;  %v8505_v47 = vcombine.high %v2746_v31, %v2748_v16  ;;  %v8511_v6 = vld [vmem:[#allocation2 + $0xb8] ss:$-16 sps:$4 sm:$0xff]  }
 0x370   : > { %4478 = vmatprep.subr.bf16.mxu1 %v6530_v9  ;;  %3974 = vmatmul.mubr.bf16.gmra.mxu0 %v8443_v15  ;;  %v8513_v9 = vcombine.low %v2746_v31, %v2748_v16  ;;  %v8541_v16 = vld [vmem:[#allocation2 + $0x14] ss:$144 sps:$4 sm:$0xff]  }
 0x371   : > { %4167 = vmatmul.mubr.bf16.gmra.mxu1 %v8447_v29  ;;  %3983 = vmatprep.mubr.bf16.mxu0 %v8449_v44 }
 0x372   : > { %4176 = vmatprep.mubr.bf16.mxu1 %v8451_v57  ;;  %4286 = vmatpush2.bf16.msra.mxu0 %v6525_v0  ;;  %v8515_v0 = vld [vmem:[#allocation2 + $0x174] ss:$-264 sps:$4 sm:$0xff]  }
 0x373   : > { %4479 = vmatpush2.bf16.msra.mxu1 %v6528_v8  ;;  %4287 = vmatprep.subr.bf16.mxu0 %v6536_v46  ;;  %v8517_v8 = vld [vmem:[#allocation2 + $0x17c] ss:$24 sps:$4 sm:$0xff]   ;;  %v8523_v46 = vld [vmem:[#allocation2 + $0x170] ss:$-264 sps:$4 sm:$0xff]  }
 0x374   : > { %4480 = vmatprep.subr.bf16.mxu1 %v6539_v1  ;;  %v8525_v1 = vld [vmem:[#allocation2 + $0x178] ss:$24 sps:$4 sm:$0xff]  }
 0x376   : > { %4288 = vmatpush2.bf16.msra.mxu0 %v6534_v18  ;;  %v2757_v18 = vld [vmem:[#allocation2 + $0x158] sm:$0xff] }
 0x377   : > { %4481 = vmatpush2.bf16.msra.mxu1 %v6537_v54  ;;  %v2759_v54 = vld [vmem:[#allocation2 + $0x58] sm:$0xff] }
 0x378   : > { %3984 = vmatmul.mubr.bf16.gmra.mxu0 %v8463_v21  ;;  %v8539_v31 = vcombine.high %v2757_v18, %v2759_v54 }
 0x379   : > { %4177 = vmatmul.mubr.bf16.gmra.mxu1 %v8465_v13  ;;  %3993 = vmatprep.mubr.bf16.mxu0 %v8467_v60 }
 0x37a   : > { %4186 = vmatprep.mubr.bf16.mxu1 %v8469_v36 }
 0x380   : > { %3994 = vmatmul.mubr.bf16.gmra.mxu0 %v8475_v28 }
 0x381   : > { %4187 = vmatmul.mubr.bf16.gmra.mxu1 %v8477_v37  ;;  %4003 = vmatprep.mubr.bf16.mxu0 %v8479_v4 }
 0x382   : > { %4196 = vmatprep.mubr.bf16.mxu1 %v8481_v30 }
 0x388   : > { %4004 = vmatmul.mubr.bf16.gmra.mxu0 %v8487_v50 }
 0x389   : > { %4197 = vmatmul.mubr.bf16.gmra.mxu1 %v8489_v20  ;;  %4013 = vmatprep.mubr.bf16.mxu0 %v8491_v53 }
 0x38a   : > { %4206 = vmatprep.mubr.bf16.mxu1 %v8493_v42 }
 0x390   : > { %4014 = vmatmul.mubr.bf16.gmra.mxu0 %v8499_v7 }
 0x391   : > { %4207 = vmatmul.mubr.bf16.gmra.mxu1 %v8501_v43  ;;  %4023 = vmatprep.mubr.bf16.mxu0 %v8503_v11 }
 0x392   : > { %4216 = vmatprep.mubr.bf16.mxu1 %v8505_v47 }
 0x398   : > { %4024 = vmatmul.mubr.bf16.gmra.mxu0 %v8511_v6 }
 0x399   : > { %4217 = vmatmul.mubr.bf16.gmra.mxu1 %v8513_v9  ;;  %4033 = vmatprep.mubr.bf16.mxu0 %v8515_v0 }
 0x39a   : > { %4226 = vmatprep.mubr.bf16.mxu1 %v8517_v8 }
 0x3a0   : > { %4034 = vmatmul.mubr.bf16.gmra.mxu0 %v8523_v46 }
 0x3a1   : > { %4227 = vmatmul.mubr.bf16.gmra.mxu1 %v8525_v1  ;;  %4043 = vmatprep.mubr.bf16.mxu0 %v8527_v55  ;;  %v8547_v55 = vcombine.low %v2757_v18, %v2759_v54 }
 0x3a2   : > { %4236 = vmatprep.mubr.bf16.mxu1 %v8529_v26  ;;  %v8549_v26 = vld [vmem:[#allocation2 + $0x10] ss:$144 sps:$4 sm:$0xff]  }
 0x3a8   : > { %4044 = vmatmul.mubr.bf16.gmra.mxu0 %v8535_v45 }
 0x3a9   : > { %4237 = vmatmul.mubr.bf16.gmra.mxu1 %v8537_v41  ;;  %4053 = vmatprep.mubr.bf16.mxu0 %v8539_v31 }
 0x3aa   : > { %4246 = vmatprep.mubr.bf16.mxu1 %v8541_v16 }
 0x3b0   : > { %4054 = vmatmul.mubr.bf16.gmra.mxu0 %v8547_v55 }
 0x3b1   : > { %4247 = vmatmul.mubr.bf16.gmra.mxu1 %v8549_v26  ;;  %4289 = vmatprep.mubr.bf16.mxu0 %v8282_v23  ;;  %v2891_v23 = vlaneseq }
 0x3b2   : > { %4482 = vmatprep.mubr.bf16.mxu1 %v8285_v52 }
 0x3b3   : > { %v8583_v52 = vshrl.u32 %v2891_v23, 7 }
 0x3b8   : > { %4290 = vmatmul.mubr.bf16.vlgmr.msra.gmra.mxu0 %v8305_v59  ;;  %v2893_v59 = vsub.s32 0, %v8583_v52 }
 0x3b9   : > { %4483 = vmatmul.mubr.bf16.vlgmr.msra.gmra.mxu1 %v8307_v39  ;;  %4299 = vmatprep.mubr.bf16.mxu0 %v8311_v25  ;;  %v8592_v39 = vld [vmem:[%s322_s24] sm:$0xf]  ;;  %v2897_v25 = vsub.s32 1, %v8583_v52  ;;  %s6841_s24 = smov [#allocation12]  }
 0x3ba   : > { %4492 = vmatprep.mubr.bf16.mxu1 %v8313_v38  ;;  %v8596_v38 = vrot.slane %v8592_v39, %v2893_v59  ;;  %s6680_s22 = sshll.u32 %s6841_s24, 4  ;;  %s6681_s22 = int_to_ptr.vmem [resolvable:$false] %s6680_s22 }
 0x3bb   : > { %s6682_s9 = scalar_lea.vmem %s6681_s22, 16384  ;;  %p6683_p3 = scmp.lt.s32.totalorder %s8838_s17, %s6681_s22 }
 0x3bc   : > { %p6684_p8 = scmp.lt.s32.totalorder %s6682_s9, %s6676_s10 }
 0x3be   : > { %p6685_p1 = por %p6684_p8, %p6683_p3 }
 0x3c0   : > { %4300 = vmatmul.mubr.bf16.gmra.mxu0 %v8325_v63  ;;  %v8599_v63 = vrot.slane %v8592_v39, %v2897_v25  ;;  %p6686_p6 = pnand %p6685_p1, %p6679_p5 }
 0x3c1   : > { %4493 = vmatmul.mubr.bf16.gmra.mxu1 %v8327_v33  ;;  %4309 = vmatprep.mubr.bf16.mxu0 %v8329_v40 }
 0x3c2   : > { %4502 = vmatprep.mubr.bf16.mxu1 %v8331_v14 }
 0x3c8   : > { %4310 = vmatmul.mubr.bf16.gmra.mxu0 %v8342_v3 }
 0x3c9   : > { %4503 = vmatmul.mubr.bf16.gmra.mxu1 %v8344_v49  ;;  %4319 = vmatprep.mubr.bf16.mxu0 %v8349_v19 }
 0x3ca   : > { %4512 = vmatprep.mubr.bf16.mxu1 %v8351_v22 }
 0x3d0   : > { %4320 = vmatmul.mubr.bf16.gmra.mxu0 %v8361_v32 }
 0x3d1   : > { %4513 = vmatmul.mubr.bf16.gmra.mxu1 %v8367_v61  ;;  %4329 = vmatprep.mubr.bf16.mxu0 %v8369_v17 }
 0x3d2   : > { %4522 = vmatprep.mubr.bf16.mxu1 %v8371_v27 }
 0x3d8   : > { %4330 = vmatmul.mubr.bf16.gmra.mxu0 %v8385_v58 }
 0x3d9   : > { %4523 = vmatmul.mubr.bf16.gmra.mxu1 %v8387_v10  ;;  %4339 = vmatprep.mubr.bf16.mxu0 %v8389_v24 }
 0x3da   : > { %4532 = vmatprep.mubr.bf16.mxu1 %v8391_v62 }
 0x3e0   : > { %4340 = vmatmul.mubr.bf16.gmra.mxu0 %v8405_v51 }
 0x3e1   : > { %4533 = vmatmul.mubr.bf16.gmra.mxu1 %v8407_v35  ;;  %4349 = vmatprep.mubr.bf16.mxu0 %v8409_v5 }
 0x3e2   : > { %4542 = vmatprep.mubr.bf16.mxu1 %v8411_v56 }
 0x3e8   : > { %4350 = vmatmul.mubr.bf16.gmra.mxu0 %v8422_v34 }
 0x3e9   : > { %4543 = vmatmul.mubr.bf16.gmra.mxu1 %v8424_v12  ;;  %4359 = vmatprep.mubr.bf16.mxu0 %v8427_v2 }
 0x3ea   : > { %4552 = vmatprep.mubr.bf16.mxu1 %v8431_v48 }
 0x3f0   : > { %4360 = vmatmul.mubr.bf16.gmra.mxu0 %v8443_v15 }
 0x3f1   : > { %4553 = vmatmul.mubr.bf16.gmra.mxu1 %v8447_v29  ;;  %4369 = vmatprep.mubr.bf16.mxu0 %v8449_v44 }
 0x3f2   : > { %4562 = vmatprep.mubr.bf16.mxu1 %v8451_v57 }
 0x3f8   : > { %v3905_v33 = vpop.f32.mrf.mxu0  ;;  %4370 = vmatmul.mubr.bf16.gmra.mxu0 %v8463_v21 }
 0x3f9   : > { %v4098_v40 = vpop.f32.mrf.mxu1  ;;  %4563 = vmatmul.mubr.bf16.gmra.mxu1 %v8465_v13  ;;  %v3906_v14 = vadd.f32 %v3905_v33, %v8596_v38  ;;  %4379 = vmatprep.mubr.bf16.mxu0 %v8467_v60 }
 0x3fa   : > { %4572 = vmatprep.mubr.bf16.mxu1 %v8469_v36  ;;  %v3907_v3 = vpop.f32.mrf.mxu0 }
 0x3fb   : > { %v4100_v49 = vpop.f32.mrf.mxu1  ;;  %v3908_v19 = vadd.f32 %v3907_v3, %v8599_v63  ;;  %v4099_v61 = vadd.f32 %v4098_v40, %v3906_v14 }
 0x3fc   : > { %v3909_v22 = vpop.f32.mrf.mxu0 }
 0x3fd   : > { %v4102_v32 = vpop.f32.mrf.mxu1  ;;  %v4101_v17 = vadd.f32 %v4100_v49, %v3908_v19  ;;  %v3910_v27 = vadd.f32 %v3909_v22, %v8596_v38 }
 0x3fe   : > { %v3911_v58 = vpop.f32.mrf.mxu0 }
 0x3ff   : > { %v4104_v10 = vpop.f32.mrf.mxu1  ;;  %v5722_v24 = vpack.c.bf16 %v4101_v17, %v4099_v61  ;;  %v3912_v62 = vadd.f32 %v3911_v58, %v8599_v63  ;;  %v4103_v5 = vadd.f32 %v4102_v32, %v3910_v27 }
 0x400   : > { %v3915_v51 = vpop.f32.mrf.mxu0  ;;  %4380 = vmatmul.mubr.bf16.gmra.mxu0 %v8475_v28 }
 0x401   : > { %v4108_v35 = vpop.f32.mrf.mxu1  ;;  %4573 = vmatmul.mubr.bf16.gmra.mxu1 %v8477_v37  ;;  %5027 = vst [vmem:[%s7141_s2] sm:$0xff] %v5722_v24  ;;  %v4105_v56 = vadd.f32 %v4104_v10, %v3912_v62  ;;  %v3916_v34 = vadd.f32 %v3915_v51, %v8596_v38  ;;  %4389 = vmatprep.mubr.bf16.mxu0 %v8479_v4 }
 0x402   : > { %4582 = vmatprep.mubr.bf16.mxu1 %v8481_v30  ;;  %v3917_v12 = vpop.f32.mrf.mxu0 }
 0x403   : > { %v4110_v2 = vpop.f32.mrf.mxu1  ;;  %v5724_v48 = vpack.c.bf16 %v4105_v56, %v4103_v5  ;;  %v3918_v15 = vadd.f32 %v3917_v12, %v8599_v63  ;;  %v4109_v57 = vadd.f32 %v4108_v35, %v3916_v34 }
 0x404   : > { %v3919_v29 = vpop.f32.mrf.mxu0 }
 0x405   : > { %v4112_v44 = vpop.f32.mrf.mxu1  ;;  %5029 = vst [vmem:[%s7141_s2 + $0x10] sm:$0xff] %v5724_v48  ;;  %v4111_v21 = vadd.f32 %v4110_v2, %v3918_v15  ;;  %v3920_v13 = vadd.f32 %v3919_v29, %v8596_v38 }
 0x406   : > { %v3921_v60 = vpop.f32.mrf.mxu0 }
 0x407   : > { %v4114_v36 = vpop.f32.mrf.mxu1  ;;  %v5726_v28 = vpack.c.bf16 %v4111_v21, %v4109_v57  ;;  %v3922_v37 = vadd.f32 %v3921_v60, %v8599_v63  ;;  %v4113_v18 = vadd.f32 %v4112_v44, %v3920_v13 }
 0x408   : > { %v3925_v4 = vpop.f32.mrf.mxu0  ;;  %4390 = vmatmul.mubr.bf16.gmra.mxu0 %v8487_v50 }
 0x409   : > { %v4118_v30 = vpop.f32.mrf.mxu1  ;;  %4583 = vmatmul.mubr.bf16.gmra.mxu1 %v8489_v20  ;;  %5031 = vst [vmem:[%s7141_s2 + $0x20] sm:$0xff] %v5726_v28  ;;  %v4115_v54 = vadd.f32 %v4114_v36, %v3922_v37  ;;  %v3926_v23 = vadd.f32 %v3925_v4, %v8596_v38  ;;  %4399 = vmatprep.mubr.bf16.mxu0 %v8491_v53 }
 0x40a   : > { %4592 = vmatprep.mubr.bf16.mxu1 %v8493_v42  ;;  %v3927_v59 = vpop.f32.mrf.mxu0 }
 0x40b   : > { %v4120_v25 = vpop.f32.mrf.mxu1  ;;  %v5728_v33 = vpack.c.bf16 %v4115_v54, %v4113_v18  ;;  %v3928_v40 = vadd.f32 %v3927_v59, %v8599_v63  ;;  %v4119_v50 = vadd.f32 %v4118_v30, %v3926_v23 }
 0x40c   : > { %v3929_v14 = vpop.f32.mrf.mxu0 }
 0x40d   : > { %v4122_v3 = vpop.f32.mrf.mxu1  ;;  %5033 = vst [vmem:[%s7141_s2 + $0x30] sm:$0xff] %v5728_v33  ;;  %v4121_v20 = vadd.f32 %v4120_v25, %v3928_v40  ;;  %v3930_v49 = vadd.f32 %v3929_v14, %v8596_v38  ;;  %v9004_v33 = vld [vmem:[#allocation29_spill] sm:$0xff]  ;;  %v9005_v40 = vld [vmem:[#allocation30_spill] sm:$0xff] }
 0x40e   : > { %v3931_v19 = vpop.f32.mrf.mxu0 }
 0x40f   : > { %v4124_v22 = vpop.f32.mrf.mxu1  ;;  %v5730_v32 = vpack.c.bf16 %v4121_v20, %v4119_v50  ;;  %v3932_v53 = vadd.f32 %v3931_v19, %v8599_v63  ;;  %v4123_v17 = vadd.f32 %v4122_v3, %v3930_v49 }
 0x410   : > { %v3935_v61 = vpop.f32.mrf.mxu0  ;;  %4400 = vmatmul.mubr.bf16.gmra.mxu0 %v8499_v7 }
 0x411   : > { %v4128_v42 = vpop.f32.mrf.mxu1  ;;  %4593 = vmatmul.mubr.bf16.gmra.mxu1 %v8501_v43  ;;  %5035 = vst [vmem:[%s7141_s2 + $0x40] sm:$0xff] %v5730_v32  ;;  %v4125_v27 = vadd.f32 %v4124_v22, %v3932_v53  ;;  %v3936_v58 = vadd.f32 %v3935_v61, %v8596_v38  ;;  %4409 = vmatprep.mubr.bf16.mxu0 %v8503_v11 }
 0x412   : > { %4602 = vmatprep.mubr.bf16.mxu1 %v8505_v47  ;;  %v3937_v10 = vpop.f32.mrf.mxu0 }
 0x413   : > { %v4130_v24 = vpop.f32.mrf.mxu1  ;;  %v5732_v62 = vpack.c.bf16 %v4125_v27, %v4123_v17  ;;  %v3938_v51 = vadd.f32 %v3937_v10, %v8599_v63  ;;  %v4129_v7 = vadd.f32 %v4128_v42, %v3936_v58 }
 0x414   : > { %v3939_v35 = vpop.f32.mrf.mxu0 }
 0x415   : > { %v4132_v5 = vpop.f32.mrf.mxu1  ;;  %5037 = vst [vmem:[%s7141_s2 + $0x50] sm:$0xff] %v5732_v62  ;;  %v4131_v43 = vadd.f32 %v4130_v24, %v3938_v51  ;;  %v3940_v56 = vadd.f32 %v3939_v35, %v8596_v38 }
 0x416   : > { %v3941_v34 = vpop.f32.mrf.mxu0 }
 0x417   : > { %v4134_v12 = vpop.f32.mrf.mxu1  ;;  %v5734_v2 = vpack.c.bf16 %v4131_v43, %v4129_v7  ;;  %v3942_v11 = vadd.f32 %v3941_v34, %v8599_v63  ;;  %v4133_v15 = vadd.f32 %v4132_v5, %v3940_v56 }
 0x418   : > { %v3945_v48 = vpop.f32.mrf.mxu0  ;;  %4410 = vmatmul.mubr.bf16.gmra.mxu0 %v8511_v6 }
 0x419   : > { %v4138_v47 = vpop.f32.mrf.mxu1  ;;  %4603 = vmatmul.mubr.bf16.gmra.mxu1 %v8513_v9  ;;  %5039 = vst [vmem:[%s7141_s2 + $0x60] sm:$0xff] %v5734_v2  ;;  %v4135_v29 = vadd.f32 %v4134_v12, %v3942_v11  ;;  %v3946_v44 = vadd.f32 %v3945_v48, %v8596_v38  ;;  %4419 = vmatprep.mubr.bf16.mxu0 %v8515_v0 }
 0x41a   : > { %4612 = vmatprep.mubr.bf16.mxu1 %v8517_v8  ;;  %v3947_v57 = vpop.f32.mrf.mxu0 }
 0x41b   : > { %v4140_v21 = vpop.f32.mrf.mxu1  ;;  %v5736_v13 = vpack.c.bf16 %v4135_v29, %v4133_v15  ;;  %v3948_v60 = vadd.f32 %v3947_v57, %v8599_v63  ;;  %v4139_v6 = vadd.f32 %v4138_v47, %v3946_v44 }
 0x41c   : > { %v3949_v36 = vpop.f32.mrf.mxu0 }
 0x41d   : > { %v4142_v28 = vpop.f32.mrf.mxu1  ;;  %5041 = vst [vmem:[%s7141_s2 + $0x70] sm:$0xff] %v5736_v13  ;;  %v4141_v9 = vadd.f32 %v4140_v21, %v3948_v60  ;;  %v3950_v37 = vadd.f32 %v3949_v36, %v8596_v38 }
 0x41e   : > { %v3951_v4 = vpop.f32.mrf.mxu0 }
 0x41f   : > { %v4144_v30 = vpop.f32.mrf.mxu1  ;;  %v5738_v18 = vpack.c.bf16 %v4141_v9, %v4139_v6  ;;  %v3952_v0 = vadd.f32 %v3951_v4, %v8599_v63  ;;  %v4143_v23 = vadd.f32 %v4142_v28, %v3950_v37 }
 0x420   : > { %v3955_v54 = vpop.f32.mrf.mxu0  ;;  %4420 = vmatmul.mubr.bf16.gmra.mxu0 %v8523_v46 }
 0x421   : > { %v4148_v8 = vpop.f32.mrf.mxu1  ;;  %4613 = vmatmul.mubr.bf16.gmra.mxu1 %v8525_v1  ;;  %5043 = vst [vmem:[%s7141_s2 + $0x80] sm:$0xff] %v5738_v18  ;;  %v4145_v59 = vadd.f32 %v4144_v30, %v3952_v0  ;;  %v3956_v25 = vadd.f32 %v3955_v54, %v8596_v38  ;;  %4429 = vmatprep.mubr.bf16.mxu0 %v9004_v33 }
 0x422   : > { %4622 = vmatprep.mubr.bf16.mxu1 %v9005_v40  ;;  %v3957_v14 = vpop.f32.mrf.mxu0 }
 0x423   : > { %v4150_v3 = vpop.f32.mrf.mxu1  ;;  %v5740_v50 = vpack.c.bf16 %v4145_v59, %v4143_v23  ;;  %v3958_v20 = vadd.f32 %v3957_v14, %v8599_v63  ;;  %v4149_v46 = vadd.f32 %v4148_v8, %v3956_v25 }
 0x424   : > { %v3959_v49 = vpop.f32.mrf.mxu0 }
 0x425   : > { %v4152_v19 = vpop.f32.mrf.mxu1  ;;  %5045 = vst [vmem:[%s7141_s2 + $0x90] sm:$0xff] %v5740_v50  ;;  %v4151_v1 = vadd.f32 %v4150_v3, %v3958_v20  ;;  %v3960_v22 = vadd.f32 %v3959_v49, %v8596_v38 }
 0x426   : > { %v3961_v32 = vpop.f32.mrf.mxu0 }
 0x427   : > { %v4154_v53 = vpop.f32.mrf.mxu1  ;;  %v5742_v61 = vpack.c.bf16 %v4151_v1, %v4149_v46  ;;  %v3962_v42 = vadd.f32 %v3961_v32, %v8599_v63  ;;  %v4153_v58 = vadd.f32 %v4152_v19, %v3960_v22 }
 0x428   : > { %v3965_v17 = vpop.f32.mrf.mxu0  ;;  %4430 = vmatmul.mubr.bf16.gmra.mxu0 %v8535_v45 }
 0x429   : > { %v4158_v27 = vpop.f32.mrf.mxu1  ;;  %4623 = vmatmul.mubr.bf16.gmra.mxu1 %v8537_v41  ;;  %5047 = vst [vmem:[%s7141_s2 + $0xa0] sm:$0xff] %v5742_v61  ;;  %v4155_v10 = vadd.f32 %v4154_v53, %v3962_v42  ;;  %v3966_v24 = vadd.f32 %v3965_v17, %v8596_v38  ;;  %4439 = vmatprep.mubr.bf16.mxu0 %v8539_v31 }
 0x42a   : > { %4632 = vmatprep.mubr.bf16.mxu1 %v8541_v16  ;;  %v3967_v62 = vpop.f32.mrf.mxu0 }
 0x42b   : > { %v4160_v51 = vpop.f32.mrf.mxu1  ;;  %v5744_v35 = vpack.c.bf16 %v4155_v10, %v4153_v58  ;;  %v3968_v5 = vadd.f32 %v3967_v62, %v8599_v63  ;;  %v4159_v45 = vadd.f32 %v4158_v27, %v3966_v24 }
 0x42c   : > { %v3969_v7 = vpop.f32.mrf.mxu0 }
 0x42d   : > { %v4162_v43 = vpop.f32.mrf.mxu1  ;;  %5049 = vst [vmem:[%s7141_s2 + $0xb0] sm:$0xff] %v5744_v35  ;;  %v4161_v41 = vadd.f32 %v4160_v51, %v3968_v5  ;;  %v3970_v56 = vadd.f32 %v3969_v7, %v8596_v38 }
 0x42e   : > { %v3971_v34 = vpop.f32.mrf.mxu0 }
 0x42f   : > { %v4164_v12 = vpop.f32.mrf.mxu1  ;;  %v5746_v2 = vpack.c.bf16 %v4161_v41, %v4159_v45  ;;  %v3972_v31 = vadd.f32 %v3971_v34, %v8599_v63  ;;  %v4163_v48 = vadd.f32 %v4162_v43, %v3970_v56 }
 0x430   : > { %v3975_v16 = vpop.f32.mrf.mxu0  ;;  %4440 = vmatmul.mubr.bf16.gmra.mxu0 %v8547_v55 }
 0x431   : > { %v4168_v11 = vpop.f32.mrf.mxu1  ;;  %4633 = vmatmul.mubr.bf16.gmra.mxu1 %v8549_v26  ;;  %5051 = vst [vmem:[%s7141_s2 + $0xc0] sm:$0xff] %v5746_v2  ;;  %v4165_v47 = vadd.f32 %v4164_v12, %v3972_v31  ;;  %v3976_v15 = vadd.f32 %v3975_v16, %v8596_v38 }
 0x432   : > { %v3977_v29 = vpop.f32.mrf.mxu0 }
 0x433   : > { %v4170_v44 = vpop.f32.mrf.mxu1  ;;  %v5748_v57 = vpack.c.bf16 %v4165_v47, %v4163_v48  ;;  %v3978_v21 = vadd.f32 %v3977_v29, %v8599_v63  ;;  %v4169_v36 = vadd.f32 %v4168_v11, %v3976_v15 }
 0x434   : > { %v3979_v13 = vpop.f32.mrf.mxu0 }
 0x435   : > { %v4172_v60 = vpop.f32.mrf.mxu1  ;;  %5053 = vst [vmem:[%s7141_s2 + $0xd0] sm:$0xff] %v5748_v57  ;;  %v4171_v28 = vadd.f32 %v4170_v44, %v3978_v21  ;;  %v3980_v55 = vadd.f32 %v3979_v13, %v8596_v38 }
 0x436   : > { %v3981_v6 = vpop.f32.mrf.mxu0 }
 0x437   : > { %v4174_v26 = vpop.f32.mrf.mxu1  ;;  %v5750_v9 = vpack.c.bf16 %v4171_v28, %v4169_v36  ;;  %v3982_v37 = vadd.f32 %v3981_v6, %v8599_v63  ;;  %v4173_v18 = vadd.f32 %v4172_v60, %v3980_v55 }
 0x438   : > { %v3985_v4 = vpop.f32.mrf.mxu0 }
 0x439   : > { %v4178_v30 = vpop.f32.mrf.mxu1  ;;  %5055 = vst [vmem:[%s7141_s2 + $0xe0] sm:$0xff] %v5750_v9  ;;  %v4175_v0 = vadd.f32 %v4174_v26, %v3982_v37  ;;  %v3986_v54 = vadd.f32 %v3985_v4, %v8596_v38 }
 0x43a   : > { %v3987_v8 = vpop.f32.mrf.mxu0 }
 0x43b   : > { %v4180_v23 = vpop.f32.mrf.mxu1  ;;  %v5752_v59 = vpack.c.bf16 %v4175_v0, %v4173_v18  ;;  %v3988_v25 = vadd.f32 %v3987_v8, %v8599_v63  ;;  %v4179_v14 = vadd.f32 %v4178_v30, %v3986_v54 }
 0x43c   : > { %v3989_v33 = vpop.f32.mrf.mxu0 }
 0x43d   : > { %v4182_v40 = vpop.f32.mrf.mxu1  ;;  %5057 = vst [vmem:[%s7141_s2 + $0xf0] sm:$0xff] %v5752_v59  ;;  %v4181_v3 = vadd.f32 %v4180_v23, %v3988_v25  ;;  %v3990_v50 = vadd.f32 %v3989_v33, %v8596_v38 }
 0x43e   : > { %v3991_v20 = vpop.f32.mrf.mxu0 }
 0x43f   : > { %v4184_v49 = vpop.f32.mrf.mxu1  ;;  %v5754_v19 = vpack.c.bf16 %v4181_v3, %v4179_v14  ;;  %v3992_v46 = vadd.f32 %v3991_v20, %v8599_v63  ;;  %v4183_v32 = vadd.f32 %v4182_v40, %v3990_v50 }
 0x440   : > { %v3995_v1 = vpop.f32.mrf.mxu0 }
 0x441   : > { %v4188_v22 = vpop.f32.mrf.mxu1  ;;  %5059 = vst [vmem:[%s7141_s2 + $0x100] sm:$0xff] %v5754_v19  ;;  %v4185_v53 = vadd.f32 %v4184_v49, %v3992_v46  ;;  %v3996_v61 = vadd.f32 %v3995_v1, %v8596_v38 }
 0x442   : > { %v3997_v42 = vpop.f32.mrf.mxu0 }
 0x443   : > { %v4190_v17 = vpop.f32.mrf.mxu1  ;;  %v5756_v27 = vpack.c.bf16 %v4185_v53, %v4183_v32  ;;  %v3998_v58 = vadd.f32 %v3997_v42, %v8599_v63  ;;  %v4189_v62 = vadd.f32 %v4188_v22, %v3996_v61 }
 0x444   : > { %v3999_v10 = vpop.f32.mrf.mxu0 }
 0x445   : > { %v4192_v24 = vpop.f32.mrf.mxu1  ;;  %5061 = vst [vmem:[%s7141_s2 + $0x110] sm:$0xff] %v5756_v27  ;;  %v4191_v51 = vadd.f32 %v4190_v17, %v3998_v58  ;;  %v4000_v35 = vadd.f32 %v3999_v10, %v8596_v38 }
 0x446   : > { %v4001_v5 = vpop.f32.mrf.mxu0 }
 0x447   : > { %v4194_v7 = vpop.f32.mrf.mxu1  ;;  %v5758_v43 = vpack.c.bf16 %v4191_v51, %v4189_v62  ;;  %v4002_v45 = vadd.f32 %v4001_v5, %v8599_v63  ;;  %v4193_v34 = vadd.f32 %v4192_v24, %v4000_v35 }
 0x448   : > { %v4005_v41 = vpop.f32.mrf.mxu0 }
 0x449   : > { %v4198_v56 = vpop.f32.mrf.mxu1  ;;  %5063 = vst [vmem:[%s7141_s2 + $0x120] sm:$0xff] %v5758_v43  ;;  %v4195_v12 = vadd.f32 %v4194_v7, %v4002_v45  ;;  %v4006_v2 = vadd.f32 %v4005_v41, %v8596_v38 }
 0x44a   : > { %v4007_v31 = vpop.f32.mrf.mxu0 }
 0x44b   : > { %v4200_v16 = vpop.f32.mrf.mxu1  ;;  %v5760_v11 = vpack.c.bf16 %v4195_v12, %v4193_v34  ;;  %v4008_v48 = vadd.f32 %v4007_v31, %v8599_v63  ;;  %v4199_v29 = vadd.f32 %v4198_v56, %v4006_v2 }
 0x44c   : > { %v4009_v47 = vpop.f32.mrf.mxu0 }
 0x44d   : > { %v4202_v15 = vpop.f32.mrf.mxu1  ;;  %5065 = vst [vmem:[%s7141_s2 + $0x130] sm:$0xff] %v5760_v11  ;;  %v4201_v44 = vadd.f32 %v4200_v16, %v4008_v48  ;;  %v4010_v57 = vadd.f32 %v4009_v47, %v8596_v38 }
 0x44e   : > { %v4011_v21 = vpop.f32.mrf.mxu0 }
 0x44f   : > { %v4204_v13 = vpop.f32.mrf.mxu1  ;;  %v5762_v60 = vpack.c.bf16 %v4201_v44, %v4199_v29  ;;  %v4012_v36 = vadd.f32 %v4011_v21, %v8599_v63  ;;  %v4203_v6 = vadd.f32 %v4202_v15, %v4010_v57 }
 0x450   : > { %v4015_v28 = vpop.f32.mrf.mxu0 }
 0x451   : > { %v4208_v55 = vpop.f32.mrf.mxu1  ;;  %5067 = vst [vmem:[%s7141_s2 + $0x140] sm:$0xff] %v5762_v60  ;;  %v4205_v26 = vadd.f32 %v4204_v13, %v4012_v36  ;;  %v4016_v9 = vadd.f32 %v4015_v28, %v8596_v38 }
 0x452   : > { %v4017_v37 = vpop.f32.mrf.mxu0 }
 0x453   : > { %v4210_v4 = vpop.f32.mrf.mxu1  ;;  %v5764_v30 = vpack.c.bf16 %v4205_v26, %v4203_v6  ;;  %v4018_v18 = vadd.f32 %v4017_v37, %v8599_v63  ;;  %v4209_v8 = vadd.f32 %v4208_v55, %v4016_v9 }
 0x454   : > { %v4019_v0 = vpop.f32.mrf.mxu0 }
 0x455   : > { %v4212_v54 = vpop.f32.mrf.mxu1  ;;  %5069 = vst [vmem:[%s7141_s2 + $0x150] sm:$0xff] %v5764_v30  ;;  %v4211_v23 = vadd.f32 %v4210_v4, %v4018_v18  ;;  %v4020_v59 = vadd.f32 %v4019_v0, %v8596_v38 }
 0x456   : > { %v4021_v25 = vpop.f32.mrf.mxu0 }
 0x457   : > { %v4214_v33 = vpop.f32.mrf.mxu1  ;;  %v5766_v40 = vpack.c.bf16 %v4211_v23, %v4209_v8  ;;  %v4022_v14 = vadd.f32 %v4021_v25, %v8599_v63  ;;  %v4213_v20 = vadd.f32 %v4212_v54, %v4020_v59 }
 0x458   : > { %v4025_v3 = vpop.f32.mrf.mxu0 }
 0x459   : > { %v4218_v50 = vpop.f32.mrf.mxu1  ;;  %5071 = vst [vmem:[%s7141_s2 + $0x160] sm:$0xff] %v5766_v40  ;;  %v4215_v49 = vadd.f32 %v4214_v33, %v4022_v14  ;;  %v4026_v19 = vadd.f32 %v4025_v3, %v8596_v38  ;;  %v2901_v14 = vsub.s32 2, %v8583_v52 }
 0x45a   : > { %v4027_v46 = vpop.f32.mrf.mxu0 }
 0x45b   : > { %v4220_v1 = vpop.f32.mrf.mxu1  ;;  %v5768_v22 = vpack.c.bf16 %v4215_v49, %v4213_v20  ;;  %v4028_v32 = vadd.f32 %v4027_v46, %v8599_v63  ;;  %v4219_v42 = vadd.f32 %v4218_v50, %v4026_v19  ;;  %v2905_v19 = vsub.s32 3, %v8583_v52 }
 0x45c   : > { %v4029_v53 = vpop.f32.mrf.mxu0 }
 0x45d   : > { %v4222_v61 = vpop.f32.mrf.mxu1  ;;  %5073 = vst [vmem:[%s7141_s2 + $0x170] sm:$0xff] %v5768_v22  ;;  %v4221_v17 = vadd.f32 %v4220_v1, %v4028_v32  ;;  %v4030_v27 = vadd.f32 %v4029_v53, %v8596_v38 }
 0x45e   : > { %v4031_v58 = vpop.f32.mrf.mxu0 }
 0x45f   : > { %v4224_v10 = vpop.f32.mrf.mxu1  ;;  %v5770_v24 = vpack.c.bf16 %v4221_v17, %v4219_v42  ;;  %v4032_v62 = vadd.f32 %v4031_v58, %v8599_v63  ;;  %v4223_v5 = vadd.f32 %v4222_v61, %v4030_v27  ;;  %v8727_v61 = vrot.slane %v8592_v39, %v2901_v14 }
 0x460   : > { %v4035_v51 = vpop.f32.mrf.mxu0 }
 0x461   : > { %v4228_v35 = vpop.f32.mrf.mxu1  ;;  %5075 = vst [vmem:[%s7141_s2 + $0x180] sm:$0xff] %v5770_v24  ;;  %v4225_v7 = vadd.f32 %v4224_v10, %v4032_v62  ;;  %v4036_v43 = vadd.f32 %v4035_v51, %v8596_v38  ;;  %v8731_v10 = vrot.slane %v8592_v39, %v2905_v19 }
 0x462   : > { %v4037_v45 = vpop.f32.mrf.mxu0 }
 0x463   : > { %v4230_v41 = vpop.f32.mrf.mxu1  ;;  %v5772_v56 = vpack.c.bf16 %v4225_v7, %v4223_v5  ;;  %v4038_v34 = vadd.f32 %v4037_v45, %v8599_v63  ;;  %v4229_v31 = vadd.f32 %v4228_v35, %v4036_v43 }
 0x464   : > { %v4039_v12 = vpop.f32.mrf.mxu0 }
 0x465   : > { %v4232_v2 = vpop.f32.mrf.mxu1  ;;  %5077 = vst [vmem:[%s7141_s2 + $0x190] sm:$0xff] %v5772_v56  ;;  %v4231_v16 = vadd.f32 %v4230_v41, %v4038_v34  ;;  %v4040_v11 = vadd.f32 %v4039_v12, %v8596_v38 }
 0x466   : > { %v4041_v48 = vpop.f32.mrf.mxu0 }
 0x467   : > { %v4234_v47 = vpop.f32.mrf.mxu1  ;;  %v5774_v15 = vpack.c.bf16 %v4231_v16, %v4229_v31  ;;  %v4042_v29 = vadd.f32 %v4041_v48, %v8599_v63  ;;  %v4233_v21 = vadd.f32 %v4232_v2, %v4040_v11 }
 0x468   : > { %v4045_v44 = vpop.f32.mrf.mxu0 }
 0x469   : > { %v4238_v57 = vpop.f32.mrf.mxu1  ;;  %5079 = vst [vmem:[%s7141_s2 + $0x1a0] sm:$0xff] %v5774_v15  ;;  %v4235_v13 = vadd.f32 %v4234_v47, %v4042_v29  ;;  %v4046_v60 = vadd.f32 %v4045_v44, %v8596_v38 }
 0x46a   : > { %v4047_v36 = vpop.f32.mrf.mxu0 }
 0x46b   : > { %v4240_v28 = vpop.f32.mrf.mxu1  ;;  %v5776_v55 = vpack.c.bf16 %v4235_v13, %v4233_v21  ;;  %v4048_v6 = vadd.f32 %v4047_v36, %v8599_v63  ;;  %v4239_v37 = vadd.f32 %v4238_v57, %v4046_v60 }
 0x46c   : > { %v4049_v26 = vpop.f32.mrf.mxu0 }
 0x46d   : > { %v4242_v9 = vpop.f32.mrf.mxu1  ;;  %5081 = vst [vmem:[%s7141_s2 + $0x1b0] sm:$0xff] %v5776_v55  ;;  %v4241_v4 = vadd.f32 %v4240_v28, %v4048_v6  ;;  %v4050_v30 = vadd.f32 %v4049_v26, %v8596_v38 }
 0x46e   : > { %v4051_v18 = vpop.f32.mrf.mxu0 }
 0x46f   : > { %v4244_v0 = vpop.f32.mrf.mxu1  ;;  %v5778_v54 = vpack.c.bf16 %v4241_v4, %v4239_v37  ;;  %v4052_v8 = vadd.f32 %v4051_v18, %v8599_v63  ;;  %v4243_v25 = vadd.f32 %v4242_v9, %v4050_v30 }
 0x470   : > { %v4055_v23 = vpop.f32.mrf.mxu0 }
 0x471   : > { %v4248_v59 = vpop.f32.mrf.mxu1  ;;  %5083 = vst [vmem:[%s7141_s2 + $0x1c0] sm:$0xff] %v5778_v54  ;;  %v4245_v33 = vadd.f32 %v4244_v0, %v4052_v8  ;;  %v4056_v40 = vadd.f32 %v4055_v23, %v8596_v38 }
 0x472   : > { %v4057_v3 = vpop.f32.mrf.mxu0 }
 0x473   : > { %v4250_v50 = vpop.f32.mrf.mxu1  ;;  %v5780_v20 = vpack.c.bf16 %v4245_v33, %v4243_v25  ;;  %v4058_v49 = vadd.f32 %v4057_v3, %v8599_v63  ;;  %v4249_v22 = vadd.f32 %v4248_v59, %v4056_v40 }
 0x474   : > { %v4059_v46 = vpop.f32.mrf.mxu0 }
 0x475   : > { %v4252_v1 = vpop.f32.mrf.mxu1  ;;  %5085 = vst [vmem:[%s7141_s2 + $0x1d0] sm:$0xff] %v5780_v20  ;;  %v4251_v32 = vadd.f32 %v4250_v50, %v4058_v49  ;;  %v4060_v53 = vadd.f32 %v4059_v46, %v8596_v38 }
 0x476   : > { %v4061_v42 = vpop.f32.mrf.mxu0 }
 0x477   : > { %v4254_v17 = vpop.f32.mrf.mxu1  ;;  %v5782_v27 = vpack.c.bf16 %v4251_v32, %v4249_v22  ;;  %v4062_v58 = vadd.f32 %v4061_v42, %v8599_v63  ;;  %v4253_v62 = vadd.f32 %v4252_v1, %v4060_v53 }
 0x478   : > { %v4291_v52 = vpop.f32.mrf.mxu0 }
 0x479   : > { %v4484_v24 = vpop.f32.mrf.mxu1  ;;  %5087 = vst [vmem:[%s7141_s2 + $0x1e0] sm:$0xff] %v5782_v27  ;;  %v4255_v51 = vadd.f32 %v4254_v17, %v4062_v58  ;;  %v4292_v35 = vadd.f32 %v4291_v52, %v8727_v61 }
 0x47a   : > { %v4293_v38 = vpop.f32.mrf.mxu0 }
 0x47b   : > { %v4486_v5 = vpop.f32.mrf.mxu1  ;;  %v5784_v7 = vpack.c.bf16 %v4255_v51, %v4253_v62  ;;  %v4294_v43 = vadd.f32 %v4293_v38, %v8731_v10  ;;  %v4485_v63 = vadd.f32 %v4484_v24, %v4292_v35 }
 0x47c   : > { %v4295_v45 = vpop.f32.mrf.mxu0 }
 0x47d   : > { %v4488_v41 = vpop.f32.mrf.mxu1  ;;  %5089 = vst [vmem:[%s7141_s2 + $0x1f0] sm:$0xff] %v5784_v7  ;;  %v4487_v56 = vadd.f32 %v4486_v5, %v4294_v43  ;;  %v4296_v39 = vadd.f32 %v4295_v45, %v8727_v61 }
 0x47e   : > { %v4297_v34 = vpop.f32.mrf.mxu0 }
 0x47f   : > { %v4490_v12 = vpop.f32.mrf.mxu1  ;;  %v5723_v2 = vpack.c.bf16 %v4487_v56, %v4485_v63  ;;  %v4298_v31 = vadd.f32 %v4297_v34, %v8731_v10  ;;  %v4489_v48 = vadd.f32 %v4488_v41, %v4296_v39 }
 0x480   : > { %v4301_v16 = vpop.f32.mrf.mxu0 }
 0x481   : > { %v4494_v11 = vpop.f32.mrf.mxu1  ;;  %5028 = vst [vmem:[%s7141_s2 + $0x8] sm:$0xff] %v5723_v2  ;;  %v4491_v47 = vadd.f32 %v4490_v12, %v4298_v31  ;;  %v4302_v15 = vadd.f32 %v4301_v16, %v8727_v61 }
 0x482   : > { %v4303_v29 = vpop.f32.mrf.mxu0 }
 0x483   : > { %v4496_v44 = vpop.f32.mrf.mxu1  ;;  %v5725_v57 = vpack.c.bf16 %v4491_v47, %v4489_v48  ;;  %v4304_v21 = vadd.f32 %v4303_v29, %v8731_v10  ;;  %v4495_v36 = vadd.f32 %v4494_v11, %v4302_v15 }
 0x484   : > { %v4305_v13 = vpop.f32.mrf.mxu0 }
 0x485   : > { %v4498_v60 = vpop.f32.mrf.mxu1  ;;  %5030 = vst [vmem:[%s7141_s2 + $0x18] sm:$0xff] %v5725_v57  ;;  %v4497_v28 = vadd.f32 %v4496_v44, %v4304_v21  ;;  %v4306_v55 = vadd.f32 %v4305_v13, %v8727_v61 }
 0x486   : > { %v4307_v6 = vpop.f32.mrf.mxu0 }
 0x487   : > { %v4500_v26 = vpop.f32.mrf.mxu1  ;;  %v5727_v9 = vpack.c.bf16 %v4497_v28, %v4495_v36  ;;  %v4308_v37 = vadd.f32 %v4307_v6, %v8731_v10  ;;  %v4499_v18 = vadd.f32 %v4498_v60, %v4306_v55 }
 0x488   : > { %v4311_v4 = vpop.f32.mrf.mxu0 }
 0x489   : > { %v4504_v30 = vpop.f32.mrf.mxu1  ;;  %5032 = vst [vmem:[%s7141_s2 + $0x28] sm:$0xff] %v5727_v9  ;;  %v4501_v0 = vadd.f32 %v4500_v26, %v4308_v37  ;;  %v4312_v54 = vadd.f32 %v4311_v4, %v8727_v61 }
 0x48a   : > { %v4313_v8 = vpop.f32.mrf.mxu0 }
 0x48b   : > { %v4506_v23 = vpop.f32.mrf.mxu1  ;;  %v5729_v59 = vpack.c.bf16 %v4501_v0, %v4499_v18  ;;  %v4314_v25 = vadd.f32 %v4313_v8, %v8731_v10  ;;  %v4505_v14 = vadd.f32 %v4504_v30, %v4312_v54 }
 0x48c   : > { %v4315_v33 = vpop.f32.mrf.mxu0 }
 0x48d   : > { %v4508_v40 = vpop.f32.mrf.mxu1  ;;  %5034 = vst [vmem:[%s7141_s2 + $0x38] sm:$0xff] %v5729_v59  ;;  %v4507_v3 = vadd.f32 %v4506_v23, %v4314_v25  ;;  %v4316_v50 = vadd.f32 %v4315_v33, %v8727_v61 }
 0x48e   : > { %v4317_v20 = vpop.f32.mrf.mxu0 }
 0x48f   : > { %v4510_v49 = vpop.f32.mrf.mxu1  ;;  %v5731_v19 = vpack.c.bf16 %v4507_v3, %v4505_v14  ;;  %v4318_v46 = vadd.f32 %v4317_v20, %v8731_v10  ;;  %v4509_v32 = vadd.f32 %v4508_v40, %v4316_v50 }
 0x490   : > { %v4321_v1 = vpop.f32.mrf.mxu0 }
 0x491   : > { %v4514_v22 = vpop.f32.mrf.mxu1  ;;  %5036 = vst [vmem:[%s7141_s2 + $0x48] sm:$0xff] %v5731_v19  ;;  %v4511_v53 = vadd.f32 %v4510_v49, %v4318_v46  ;;  %v4322_v42 = vadd.f32 %v4321_v1, %v8727_v61 }
 0x492   : > { %v4323_v17 = vpop.f32.mrf.mxu0 }
 0x493   : > { %v4516_v27 = vpop.f32.mrf.mxu1  ;;  %v5733_v58 = vpack.c.bf16 %v4511_v53, %v4509_v32  ;;  %v4324_v52 = vadd.f32 %v4323_v17, %v8731_v10  ;;  %v4515_v51 = vadd.f32 %v4514_v22, %v4322_v42 }
 0x494   : > { %v4325_v24 = vpop.f32.mrf.mxu0 }
 0x495   : > { %v4518_v62 = vpop.f32.mrf.mxu1  ;;  %5038 = vst [vmem:[%s7141_s2 + $0x58] sm:$0xff] %v5733_v58  ;;  %v4517_v35 = vadd.f32 %v4516_v27, %v4324_v52  ;;  %v4326_v38 = vadd.f32 %v4325_v24, %v8727_v61 }
 0x496   : > { %v4327_v5 = vpop.f32.mrf.mxu0 }
 0x497   : > { %v4520_v7 = vpop.f32.mrf.mxu1  ;;  %v5735_v43 = vpack.c.bf16 %v4517_v35, %v4515_v51  ;;  %v4328_v45 = vadd.f32 %v4327_v5, %v8731_v10  ;;  %v4519_v56 = vadd.f32 %v4518_v62, %v4326_v38 }
 0x498   : > { %v4331_v41 = vpop.f32.mrf.mxu0 }
 0x499   : > { %v4524_v63 = vpop.f32.mrf.mxu1  ;;  %5040 = vst [vmem:[%s7141_s2 + $0x68] sm:$0xff] %v5735_v43  ;;  %v4521_v39 = vadd.f32 %v4520_v7, %v4328_v45  ;;  %v4332_v34 = vadd.f32 %v4331_v41, %v8727_v61 }
 0x49a   : > { %v4333_v12 = vpop.f32.mrf.mxu0 }
 0x49b   : > { %v4526_v2 = vpop.f32.mrf.mxu1  ;;  %v5737_v31 = vpack.c.bf16 %v4521_v39, %v4519_v56  ;;  %v4334_v16 = vadd.f32 %v4333_v12, %v8731_v10  ;;  %v4525_v47 = vadd.f32 %v4524_v63, %v4332_v34 }
 0x49c   : > { %v4335_v11 = vpop.f32.mrf.mxu0 }
 0x49d   : > { %v4528_v48 = vpop.f32.mrf.mxu1  ;;  %5042 = vst [vmem:[%s7141_s2 + $0x78] sm:$0xff] %v5737_v31  ;;  %v4527_v15 = vadd.f32 %v4526_v2, %v4334_v16  ;;  %v4336_v29 = vadd.f32 %v4335_v11, %v8727_v61 }
 0x49e   : > { %v4337_v44 = vpop.f32.mrf.mxu0 }
 0x49f   : > { %v4530_v57 = vpop.f32.mrf.mxu1  ;;  %v5739_v21 = vpack.c.bf16 %v4527_v15, %v4525_v47  ;;  %v4338_v13 = vadd.f32 %v4337_v44, %v8731_v10  ;;  %v4529_v28 = vadd.f32 %v4528_v48, %v4336_v29 }
 0x4a0   : > { %v4341_v60 = vpop.f32.mrf.mxu0 }
 0x4a1   : > { %v4534_v36 = vpop.f32.mrf.mxu1  ;;  %5044 = vst [vmem:[%s7141_s2 + $0x88] sm:$0xff] %v5739_v21  ;;  %v4531_v55 = vadd.f32 %v4530_v57, %v4338_v13  ;;  %v4342_v6 = vadd.f32 %v4341_v60, %v8727_v61 }
 0x4a2   : > { %v4343_v26 = vpop.f32.mrf.mxu0 }
 0x4a3   : > { %v4536_v9 = vpop.f32.mrf.mxu1  ;;  %v5741_v37 = vpack.c.bf16 %v4531_v55, %v4529_v28  ;;  %v4344_v4 = vadd.f32 %v4343_v26, %v8731_v10  ;;  %v4535_v0 = vadd.f32 %v4534_v36, %v4342_v6 }
 0x4a4   : > { %v4345_v30 = vpop.f32.mrf.mxu0 }
 0x4a5   : > { %v4538_v18 = vpop.f32.mrf.mxu1  ;;  %5046 = vst [vmem:[%s7141_s2 + $0x98] sm:$0xff] %v5741_v37  ;;  %v4537_v54 = vadd.f32 %v4536_v9, %v4344_v4  ;;  %v4346_v8 = vadd.f32 %v4345_v30, %v8727_v61 }
 0x4a6   : > { %v4347_v23 = vpop.f32.mrf.mxu0 }
 0x4a7   : > { %v4540_v59 = vpop.f32.mrf.mxu1  ;;  %v5743_v25 = vpack.c.bf16 %v4537_v54, %v4535_v0  ;;  %v4348_v33 = vadd.f32 %v4347_v23, %v8731_v10  ;;  %v4539_v3 = vadd.f32 %v4538_v18, %v4346_v8 }
 0x4a8   : > { %v4351_v40 = vpop.f32.mrf.mxu0 }
 0x4a9   : > { %v4544_v14 = vpop.f32.mrf.mxu1  ;;  %5048 = vst [vmem:[%s7141_s2 + $0xa8] sm:$0xff] %v5743_v25  ;;  %v4541_v50 = vadd.f32 %v4540_v59, %v4348_v33  ;;  %v4352_v20 = vadd.f32 %v4351_v40, %v8727_v61 }
 0x4aa   : > { %v4353_v49 = vpop.f32.mrf.mxu0 }
 0x4ab   : > { %v4546_v19 = vpop.f32.mrf.mxu1  ;;  %v5745_v46 = vpack.c.bf16 %v4541_v50, %v4539_v3  ;;  %v4354_v1 = vadd.f32 %v4353_v49, %v8731_v10  ;;  %v4545_v53 = vadd.f32 %v4544_v14, %v4352_v20 }
 0x4ac   : > { %v4355_v22 = vpop.f32.mrf.mxu0 }
 0x4ad   : > { %v4548_v32 = vpop.f32.mrf.mxu1  ;;  %5050 = vst [vmem:[%s7141_s2 + $0xb8] sm:$0xff] %v5745_v46  ;;  %v4547_v42 = vadd.f32 %v4546_v19, %v4354_v1  ;;  %v4356_v17 = vadd.f32 %v4355_v22, %v8727_v61 }
 0x4ae   : > { %v4357_v27 = vpop.f32.mrf.mxu0 }
 0x4af   : > { %v4550_v58 = vpop.f32.mrf.mxu1  ;;  %v5747_v52 = vpack.c.bf16 %v4547_v42, %v4545_v53  ;;  %v4358_v24 = vadd.f32 %v4357_v27, %v8731_v10  ;;  %v4549_v35 = vadd.f32 %v4548_v32, %v4356_v17 }
 0x4b0   : > { %v4361_v62 = vpop.f32.mrf.mxu0 }
 0x4b1   : > { %v4554_v51 = vpop.f32.mrf.mxu1  ;;  %5052 = vst [vmem:[%s7141_s2 + $0xc8] sm:$0xff] %v5747_v52  ;;  %v4551_v38 = vadd.f32 %v4550_v58, %v4358_v24  ;;  %v4362_v5 = vadd.f32 %v4361_v62, %v8727_v61 }
 0x4b2   : > { %v4363_v7 = vpop.f32.mrf.mxu0 }
 0x4b3   : > { %v4556_v43 = vpop.f32.mrf.mxu1  ;;  %v5749_v45 = vpack.c.bf16 %v4551_v38, %v4549_v35  ;;  %v4364_v41 = vadd.f32 %v4363_v7, %v8731_v10  ;;  %v4555_v39 = vadd.f32 %v4554_v51, %v4362_v5 }
 0x4b4   : > { %v4365_v63 = vpop.f32.mrf.mxu0 }
 0x4b5   : > { %v4558_v56 = vpop.f32.mrf.mxu1  ;;  %5054 = vst [vmem:[%s7141_s2 + $0xd8] sm:$0xff] %v5749_v45  ;;  %v4557_v34 = vadd.f32 %v4556_v43, %v4364_v41  ;;  %v4366_v12 = vadd.f32 %v4365_v63, %v8727_v61 }
 0x4b6   : > { %v4367_v2 = vpop.f32.mrf.mxu0 }
 0x4b7   : > { %v4560_v31 = vpop.f32.mrf.mxu1  ;;  %v5751_v16 = vpack.c.bf16 %v4557_v34, %v4555_v39  ;;  %v4368_v11 = vadd.f32 %v4367_v2, %v8731_v10  ;;  %v4559_v15 = vadd.f32 %v4558_v56, %v4366_v12 }
 0x4b8   : > { %v4371_v48 = vpop.f32.mrf.mxu0 }
 0x4b9   : > { %v4564_v47 = vpop.f32.mrf.mxu1  ;;  %5056 = vst [vmem:[%s7141_s2 + $0xe8] sm:$0xff] %v5751_v16  ;;  %v4561_v29 = vadd.f32 %v4560_v31, %v4368_v11  ;;  %v4372_v44 = vadd.f32 %v4371_v48, %v8727_v61 }
 0x4ba   : > { %v4373_v57 = vpop.f32.mrf.mxu0 }
 0x4bb   : > { %v4566_v21 = vpop.f32.mrf.mxu1  ;;  %v5753_v13 = vpack.c.bf16 %v4561_v29, %v4559_v15  ;;  %v4374_v60 = vadd.f32 %v4373_v57, %v8731_v10  ;;  %v4565_v55 = vadd.f32 %v4564_v47, %v4372_v44 }
 0x4bc   : > { %v4375_v36 = vpop.f32.mrf.mxu0 }
 0x4bd   : > { %v4568_v28 = vpop.f32.mrf.mxu1  ;;  %5058 = vst [vmem:[%s7141_s2 + $0xf8] sm:$0xff] %v5753_v13  ;;  %v4567_v6 = vadd.f32 %v4566_v21, %v4374_v60  ;;  %v4376_v26 = vadd.f32 %v4375_v36, %v8727_v61 }
 0x4be   : > { %v4377_v9 = vpop.f32.mrf.mxu0 }
 0x4bf   : > { %v4570_v37 = vpop.f32.mrf.mxu1  ;;  %v5755_v4 = vpack.c.bf16 %v4567_v6, %v4565_v55  ;;  %v4378_v30 = vadd.f32 %v4377_v9, %v8731_v10  ;;  %v4569_v54 = vadd.f32 %v4568_v28, %v4376_v26 }
 0x4c0   : > { %v4381_v18 = vpop.f32.mrf.mxu0 }
 0x4c1   : > { %v4574_v0 = vpop.f32.mrf.mxu1  ;;  %5060 = vst [vmem:[%s7141_s2 + $0x108] sm:$0xff] %v5755_v4  ;;  %v4571_v8 = vadd.f32 %v4570_v37, %v4378_v30  ;;  %v4382_v23 = vadd.f32 %v4381_v18, %v8727_v61 }
 0x4c2   : > { %v4383_v59 = vpop.f32.mrf.mxu0 }
 0x4c3   : > { %v4576_v25 = vpop.f32.mrf.mxu1  ;;  %v5757_v33 = vpack.c.bf16 %v4571_v8, %v4569_v54  ;;  %v4384_v40 = vadd.f32 %v4383_v59, %v8731_v10  ;;  %v4575_v50 = vadd.f32 %v4574_v0, %v4382_v23 }
 0x4c4   : > { %v4385_v14 = vpop.f32.mrf.mxu0 }
 0x4c5   : > { %v4578_v3 = vpop.f32.mrf.mxu1  ;;  %5062 = vst [vmem:[%s7141_s2 + $0x118] sm:$0xff] %v5757_v33  ;;  %v4577_v20 = vadd.f32 %v4576_v25, %v4384_v40  ;;  %v4386_v49 = vadd.f32 %v4385_v14, %v8727_v61 }
 0x4c6   : > { %v4387_v19 = vpop.f32.mrf.mxu0 }
 0x4c7   : > { %v4580_v46 = vpop.f32.mrf.mxu1  ;;  %v5759_v1 = vpack.c.bf16 %v4577_v20, %v4575_v50  ;;  %v4388_v22 = vadd.f32 %v4387_v19, %v8731_v10  ;;  %v4579_v42 = vadd.f32 %v4578_v3, %v4386_v49 }
 0x4c8   : > { %v4391_v32 = vpop.f32.mrf.mxu0 }
 0x4c9   : > { %v4584_v53 = vpop.f32.mrf.mxu1  ;;  %5064 = vst [vmem:[%s7141_s2 + $0x128] sm:$0xff] %v5759_v1  ;;  %v4581_v17 = vadd.f32 %v4580_v46, %v4388_v22  ;;  %v4392_v27 = vadd.f32 %v4391_v32, %v8727_v61 }
 0x4ca   : > { %v4393_v58 = vpop.f32.mrf.mxu0 }
 0x4cb   : > { %v4586_v52 = vpop.f32.mrf.mxu1  ;;  %v5761_v24 = vpack.c.bf16 %v4581_v17, %v4579_v42  ;;  %v4394_v62 = vadd.f32 %v4393_v58, %v8731_v10  ;;  %v4585_v38 = vadd.f32 %v4584_v53, %v4392_v27 }
 0x4cc   : > { %v4395_v51 = vpop.f32.mrf.mxu0 }
 0x4cd   : > { %v4588_v35 = vpop.f32.mrf.mxu1  ;;  %5066 = vst [vmem:[%s7141_s2 + $0x138] sm:$0xff] %v5761_v24  ;;  %v4587_v5 = vadd.f32 %v4586_v52, %v4394_v62  ;;  %v4396_v7 = vadd.f32 %v4395_v51, %v8727_v61 }
 0x4ce   : > { %v4397_v43 = vpop.f32.mrf.mxu0 }
 0x4cf   : > { %v4590_v45 = vpop.f32.mrf.mxu1  ;;  %v5763_v41 = vpack.c.bf16 %v4587_v5, %v4585_v38  ;;  %v4398_v63 = vadd.f32 %v4397_v43, %v8731_v10  ;;  %v4589_v34 = vadd.f32 %v4588_v35, %v4396_v7 }
 0x4d0   : > { %v4401_v56 = vpop.f32.mrf.mxu0 }
 0x4d1   : > { %v4594_v39 = vpop.f32.mrf.mxu1  ;;  %5068 = vst [vmem:[%s7141_s2 + $0x148] sm:$0xff] %v5763_v41  ;;  %v4591_v12 = vadd.f32 %v4590_v45, %v4398_v63  ;;  %v4402_v2 = vadd.f32 %v4401_v56, %v8727_v61 }
 0x4d2   : > { %v4403_v31 = vpop.f32.mrf.mxu0 }
 0x4d3   : > { %v4596_v16 = vpop.f32.mrf.mxu1  ;;  %v5765_v11 = vpack.c.bf16 %v4591_v12, %v4589_v34  ;;  %v4404_v48 = vadd.f32 %v4403_v31, %v8731_v10  ;;  %v4595_v29 = vadd.f32 %v4594_v39, %v4402_v2 }
 0x4d4   : > { %v4405_v47 = vpop.f32.mrf.mxu0 }
 0x4d5   : > { %v4598_v15 = vpop.f32.mrf.mxu1  ;;  %5070 = vst [vmem:[%s7141_s2 + $0x158] sm:$0xff] %v5765_v11  ;;  %v4597_v44 = vadd.f32 %v4596_v16, %v4404_v48  ;;  %v4406_v57 = vadd.f32 %v4405_v47, %v8727_v61 }
 0x4d6   : > { %v4407_v21 = vpop.f32.mrf.mxu0 }
 0x4d7   : > { %v4600_v13 = vpop.f32.mrf.mxu1  ;;  %v5767_v60 = vpack.c.bf16 %v4597_v44, %v4595_v29  ;;  %v4408_v36 = vadd.f32 %v4407_v21, %v8731_v10  ;;  %v4599_v6 = vadd.f32 %v4598_v15, %v4406_v57 }
 0x4d8   : > { %v4411_v28 = vpop.f32.mrf.mxu0 }
 0x4d9   : > { %v4604_v55 = vpop.f32.mrf.mxu1  ;;  %5072 = vst [vmem:[%s7141_s2 + $0x168] sm:$0xff] %v5767_v60  ;;  %v4601_v26 = vadd.f32 %v4600_v13, %v4408_v36  ;;  %v4412_v9 = vadd.f32 %v4411_v28, %v8727_v61 }
 0x4da   : > { %v4413_v37 = vpop.f32.mrf.mxu0 }
 0x4db   : > { %v4606_v4 = vpop.f32.mrf.mxu1  ;;  %v5769_v30 = vpack.c.bf16 %v4601_v26, %v4599_v6  ;;  %v4414_v18 = vadd.f32 %v4413_v37, %v8731_v10  ;;  %v4605_v8 = vadd.f32 %v4604_v55, %v4412_v9 }
 0x4dc   : > { %v4415_v0 = vpop.f32.mrf.mxu0 }
 0x4dd   : > { %v4608_v54 = vpop.f32.mrf.mxu1  ;;  %5074 = vst [vmem:[%s7141_s2 + $0x178] sm:$0xff] %v5769_v30  ;;  %v4607_v23 = vadd.f32 %v4606_v4, %v4414_v18  ;;  %v4416_v59 = vadd.f32 %v4415_v0, %v8727_v61 }
 0x4de   : > { %v4417_v25 = vpop.f32.mrf.mxu0 }
 0x4df   : > { %v4610_v33 = vpop.f32.mrf.mxu1  ;;  %v5771_v40 = vpack.c.bf16 %v4607_v23, %v4605_v8  ;;  %v4418_v14 = vadd.f32 %v4417_v25, %v8731_v10  ;;  %v4609_v20 = vadd.f32 %v4608_v54, %v4416_v59 }
 0x4e0   : > { %v4421_v3 = vpop.f32.mrf.mxu0 }
 0x4e1   : > { %v4614_v50 = vpop.f32.mrf.mxu1  ;;  %5076 = vst [vmem:[%s7141_s2 + $0x188] sm:$0xff] %v5771_v40  ;;  %v4611_v49 = vadd.f32 %v4610_v33, %v4418_v14  ;;  %v4422_v19 = vadd.f32 %v4421_v3, %v8727_v61 }
 0x4e2   : > { %v4423_v46 = vpop.f32.mrf.mxu0 }
 0x4e3   : > { %v4616_v1 = vpop.f32.mrf.mxu1  ;;  %v5773_v22 = vpack.c.bf16 %v4611_v49, %v4609_v20  ;;  %v4424_v32 = vadd.f32 %v4423_v46, %v8731_v10  ;;  %v4615_v17 = vadd.f32 %v4614_v50, %v4422_v19 }
 0x4e4   : > { %v4425_v53 = vpop.f32.mrf.mxu0 }
 0x4e5   : > { %v4618_v42 = vpop.f32.mrf.mxu1  ;;  %5078 = vst [vmem:[%s7141_s2 + $0x198] sm:$0xff] %v5773_v22  ;;  %v4617_v27 = vadd.f32 %v4616_v1, %v4424_v32  ;;  %v4426_v58 = vadd.f32 %v4425_v53, %v8727_v61 }
 0x4e6   : > { %v4427_v52 = vpop.f32.mrf.mxu0 }
 0x4e7   : > { %v4620_v24 = vpop.f32.mrf.mxu1  ;;  %v5775_v62 = vpack.c.bf16 %v4617_v27, %v4615_v17  ;;  %v4428_v51 = vadd.f32 %v4427_v52, %v8731_v10  ;;  %v4619_v5 = vadd.f32 %v4618_v42, %v4426_v58 }
 0x4e8   : > { %v4431_v35 = vpop.f32.mrf.mxu0 }
 0x4e9   : > { %v4624_v38 = vpop.f32.mrf.mxu1  ;;  %5080 = vst [vmem:[%s7141_s2 + $0x1a8] sm:$0xff] %v5775_v62  ;;  %v4621_v7 = vadd.f32 %v4620_v24, %v4428_v51  ;;  %v4432_v43 = vadd.f32 %v4431_v35, %v8727_v61 }
 0x4ea   : > { %v4433_v45 = vpop.f32.mrf.mxu0 }
 0x4eb   : > { %v4626_v41 = vpop.f32.mrf.mxu1  ;;  %v5777_v63 = vpack.c.bf16 %v4621_v7, %v4619_v5  ;;  %v4434_v56 = vadd.f32 %v4433_v45, %v8731_v10  ;;  %v4625_v12 = vadd.f32 %v4624_v38, %v4432_v43 }
 0x4ec   : > { %v4435_v39 = vpop.f32.mrf.mxu0 }
 0x4ed   : > { %v4628_v34 = vpop.f32.mrf.mxu1  ;;  %5082 = vst [vmem:[%s7141_s2 + $0x1b8] sm:$0xff] %v5777_v63  ;;  %v4627_v2 = vadd.f32 %v4626_v41, %v4434_v56  ;;  %v4436_v31 = vadd.f32 %v4435_v39, %v8727_v61 }
 0x4ee   : > { %v4437_v16 = vpop.f32.mrf.mxu0 }
 0x4ef   : > { %v4630_v11 = vpop.f32.mrf.mxu1  ;;  %v5779_v48 = vpack.c.bf16 %v4627_v2, %v4625_v12  ;;  %v4438_v47 = vadd.f32 %v4437_v16, %v8731_v10  ;;  %v4629_v44 = vadd.f32 %v4628_v34, %v4436_v31 }
 0x4f0   : > { %v4441_v15 = vpop.f32.mrf.mxu0 }
 0x4f1   : > { %v4634_v29 = vpop.f32.mrf.mxu1  ;;  %5084 = vst [vmem:[%s7141_s2 + $0x1c8] sm:$0xff] %v5779_v48  ;;  %v4631_v57 = vadd.f32 %v4630_v11, %v4438_v47  ;;  %v4442_v21 = vadd.f32 %v4441_v15, %v8727_v61 }
 0x4f2   : > { %v4443_v13 = vpop.f32.mrf.mxu0 }
 0x4f3   : > { %v4636_v60 = vpop.f32.mrf.mxu1  ;;  %v5781_v36 = vpack.c.bf16 %v4631_v57, %v4629_v44  ;;  %v4444_v28 = vadd.f32 %v4443_v13, %v8731_v10  ;;  %v4635_v26 = vadd.f32 %v4634_v29, %v4442_v21 }
 0x4f4   : > { %v4445_v55 = vpop.f32.mrf.mxu0 }
 0x4f5   : > { %v4638_v6 = vpop.f32.mrf.mxu1  ;;  %5086 = vst [vmem:[%s7141_s2 + $0x1d8] sm:$0xff] %v5781_v36  ;;  %v4637_v9 = vadd.f32 %v4636_v60, %v4444_v28  ;;  %v4446_v37 = vadd.f32 %v4445_v55, %v8727_v61 }
 0x4f6   : > { %v4447_v4 = vpop.f32.mrf.mxu0 }
 0x4f7   : > { %v5783_v30 = vpack.c.bf16 %v4637_v9, %v4635_v26  ;;  %v4448_v18 = vadd.f32 %v4447_v4, %v8731_v10  ;;  %v4640_v0 = vpop.f32.mrf.mxu1  ;;  %v4639_v54 = vadd.f32 %v4638_v6, %v4446_v37 }
 0x4f9   : > { %5088 = vst [vmem:[%s7141_s2 + $0x1e8] sm:$0xff] %v5783_v30  ;;  %v4641_v8 = vadd.f32 %v4640_v0, %v4448_v18 }
 0x4fb   : > { %v5785_v61 = vpack.c.bf16 %v4641_v8, %v4639_v54 }
 0x4fd   : > { %5090 = vst [vmem:[%s7141_s2 + $0x1f8] sm:$0xff] %v5785_v61 }
 0x4fe   : > { %6689 = shalt.err (!%p6686_p6)
}
 0x4ff   : > { %s6690_s3 = scalar_lea.hbm %s8836_s5, 8192  ;;  %s6694_s16 = scalar_lea.hbm %s9011_s8, 32768 }
 0x500   : > { %p6691_p10 = scmp.ne.s32.totalorder %s8836_s5, %s6690_s3  ;;  %p6695_p9 = scmp.lt.s32.totalorder %s8836_s5, %s9011_s8 }
 0x501   : > { %p6696_p13 = scmp.lt.s32.totalorder %s6694_s16, %s6690_s3 }
 0x502   : > { %p6692_p7 = pnand %p6691_p10, %p9012_p0 }
 0x503   : > { %p6697_p4 = por %p6696_p13, %p6695_p9 }
 0x504   : > { %p6693_p11 = pneg %p6692_p7 }
 0x506   : > { %p6698_p2 = pnand %p6697_p4, %p6693_p11 }
 0x508   : > { %6701 = shalt.err (!%p6698_p2)
}
 0x509   : > { %s6842_s19 = smov 256   ;;  %s6843_s13 = smov 512  }
 0x50a   : > { %s6844_s1 = smov 16  }
 0x50b   : > { %5801 = dma.vmem_to_hbm [thread:$0]  (%p9012_p0), %s8838_s17, 8192, %s8836_s5, %s8843_s27, %s6842_s19, %s6843_s13, %s6844_s1  }
 0x50c PF: > { %s9013_s15 = sld [smem:[#allocation17_spill]]  ;;  %p5829_p12 = scmp.ge.s32.totalorder %s6828_s6, 2 }
 0x50d   : > { %s9014_s21 = sld [smem:[#allocation26_spill]] }
 0x512   : > { %s5123_s10 = sand.u32 1, %s9013_s15  }
 0x513   : > { %p9015_p5 = scmp.ne.s32.totalorder %s9014_s21, 0  ;;  %s5124_s24 = scalar_lea.sflag [#allocation5], %s5123_s10 }
 0x515   : > { %p5821_p3 = pnand %p5829_p12, %p9015_p5 }
 0x517   : > { %p5822_p8 = pneg %p5821_p3 }
 0x519   : > { %6771 = dma.done.wait (%p5822_p8), %s5124_s24, 8192  }
 0x51a   : > { %6773 = vsyncadd (%p5822_p8), %s5124_s24, 4294959104  ;;  %s25_s6 = sadd.s32 1, %s6828_s6   ;;  %s9017_s18 = sld [smem:[#allocation18_spill]] }
 0x51b   : > { %p8871_p1 = scmp.ge.s32.totalorder %s25_s6, 6   ;;  %s9018_s21 = sld [smem:[#allocation19_spill]] }
 0x51c   : > { %s9019_s17 = sld [smem:[#allocation27_spill]]  ;;  %s9022_s19 = smov %s6784_s20 }
 0x51d   : > { %s9020_s5 = sld [smem:[#allocation28_spill]]  ;;  %s9023_s20 = smov %s7084_s11 }
 0x51e   : > { %s9024_s22 = smov %s6796_s23  ;;  %s9025_s23 = smov %s7075_s12 }
 0x51f   : > { %s9026_s24 = smov %s6804_s25  ;;  %s9027_s25 = smov %s6808_s26 }
 0x520   : > { %s9028_s26 = smov %s7081_s14  ;;  %s9029_s27 = smov %s6820_s29 }
 0x521   : > { %s9030_s28 = smov %s6824_s30  ;;  %24 = sbr.rel (!%p8871_p1) target bundleno = 19 (0x13), region = 121 }
 0x522   : > { %s9031_s29 = smov %s9019_s17 }
 0x523   : > { %s9032_s30 = smov %s9020_s5 }
 0x526   :  { %5129 = vsyncpa [#allocation4], 1 }
 0x527   :  { %5131 = vsyncpa [#allocation4 + $0x1], 1 }
 0x528   :  { %5132 = vsyncpa [#allocation7], 1 }
 0x529   :  { %5133 = vsyncpa [#allocation10], 1 }
 0x52a   :  { %5135 = vsyncpa [#allocation10 + $0x1], 1 }
 0x52b   :  { %5136 = vsyncpa [#allocation5], 1 }
 0x52c   :  { %5138 = vsyncpa [#allocation5 + $0x1], 1 }

</bundles_post_ra>
